<compile_context>
chip_gen: v7x
topology: tpu7x:2x2x1
jax: 0.10.0
libtpu: 0.0.40
codegen_flags: <defaults>
</compile_context>

<pallas_src>
import functools

import jax
import jax.numpy as jnp
from jax import lax
from jax.experimental import pallas as pl
from jax.experimental.pallas import tpu as pltpu


_VMEM_LIMIT = 48 << 20  # under v7x's 64 MiB physical VMEM; above v5e/v6e defaults


def _row_tile(M, tm):
    """Row tile: full M if it fits, else a multiple of 8 (sublane aligned)."""
    if M <= tm:
        return M
    return max(8, (tm // 8) * 8)


def _compiler_params():
    return pltpu.CompilerParams(
        dimension_semantics=("parallel",),
        vmem_limit_bytes=_VMEM_LIMIT,
    )


# ---------------------------------------------------------------------------
# Pallas kernels
# ---------------------------------------------------------------------------
def _matmul_bias_kernel(x_ref, w_ref, b_ref, o_ref, *, gelu):
    x = x_ref[...]
    if x.dtype != jnp.bfloat16:
        x = x.astype(jnp.bfloat16)
    y = jnp.dot(x, w_ref[...], preferred_element_type=jnp.float32)
    y = y + b_ref[...]
    if gelu:
        # TODO(synk): module uses exact (erf) GELU; tanh approximation in-kernel.
        y = jax.nn.gelu(y, approximate=True)
    o_ref[...] = y.astype(o_ref.dtype)


def _matmul_bias_res_kernel(x_ref, w_ref, b_ref, r_ref, o_ref, *, gelu):
    x = x_ref[...]
    if x.dtype != jnp.bfloat16:
        x = x.astype(jnp.bfloat16)
    y = jnp.dot(x, w_ref[...], preferred_element_type=jnp.float32)
    y = y + b_ref[...]
    if gelu:
        y = jax.nn.gelu(y, approximate=True)
    y = y + r_ref[...].astype(jnp.float32)          # fused residual add
    o_ref[...] = y.astype(o_ref.dtype)


def linear_pallas(x, w, b, *, residual=None, gelu=False,
                  out_dtype=jnp.float32, tm=1024):
    """x: (M, K), w: (K, N) bf16, b: (N,) f32 -> (M, N).  bf16 matmul, f32 acc.
    If `residual` (M, N) f32 is given, it is added in the kernel epilogue."""
    M, K = x.shape
    K2, N = w.shape
    assert K == K2
    if w.dtype != jnp.bfloat16:
        w = w.astype(jnp.bfloat16)                  # no-op when pre-cast
    TM = _row_tile(M, tm)
    xb = jnp.dtype(x.dtype).itemsize
    ob = jnp.dtype(out_dtype).itemsize
    cost = pl.CostEstimate(
        flops=2 * M * K * N,
        transcendentals=M * N if gelu else 0,
        bytes_accessed=(M * K * xb + K * N * 2 + N * 4 + M * N * ob
                        + (M * N * 4 if residual is not None else 0)),
    )
    in_specs = [
        pl.BlockSpec((TM, K), lambda i: (i, 0)),
        pl.BlockSpec((K, N), lambda i: (0, 0)),
        pl.BlockSpec((1, N), lambda i: (0, 0)),
    ]
    args = [x, w, b.reshape(1, N)]
    if residual is not None:
        in_specs.append(pl.BlockSpec((TM, N), lambda i: (i, 0)))
        args.append(residual)
        kern = functools.partial(_matmul_bias_res_kernel, gelu=gelu)
    else:
        kern = functools.partial(_matmul_bias_kernel, gelu=gelu)
    return pl.pallas_call(
        kern,
        out_shape=jax.ShapeDtypeStruct((M, N), out_dtype),
        grid=(pl.cdiv(M, TM),),
        in_specs=in_specs,
        out_specs=pl.BlockSpec((TM, N), lambda i: (i, 0)),
        compiler_params=_compiler_params(),
        cost_estimate=cost,
    )(*args)


def _ln_matmul_kernel(x_ref, g_ref, bb_ref, w_ref, b_ref, o_ref, *, eps, gelu):
    # LayerNorm (f32) fused into the matmul that consumes it; optional GELU epilogue.
    x = x_ref[...].astype(jnp.float32)
    mu = jnp.mean(x, axis=-1, keepdims=True)
    xc = x - mu
    var = jnp.mean(xc * xc, axis=-1, keepdims=True)
    h = xc * lax.rsqrt(var + eps)
    h = h * g_ref[...] + bb_ref[...]
    y = jnp.dot(h.astype(jnp.bfloat16), w_ref[...], preferred_element_type=jnp.float32)
    y = y + b_ref[...]
    if gelu:
        # TODO(synk): tanh-approx GELU inside the kernel (module uses erf GELU).
        y = jax.nn.gelu(y, approximate=True)
    o_ref[...] = y.astype(o_ref.dtype)


def ln_linear_pallas(x, gamma, beta, w, b, *, eps=1e-5, gelu=False,
                     out_dtype=jnp.float32, tm=1024):
    """LayerNorm(x) @ w + b, row-tiled.  x: (M, K) f32, w: (K, N) bf16."""
    M, K = x.shape
    K2, N = w.shape
    assert K == K2
    if w.dtype != jnp.bfloat16:
        w = w.astype(jnp.bfloat16)
    TM = _row_tile(M, tm)
    ob = jnp.dtype(out_dtype).itemsize
    kern = functools.partial(_ln_matmul_kernel, eps=eps, gelu=gelu)
    cost = pl.CostEstimate(
        flops=2 * M * K * N + 8 * M * K,
        transcendentals=(M * N if gelu else 0) + M,
        bytes_accessed=M * K * 4 + K * N * 2 + 2 * K * 4 + N * 4 + M * N * ob,
    )
    return pl.pallas_call(
        kern,
        out_shape=jax.ShapeDtypeStruct((M, N), out_dtype),
        grid=(pl.cdiv(M, TM),),
        in_specs=[
            pl.BlockSpec((TM, K), lambda i: (i, 0)),
            pl.BlockSpec((1, K), lambda i: (0, 0)),
            pl.BlockSpec((1, K), lambda i: (0, 0)),
            pl.BlockSpec((K, N), lambda i: (0, 0)),
            pl.BlockSpec((1, N), lambda i: (0, 0)),
        ],
        out_specs=pl.BlockSpec((TM, N), lambda i: (i, 0)),
        compiler_params=_compiler_params(),
        cost_estimate=cost,
    )(x, gamma.reshape(1, K), beta.reshape(1, K), w, b.reshape(1, N))


def _favor_kernel(qkv_ref, p_ref, m_ref, o_ref, *, heads, dim_head, nb_features, eps):
    # One batch element per grid step.  q/k/v sliced from the fused qkv block
    # (static lane slices), mask applied in-kernel, random-feature projection
    # batched over all heads via a block-diagonal matrix (K = heads*dim_head).
    d = dim_head
    m = nb_features
    inner = heads * d

    qkv = qkv_ref[0]                                  # (N, 3*inner) bf16
    q = qkv[:, :inner]
    k = qkv[:, inner:2 * inner]
    v = qkv[:, 2 * inner:] * m_ref[0]                 # input_mask zeroes value rows

    pbd = p_ref[...]                                  # (inner, heads*m) bf16 block-diag
    qd_all = jnp.dot(q, pbd, preferred_element_type=jnp.float32)   # (N, heads*m) f32
    kd_all = jnp.dot(k, pbd, preferred_element_type=jnp.float32)

    q32 = q.astype(jnp.float32)
    k32 = k.astype(jnp.float32)
    ratio = float(m) ** -0.5
    half_dn2 = 0.5 * (float(d) ** -0.5)               # 0.5 * data_norm**2

    dn_tn = (((0,), (0,)), ((), ()))                  # A^T @ B (contract dim 0)

    for h in range(heads):                            # per-head epilogue (VPU + small MXU)
        a, b_ = h * d, (h + 1) * d
        fa, fb = h * m, (h + 1) * m
        qh = q32[:, a:b_]                             # (N, d) f32
        kh = k32[:, a:b_]
        vh = v[:, a:b_]                               # (N, d) bf16, masked
        qd = qd_all[:, fa:fb]                         # (N, m) f32
        kd = kd_all[:, fa:fb]

        q_diag = half_dn2 * jnp.sum(qh * qh, axis=-1, keepdims=True)   # (N, 1)
        k_diag = half_dn2 * jnp.sum(kh * kh, axis=-1, keepdims=True)

        # softmax-kernel feature maps (FAVOR+), per-head max stabilization.
        phi_q = ratio * (jnp.exp(qd - q_diag - jnp.max(qd, axis=-1, keepdims=True)) + eps)
        phi_k = ratio * (jnp.exp(kd - k_diag - jnp.max(kd)) + eps)

        k_sum = jnp.sum(phi_k, axis=0, keepdims=True)                  # (1, m)
        denom = jnp.sum(phi_q * k_sum, axis=-1, keepdims=True)         # (N, 1)
        ctx = lax.dot_general(phi_k.astype(jnp.bfloat16), vh, dn_tn,
                              preferred_element_type=jnp.float32)      # (m, d)
        out_h = jnp.dot(phi_q.astype(jnp.bfloat16), ctx.astype(jnp.bfloat16),
                        preferred_element_type=jnp.float32)            # (N, d)
        out_h = out_h / denom
        o_ref[0, :, a:b_] = out_h.astype(o_ref.dtype)                  # per-head store


def favor_attention_pallas(qkv, proj_bd, mask, *, heads, dim_head, eps=1e-4):
    """qkv: (B, N, 3*heads*dim_head) bf16 (fused), proj_bd: block-diagonal
    (heads*dim_head, heads*m) bf16 with data_norm pre-folded, mask: (B, N, 1) bf16."""
    B, N, three_inner = qkv.shape
    inner = heads * dim_head
    assert three_inner == 3 * inner
    hm = proj_bd.shape[1]
    m = hm // heads
    kern = functools.partial(_favor_kernel, heads=heads, dim_head=dim_head,
                             nb_features=m, eps=eps)
    cost = pl.CostEstimate(
        flops=B * (4 * N * inner * hm + 4 * N * heads * m * dim_head),
        transcendentals=2 * B * N * hm,
        bytes_accessed=(B * N * 3 * inner + inner * hm + B * N * inner) * 2 + B * N * 2,
    )
    # TODO(synk): on v7x (2 TensorCores) an additional parallel grid axis over
    # head groups would even out occupancy when B is small/odd; omitted because
    # lane-sub-block BlockSpecs would violate the (8,128) tiling rule at small
    # dim_head.
    return pl.pallas_call(
        kern,
        out_shape=jax.ShapeDtypeStruct((B, N, inner), jnp.bfloat16),
        grid=(B,),
        in_specs=[
            pl.BlockSpec((1, N, 3 * inner), lambda i: (i, 0, 0)),
            pl.BlockSpec((inner, hm), lambda i: (0, 0)),
            pl.BlockSpec((1, N, 1), lambda i: (i, 0, 0)),
        ],
        out_specs=pl.BlockSpec((1, N, inner), lambda i: (i, 0, 0)),
        compiler_params=_compiler_params(),
        cost_estimate=cost,
    )(qkv, proj_bd, mask)


# ---------------------------------------------------------------------------
# Model glue (plain JAX around the Pallas kernels)
# ---------------------------------------------------------------------------
def performer_block(lp, x, mask_bn1, *, heads, dim_head):
    b, n, D = x.shape
    inner = heads * dim_head
    x2 = x.reshape(b * n, D)

    # --- pre-norm self attention: LN fused into one fused-QKV matmul (bf16 out) ---
    qkv = ln_linear_pallas(x2, lp["ln1_g"], lp["ln1_b"], lp["w_qkv"], lp["b_qkv"],
                           out_dtype=jnp.bfloat16, tm=1024)
    qkv = qkv.reshape(b, n, 3 * inner)

    # FAVOR+ attention: mask + q/k/v split + projection batched in-kernel.
    attn = favor_attention_pallas(qkv, lp["proj_bd"], mask_bn1,
                                  heads=heads, dim_head=dim_head)

    # wo matmul with fused residual add (residual stream stays f32)
    x = linear_pallas(attn.reshape(b * n, inner), lp["wo"], lp["bo"],
                      residual=x2, out_dtype=jnp.float32, tm=1024).reshape(b, n, D)

    # --- pre-norm feed forward: LN + GELU fused into w1; residual fused into w2 ---
    x2 = x.reshape(b * n, D)
    ff = ln_linear_pallas(x2, lp["ln2_g"], lp["ln2_b"], lp["w1"], lp["b1"],
                          gelu=True, out_dtype=jnp.bfloat16, tm=1024)
    x = linear_pallas(ff, lp["w2"], lp["b2"],
                      residual=x2, out_dtype=jnp.float32, tm=1024).reshape(b, n, D)
    return x


def cnvcaller_forward(params, exon, mask, *, exon_size, patch_size, heads, dim_head):
    b = exon.shape[0]
    chrs = exon[:, 0, -1]       # (b,)  chromosome id (1..24), stored as float
    strt = exon[:, 0, -2]       # (b,)
    ends = exon[:, 0, -3]       # (b,)

    data = exon[:, :, :exon_size]            # (b, 1, exon_size)

    p = patch_size
    num_patches = exon_size // p
    D = params["patch_w"].shape[1]

    # rearrange 'b c (h p1) -> b h (p1 c)' with c=1
    xp = data.reshape(b, 1, num_patches, p).transpose(0, 2, 3, 1).reshape(b, num_patches, p)
    if p == 1:
        # K=1 contraction: broadcast multiply-add (VPU / XLA fusion) beats a 1-wide MXU matmul.
        x = xp * params["patch_w"][0][None, None, :] + params["patch_b"][None, None, :]
    else:
        x = linear_pallas(xp.reshape(b * num_patches, p), params["patch_w"], params["patch_b"])
        x = x.reshape(b, num_patches, D)

    # per-sample chromosome token (gather stays in JAX)
    idx = chrs.astype(jnp.int32) - 1
    crs = params["chromosome_token"][0][idx][:, None, :]   # (b, 1, D)
    x = jnp.concatenate([crs, x], axis=1)                  # (b, n, D)
    n = x.shape[1]

    # positional embedding: linspace(strt, ends, n) outer inv_freq, [sin | cos]
    t = jnp.arange(n, dtype=jnp.float32) / float(n - 1)
    pos = strt[:, None] + (ends - strt)[:, None] * t[None, :]             # (b, n)
    sin_inp = pos[:, :, None] * params["inv_freq"][None, None, :]         # (b, n, D/2)
    emb = jnp.concatenate([jnp.sin(sin_inp), jnp.cos(sin_inp)], axis=-1)  # (b, n, D)
    x = x + emb

    # input mask (performer zeroes masked value rows); converted once for all layers
    mask_bn1 = mask[:, :n].astype(jnp.bfloat16)[:, :, None]               # (b, n, 1)

    # Performer stack
    for lp in params["layers"]:
        x = performer_block(lp, x, mask_bn1, heads=heads, dim_head=dim_head)

    # cls token -> mlp_head (LN + Linear + GELU fused) -> mlp_head2 (tiny, XLA)
    cls = x[:, 0]                                                         # (b, D)
    y = ln_linear_pallas(cls, params["head_ln_g"], params["head_ln_b"],
                         params["head_w"], params["head_b"],
                         gelu=True, out_dtype=jnp.float32, tm=1024)
    z = jnp.dot(y, params["head2_w"], preferred_element_type=jnp.float32) + params["head2_b"]
    return z


# ---------------------------------------------------------------------------
# Parameter initialization (synthetic f32 weights) + one-time inference prep
# ---------------------------------------------------------------------------
def init_params(key, *, patch_dim, embed_dim, depth, heads, dim_head, nb_features, num_class):
    inner = heads * dim_head
    ks = jax.random.split(key, 8 + depth)

    def nrm(k, shape, scale=0.02):
        return scale * jax.random.normal(k, shape, jnp.float32)

    params = {
        "inv_freq": 1.0 / (1e9 ** (jnp.arange(0, embed_dim, 2, dtype=jnp.float32) / embed_dim)),
        "patch_w": nrm(ks[0], (patch_dim, embed_dim)),
        "patch_b": jnp.zeros((embed_dim,), jnp.float32),
        "chromosome_token": jax.random.normal(ks[1], (1, 24, embed_dim), jnp.float32),
        "head_ln_g": jnp.ones((embed_dim,), jnp.float32),
        "head_ln_b": jnp.zeros((embed_dim,), jnp.float32),
        "head_w": nrm(ks[2], (embed_dim, embed_dim)),
        "head_b": jnp.zeros((embed_dim,), jnp.float32),
        "head2_w": nrm(ks[3], (embed_dim, num_class)),
        "head2_b": jnp.zeros((num_class,), jnp.float32),
    }

    layers = []
    for li in range(depth):
        lk = jax.random.split(ks[8 + li], 7)
        layers.append({
            "ln1_g": jnp.ones((embed_dim,), jnp.float32),
            "ln1_b": jnp.zeros((embed_dim,), jnp.float32),
            "wq": nrm(lk[0], (embed_dim, inner)), "bq": jnp.zeros((inner,), jnp.float32),
            "wk": nrm(lk[1], (embed_dim, inner)), "bk": jnp.zeros((inner,), jnp.float32),
            "wv": nrm(lk[2], (embed_dim, inner)), "bv": jnp.zeros((inner,), jnp.float32),
            "wo": nrm(lk[3], (inner, embed_dim)), "bo": jnp.zeros((embed_dim,), jnp.float32),
            # FAVOR+ random-feature projection (performer uses orthogonal Gaussian;
            # a deterministic Gaussian is used for the synthetic weights)
            "proj": jax.random.normal(lk[4], (nb_features, dim_head), jnp.float32),
            "ln2_g": jnp.ones((embed_dim,), jnp.float32),
            "ln2_b": jnp.zeros((embed_dim,), jnp.float32),
            "w1": nrm(lk[5], (embed_dim, 4 * embed_dim)), "b1": jnp.zeros((4 * embed_dim,), jnp.float32),
            "w2": nrm(lk[6], (4 * embed_dim, embed_dim)), "b2": jnp.zeros((embed_dim,), jnp.float32),
        })
    params["layers"] = layers
    return params


def prepare_params(raw, *, heads, dim_head):
    """One-time inference prep: pre-cast matmul weights to bf16, pre-concatenate
    the QKV weights, and build the block-diagonal FAVOR projection (data_norm
    folded in).  Call OUTSIDE jit so it runs once, not per forward pass."""
    def bf(a):
        return a.astype(jnp.bfloat16)

    p = {
        "inv_freq": raw["inv_freq"],
        "patch_w": raw["patch_w"], "patch_b": raw["patch_b"],
        "chromosome_token": raw["chromosome_token"],
        "head_ln_g": raw["head_ln_g"], "head_ln_b": raw["head_ln_b"],
        "head_w": bf(raw["head_w"]), "head_b": raw["head_b"],
        "head2_w": raw["head2_w"], "head2_b": raw["head2_b"],
    }
    data_norm = float(dim_head) ** -0.25
    layers = []
    for lp in raw["layers"]:
        pT = (lp["proj"] * data_norm).T                                   # (d, m)
        proj_bd = jnp.kron(jnp.eye(heads, dtype=jnp.float32), pT)         # (H*d, H*m)
        layers.append({
            "ln1_g": lp["ln1_g"], "ln1_b": lp["ln1_b"],
            "w_qkv": bf(jnp.concatenate([lp["wq"], lp["wk"], lp["wv"]], axis=1)),
            "b_qkv": jnp.concatenate([lp["bq"], lp["bk"], lp["bv"]], axis=0),
            "wo": bf(lp["wo"]), "bo": lp["bo"],
            "proj_bd": bf(proj_bd),
            "ln2_g": lp["ln2_g"], "ln2_b": lp["ln2_b"],
            "w1": bf(lp["w1"]), "b1": lp["b1"],
            "w2": bf(lp["w2"]), "b2": lp["b2"],
        })
    p["layers"] = layers
    return p


# ---------------------------------------------------------------------------
if __name__ == "__main__":
    # Small shapes consistent with the module (ECOLE uses exon_size=1000, patch=1,
    # embed_dim=192; everything here is scaled down).
    EXON_SIZE = 16
    PATCH_SIZE = 1          # module implicitly assumes patch_size=1 (mask/pos-emb lengths)
    DEPTH = 2
    EMBED_DIM = 32
    NUM_CLASS = 3
    HEADS = 8
    DIM_HEAD = EMBED_DIM // HEADS
    NB_FEATURES = 8
    B = 2

    key = jax.random.PRNGKey(0)
    kp, kd, km = jax.random.split(key, 3)

    raw = init_params(
        kp, patch_dim=PATCH_SIZE * 1, embed_dim=EMBED_DIM, depth=DEPTH,
        heads=HEADS, dim_head=DIM_HEAD, nb_features=NB_FEATURES, num_class=NUM_CLASS)
    params = prepare_params(raw, heads=HEADS, dim_head=DIM_HEAD)

    # exon: (B, 1, EXON_SIZE + 3); trailing columns are [ends (-3), strt (-2), chr (-1)]
    data = jax.random.normal(kd, (B, 1, EXON_SIZE), jnp.float32)
    ends_v = jnp.array([2000.0, 5000.0], jnp.float32)
    strt_v = jnp.array([1000.0, 4000.0], jnp.float32)
    chr_v = jnp.array([3.0, 17.0], jnp.float32)
    extra = jnp.stack([ends_v, strt_v, chr_v], axis=-1)[:, None, :]
    exon = jnp.concatenate([data, extra], axis=-1)                 # (2, 1, 19)
    mask = jax.random.uniform(km, (B, EXON_SIZE + 2)) > 0.2        # (2, 18) bool

    fwd = jax.jit(functools.partial(
        cnvcaller_forward, exon_size=EXON_SIZE, patch_size=PATCH_SIZE,
        heads=HEADS, dim_head=DIM_HEAD))

    z = fwd(params, exon, mask)
    jax.block_until_ready(z)
    assert z.shape == (B, NUM_CLASS) and z.dtype == jnp.float32
    print("KERNEL_OK")
</pallas_src>

<mosaic_0001>
module attributes {stable_mosaic.version = 11 : i64} {
  func.func @_matmul_bias_res_kernel(%arg0: i32, %arg1: memref<34x32xbf16, #tpu.memory_space<vmem>>, %arg2: memref<32x32xbf16, #tpu.memory_space<vmem>>, %arg3: memref<1x32xf32, #tpu.memory_space<vmem>>, %arg4: memref<34x32xf32, #tpu.memory_space<vmem>>, %arg5: memref<34x32xf32, #tpu.memory_space<vmem>>) attributes {dimension_semantics = [#tpu.dimension_semantics<parallel>], iteration_bounds = array<i64: 1>, scalar_prefetch = 0 : i64, scratch_operands = 0 : i64, tpu.core_type = #tpu.core_type<tc>, window_params = [{transform_indices = @transform_0, window_bounds = array<i64: 34, 32>}, {pipeline_mode = #tpu.pipeline_mode<synchronous>, transform_indices = @transform_1, window_bounds = array<i64: 32, 32>}, {pipeline_mode = #tpu.pipeline_mode<synchronous>, transform_indices = @transform_2, window_bounds = array<i64: 1, 32>}, {transform_indices = @transform_3, window_bounds = array<i64: 34, 32>}, {transform_indices = @transform_4, window_bounds = array<i64: 34, 32>}]} {
    %c0 = arith.constant 0 : index
    %c0_0 = arith.constant 0 : index
    %0 = vector.load %arg1[%c0, %c0_0] : memref<34x32xbf16, #tpu.memory_space<vmem>>, vector<34x32xbf16>
    %c0_1 = arith.constant 0 : index
    %c0_2 = arith.constant 0 : index
    %1 = vector.load %arg2[%c0_1, %c0_2] : memref<32x32xbf16, #tpu.memory_space<vmem>>, vector<32x32xbf16>
    %cst = arith.constant dense<0.000000e+00> : vector<34x32xf32>
    %2 = tpu.matmul %0, %1, %cst {dimension_numbers = #tpu.dot_dimension_numbers<[1], [0], [0], [1], [0, 0, 1, 1], [], []>} : vector<34x32xbf16>, vector<32x32xbf16>, vector<34x32xf32> -> vector<34x32xf32>
    %c0_3 = arith.constant 0 : index
    %c0_4 = arith.constant 0 : index
    %3 = vector.load %arg3[%c0_3, %c0_4] : memref<1x32xf32, #tpu.memory_space<vmem>>, vector<1x32xf32>
    %4 = vector.broadcast %3 : vector<1x32xf32> to vector<34x32xf32>
    %5 = arith.addf %2, %4 : vector<34x32xf32>
    %c0_5 = arith.constant 0 : index
    %c0_6 = arith.constant 0 : index
    %6 = vector.load %arg4[%c0_5, %c0_6] : memref<34x32xf32, #tpu.memory_space<vmem>>, vector<34x32xf32>
    %7 = arith.addf %5, %6 : vector<34x32xf32>
    %c0_7 = arith.constant 0 : index
    %c0_8 = arith.constant 0 : index
    %8 = vector.load %arg5[%c0_7, %c0_8] : memref<34x32xf32, #tpu.memory_space<vmem>>, vector<34x32xf32>
    tpu.vector_store %arg5[%c0_7, %c0_8], %7 {strides = array<i32>} : memref<34x32xf32, #tpu.memory_space<vmem>>, vector<34x32xf32>,
    return
  }
  func.func @transform_0(%arg0: i32) -> (i32, i32) {
    %c0_i32 = arith.constant 0 : i32
    %c0_i32_0 = arith.constant 0 : i32
    return %arg0, %c0_i32 : i32, i32
  }
  func.func @transform_1(%arg0: i32) -> (i32, i32) {
    %c0_i32 = arith.constant 0 : i32
    %c0_i32_0 = arith.constant 0 : i32
    %c0_i32_1 = arith.constant 0 : i32
    return %c0_i32, %c0_i32_0 : i32, i32
  }
  func.func @transform_2(%arg0: i32) -> (i32, i32) {
    %c0_i32 = arith.constant 0 : i32
    %c0_i32_0 = arith.constant 0 : i32
    %c0_i32_1 = arith.constant 0 : i32
    return %c0_i32, %c0_i32_0 : i32, i32
  }
  func.func @transform_3(%arg0: i32) -> (i32, i32) {
    %c0_i32 = arith.constant 0 : i32
    %c0_i32_0 = arith.constant 0 : i32
    return %arg0, %c0_i32 : i32, i32
  }
  func.func @transform_4(%arg0: i32) -> (i32, i32) {
    %c0_i32 = arith.constant 0 : i32
    %c0_i32_0 = arith.constant 0 : i32
    return %arg0, %c0_i32 : i32, i32
  }
}

module attributes {stable_mosaic.version = 11 : i64} {
  func.func @_ln_matmul_kernel(%arg0: i32, %arg1: memref<34x32xf32, #tpu.memory_space<vmem>>, %arg2: memref<1x32xf32, #tpu.memory_space<vmem>>, %arg3: memref<1x32xf32, #tpu.memory_space<vmem>>, %arg4: memref<32x96xbf16, #tpu.memory_space<vmem>>, %arg5: memref<1x96xf32, #tpu.memory_space<vmem>>, %arg6: memref<34x96xbf16, #tpu.memory_space<vmem>>) attributes {dimension_semantics = [#tpu.dimension_semantics<parallel>], iteration_bounds = array<i64: 1>, scalar_prefetch = 0 : i64, scratch_operands = 0 : i64, tpu.core_type = #tpu.core_type<tc>, window_params = [{transform_indices = @transform_0, window_bounds = array<i64: 34, 32>}, {pipeline_mode = #tpu.pipeline_mode<synchronous>, transform_indices = @transform_1, window_bounds = array<i64: 1, 32>}, {pipeline_mode = #tpu.pipeline_mode<synchronous>, transform_indices = @transform_2, window_bounds = array<i64: 1, 32>}, {pipeline_mode = #tpu.pipeline_mode<synchronous>, transform_indices = @transform_3, window_bounds = array<i64: 32, 96>}, {pipeline_mode = #tpu.pipeline_mode<synchronous>, transform_indices = @transform_4, window_bounds = array<i64: 1, 96>}, {transform_indices = @transform_5, window_bounds = array<i64: 34, 96>}]} {
    %c0 = arith.constant 0 : index
    %c0_0 = arith.constant 0 : index
    %0 = vector.load %arg1[%c0, %c0_0] : memref<34x32xf32, #tpu.memory_space<vmem>>, vector<34x32xf32>
    %cst = arith.constant dense<0.000000e+00> : vector<34xf32>
    %1 = vector.multi_reduction <add>, %0, %cst [1] : vector<34x32xf32> to vector<34xf32>
    %2 = vector.shape_cast %1 : vector<34xf32> to vector<34x1xf32>
    %cst_1 = arith.constant 3.200000e+01 : f32
    %3 = vector.broadcast %cst_1 : f32 to vector<34x1xf32>
    %4 = arith.divf %2, %3 : vector<34x1xf32>
    %5 = vector.broadcast %4 : vector<34x1xf32> to vector<34x32xf32>
    %6 = arith.subf %0, %5 : vector<34x32xf32>
    %7 = arith.mulf %6, %6 : vector<34x32xf32>
    %cst_2 = arith.constant dense<0.000000e+00> : vector<34xf32>
    %8 = vector.multi_reduction <add>, %7, %cst_2 [1] : vector<34x32xf32> to vector<34xf32>
    %9 = vector.shape_cast %8 : vector<34xf32> to vector<34x1xf32>
    %cst_3 = arith.constant 3.200000e+01 : f32
    %10 = vector.broadcast %cst_3 : f32 to vector<34x1xf32>
    %11 = arith.divf %9, %10 : vector<34x1xf32>
    %cst_4 = arith.constant 9.99999974E-6 : f32
    %12 = vector.broadcast %cst_4 : f32 to vector<34x1xf32>
    %13 = arith.addf %11, %12 : vector<34x1xf32>
    %14 = math.rsqrt %13 : vector<34x1xf32>
    %15 = vector.broadcast %14 : vector<34x1xf32> to vector<34x32xf32>
    %16 = arith.mulf %6, %15 : vector<34x32xf32>
    %c0_5 = arith.constant 0 : index
    %c0_6 = arith.constant 0 : index
    %17 = vector.load %arg2[%c0_5, %c0_6] : memref<1x32xf32, #tpu.memory_space<vmem>>, vector<1x32xf32>
    %18 = vector.broadcast %17 : vector<1x32xf32> to vector<34x32xf32>
    %19 = arith.mulf %16, %18 : vector<34x32xf32>
    %c0_7 = arith.constant 0 : index
    %c0_8 = arith.constant 0 : index
    %20 = vector.load %arg3[%c0_7, %c0_8] : memref<1x32xf32, #tpu.memory_space<vmem>>, vector<1x32xf32>
    %21 = vector.broadcast %20 : vector<1x32xf32> to vector<34x32xf32>
    %22 = arith.addf %19, %21 : vector<34x32xf32>
    %23 = arith.truncf %22 : vector<34x32xf32> to vector<34x32xbf16>
    %c0_9 = arith.constant 0 : index
    %c0_10 = arith.constant 0 : index
    %24 = vector.load %arg4[%c0_9, %c0_10] : memref<32x96xbf16, #tpu.memory_space<vmem>>, vector<32x96xbf16>
    %cst_11 = arith.constant dense<0.000000e+00> : vector<34x96xf32>
    %25 = tpu.matmul %23, %24, %cst_11 {dimension_numbers = #tpu.dot_dimension_numbers<[1], [0], [0], [1], [0, 0, 1, 1], [], []>} : vector<34x32xbf16>, vector<32x96xbf16>, vector<34x96xf32> -> vector<34x96xf32>
    %c0_12 = arith.constant 0 : index
    %c0_13 = arith.constant 0 : index
    %26 = vector.load %arg5[%c0_12, %c0_13] : memref<1x96xf32, #tpu.memory_space<vmem>>, vector<1x96xf32>
    %27 = vector.broadcast %26 : vector<1x96xf32> to vector<34x96xf32>
    %28 = arith.addf %25, %27 : vector<34x96xf32>
    %29 = arith.truncf %28 : vector<34x96xf32> to vector<34x96xbf16>
    %c0_14 = arith.constant 0 : index
    %c0_15 = arith.constant 0 : index
    %30 = vector.load %arg6[%c0_14, %c0_15] : memref<34x96xbf16, #tpu.memory_space<vmem>>, vector<34x96xbf16>
    tpu.vector_store %arg6[%c0_14, %c0_15], %29 {strides = array<i32>} : memref<34x96xbf16, #tpu.memory_space<vmem>>, vector<34x96xbf16>,
    return
  }
  func.func @transform_0(%arg0: i32) -> (i32, i32) {
    %c0_i32 = arith.constant 0 : i32
    %c0_i32_0 = arith.constant 0 : i32
    return %arg0, %c0_i32 : i32, i32
  }
  func.func @transform_1(%arg0: i32) -> (i32, i32) {
    %c0_i32 = arith.constant 0 : i32
    %c0_i32_0 = arith.constant 0 : i32
    %c0_i32_1 = arith.constant 0 : i32
    return %c0_i32, %c0_i32_0 : i32, i32
  }
  func.func @transform_2(%arg0: i32) -> (i32, i32) {
    %c0_i32 = arith.constant 0 : i32
    %c0_i32_0 = arith.constant 0 : i32
    %c0_i32_1 = arith.constant 0 : i32
    return %c0_i32, %c0_i32_0 : i32, i32
  }
  func.func @transform_3(%arg0: i32) -> (i32, i32) {
    %c0_i32 = arith.constant 0 : i32
    %c0_i32_0 = arith.constant 0 : i32
    %c0_i32_1 = arith.constant 0 : i32
    return %c0_i32, %c0_i32_0 : i32, i32
  }
  func.func @transform_4(%arg0: i32) -> (i32, i32) {
    %c0_i32 = arith.constant 0 : i32
    %c0_i32_0 = arith.constant 0 : i32
    %c0_i32_1 = arith.constant 0 : i32
    return %c0_i32, %c0_i32_0 : i32, i32
  }
  func.func @transform_5(%arg0: i32) -> (i32, i32) {
    %c0_i32 = arith.constant 0 : i32
    %c0_i32_0 = arith.constant 0 : i32
    return %arg0, %c0_i32 : i32, i32
  }
}

module attributes {stable_mosaic.version = 11 : i64} {
  func.func @_ln_matmul_kernel(%arg0: i32, %arg1: memref<34x32xf32, #tpu.memory_space<vmem>>, %arg2: memref<1x32xf32, #tpu.memory_space<vmem>>, %arg3: memref<1x32xf32, #tpu.memory_space<vmem>>, %arg4: memref<32x128xbf16, #tpu.memory_space<vmem>>, %arg5: memref<1x128xf32, #tpu.memory_space<vmem>>, %arg6: memref<34x128xbf16, #tpu.memory_space<vmem>>) attributes {dimension_semantics = [#tpu.dimension_semantics<parallel>], iteration_bounds = array<i64: 1>, scalar_prefetch = 0 : i64, scratch_operands = 0 : i64, tpu.core_type = #tpu.core_type<tc>, window_params = [{transform_indices = @transform_0, window_bounds = array<i64: 34, 32>}, {pipeline_mode = #tpu.pipeline_mode<synchronous>, transform_indices = @transform_1, window_bounds = array<i64: 1, 32>}, {pipeline_mode = #tpu.pipeline_mode<synchronous>, transform_indices = @transform_2, window_bounds = array<i64: 1, 32>}, {pipeline_mode = #tpu.pipeline_mode<synchronous>, transform_indices = @transform_3, window_bounds = array<i64: 32, 128>}, {pipeline_mode = #tpu.pipeline_mode<synchronous>, transform_indices = @transform_4, window_bounds = array<i64: 1, 128>}, {transform_indices = @transform_5, window_bounds = array<i64: 34, 128>}]} {
    %c0 = arith.constant 0 : index
    %c0_0 = arith.constant 0 : index
    %0 = vector.load %arg1[%c0, %c0_0] : memref<34x32xf32, #tpu.memory_space<vmem>>, vector<34x32xf32>
    %cst = arith.constant dense<0.000000e+00> : vector<34xf32>
    %1 = vector.multi_reduction <add>, %0, %cst [1] : vector<34x32xf32> to vector<34xf32>
    %2 = vector.shape_cast %1 : vector<34xf32> to vector<34x1xf32>
    %cst_1 = arith.constant 3.200000e+01 : f32
    %3 = vector.broadcast %cst_1 : f32 to vector<34x1xf32>
    %4 = arith.divf %2, %3 : vector<34x1xf32>
    %5 = vector.broadcast %4 : vector<34x1xf32> to vector<34x32xf32>
    %6 = arith.subf %0, %5 : vector<34x32xf32>
    %7 = arith.mulf %6, %6 : vector<34x32xf32>
    %cst_2 = arith.constant dense<0.000000e+00> : vector<34xf32>
    %8 = vector.multi_reduction <add>, %7, %cst_2 [1] : vector<34x32xf32> to vector<34xf32>
    %9 = vector.shape_cast %8 : vector<34xf32> to vector<34x1xf32>
    %cst_3 = arith.constant 3.200000e+01 : f32
    %10 = vector.broadcast %cst_3 : f32 to vector<34x1xf32>
    %11 = arith.divf %9, %10 : vector<34x1xf32>
    %cst_4 = arith.constant 9.99999974E-6 : f32
    %12 = vector.broadcast %cst_4 : f32 to vector<34x1xf32>
    %13 = arith.addf %11, %12 : vector<34x1xf32>
    %14 = math.rsqrt %13 : vector<34x1xf32>
    %15 = vector.broadcast %14 : vector<34x1xf32> to vector<34x32xf32>
    %16 = arith.mulf %6, %15 : vector<34x32xf32>
    %c0_5 = arith.constant 0 : index
    %c0_6 = arith.constant 0 : index
    %17 = vector.load %arg2[%c0_5, %c0_6] : memref<1x32xf32, #tpu.memory_space<vmem>>, vector<1x32xf32>
    %18 = vector.broadcast %17 : vector<1x32xf32> to vector<34x32xf32>
    %19 = arith.mulf %16, %18 : vector<34x32xf32>
    %c0_7 = arith.constant 0 : index
    %c0_8 = arith.constant 0 : index
    %20 = vector.load %arg3[%c0_7, %c0_8] : memref<1x32xf32, #tpu.memory_space<vmem>>, vector<1x32xf32>
    %21 = vector.broadcast %20 : vector<1x32xf32> to vector<34x32xf32>
    %22 = arith.addf %19, %21 : vector<34x32xf32>
    %23 = arith.truncf %22 : vector<34x32xf32> to vector<34x32xbf16>
    %c0_9 = arith.constant 0 : index
    %c0_10 = arith.constant 0 : index
    %24 = vector.load %arg4[%c0_9, %c0_10] : memref<32x128xbf16, #tpu.memory_space<vmem>>, vector<32x128xbf16>
    %cst_11 = arith.constant dense<0.000000e+00> : vector<34x128xf32>
    %25 = tpu.matmul %23, %24, %cst_11 {dimension_numbers = #tpu.dot_dimension_numbers<[1], [0], [0], [1], [0, 0, 1, 1], [], []>} : vector<34x32xbf16>, vector<32x128xbf16>, vector<34x128xf32> -> vector<34x128xf32>
    %c0_12 = arith.constant 0 : index
    %c0_13 = arith.constant 0 : index
    %26 = vector.load %arg5[%c0_12, %c0_13] : memref<1x128xf32, #tpu.memory_space<vmem>>, vector<1x128xf32>
    %27 = vector.broadcast %26 : vector<1x128xf32> to vector<34x128xf32>
    %28 = arith.addf %25, %27 : vector<34x128xf32>
    %29 = arith.mulf %28, %28 : vector<34x128xf32>
    %30 = arith.mulf %28, %29 : vector<34x128xf32>
    %cst_14 = arith.constant 4.471500e-02 : f32
    %31 = vector.broadcast %cst_14 : f32 to vector<34x128xf32>
    %32 = arith.mulf %31, %30 : vector<34x128xf32>
    %33 = arith.addf %28, %32 : vector<34x128xf32>
    %cst_15 = arith.constant 0.797884583 : f32
    %34 = vector.broadcast %cst_15 : f32 to vector<34x128xf32>
    %35 = arith.mulf %34, %33 : vector<34x128xf32>
    %36 = math.tanh %35 : vector<34x128xf32>
    %cst_16 = arith.constant 1.000000e+00 : f32
    %37 = vector.broadcast %cst_16 : f32 to vector<34x128xf32>
    %38 = arith.addf %37, %36 : vector<34x128xf32>
    %cst_17 = arith.constant 5.000000e-01 : f32
    %39 = vector.broadcast %cst_17 : f32 to vector<34x128xf32>
    %40 = arith.mulf %39, %38 : vector<34x128xf32>
    %41 = arith.mulf %28, %40 : vector<34x128xf32>
    %42 = arith.truncf %41 : vector<34x128xf32> to vector<34x128xbf16>
    %c0_18 = arith.constant 0 : index
    %c0_19 = arith.constant 0 : index
    %43 = vector.load %arg6[%c0_18, %c0_19] : memref<34x128xbf16, #tpu.memory_space<vmem>>, vector<34x128xbf16>
    tpu.vector_store %arg6[%c0_18, %c0_19], %42 {strides = array<i32>} : memref<34x128xbf16, #tpu.memory_space<vmem>>, vector<34x128xbf16>,
    return
  }
  func.func @transform_0(%arg0: i32) -> (i32, i32) {
    %c0_i32 = arith.constant 0 : i32
    %c0_i32_0 = arith.constant 0 : i32
    return %arg0, %c0_i32 : i32, i32
  }
  func.func @transform_1(%arg0: i32) -> (i32, i32) {
    %c0_i32 = arith.constant 0 : i32
    %c0_i32_0 = arith.constant 0 : i32
    %c0_i32_1 = arith.constant 0 : i32
    return %c0_i32, %c0_i32_0 : i32, i32
  }
  func.func @transform_2(%arg0: i32) -> (i32, i32) {
    %c0_i32 = arith.constant 0 : i32
    %c0_i32_0 = arith.constant 0 : i32
    %c0_i32_1 = arith.constant 0 : i32
    return %c0_i32, %c0_i32_0 : i32, i32
  }
  func.func @transform_3(%arg0: i32) -> (i32, i32) {
    %c0_i32 = arith.constant 0 : i32
    %c0_i32_0 = arith.constant 0 : i32
    %c0_i32_1 = arith.constant 0 : i32
    return %c0_i32, %c0_i32_0 : i32, i32
  }
  func.func @transform_4(%arg0: i32) -> (i32, i32) {
    %c0_i32 = arith.constant 0 : i32
    %c0_i32_0 = arith.constant 0 : i32
    %c0_i32_1 = arith.constant 0 : i32
    return %c0_i32, %c0_i32_0 : i32, i32
  }
  func.func @transform_5(%arg0: i32) -> (i32, i32) {
    %c0_i32 = arith.constant 0 : i32
    %c0_i32_0 = arith.constant 0 : i32
    return %arg0, %c0_i32 : i32, i32
  }
}

module attributes {stable_mosaic.version = 11 : i64} {
  func.func @_favor_kernel(%arg0: i32, %arg1: memref<1x17x96xbf16, #tpu.memory_space<vmem>>, %arg2: memref<32x64xbf16, #tpu.memory_space<vmem>>, %arg3: memref<1x17x1xbf16, #tpu.memory_space<vmem>>, %arg4: memref<1x17x32xbf16, #tpu.memory_space<vmem>>) attributes {dimension_semantics = [#tpu.dimension_semantics<parallel>], iteration_bounds = array<i64: 2>, scalar_prefetch = 0 : i64, scratch_operands = 0 : i64, tpu.core_type = #tpu.core_type<tc>, window_params = [{transform_indices = @transform_0, window_bounds = array<i64: 1, 17, 96>}, {pipeline_mode = #tpu.pipeline_mode<synchronous>, transform_indices = @transform_1, window_bounds = array<i64: 32, 64>}, {transform_indices = @transform_2, window_bounds = array<i64: 1, 17, 1>}, {transform_indices = @transform_3, window_bounds = array<i64: 1, 17, 32>}]} {
    %c0 = arith.constant 0 : index
    %c0_0 = arith.constant 0 : index
    %c0_1 = arith.constant 0 : index
    %0 = vector.load %arg1[%c0, %c0_0, %c0_1] : memref<1x17x96xbf16, #tpu.memory_space<vmem>>, vector<1x17x96xbf16>
    %1 = vector.shape_cast %0 : vector<1x17x96xbf16> to vector<17x96xbf16>
    %2 = vector.extract_strided_slice %1 {offsets = [0, 0], sizes = [17, 32], strides = [1, 1]} : vector<17x96xbf16> to vector<17x32xbf16>
    %3 = vector.extract_strided_slice %1 {offsets = [0, 32], sizes = [17, 32], strides = [1, 1]} : vector<17x96xbf16> to vector<17x32xbf16>
    %4 = vector.extract_strided_slice %1 {offsets = [0, 64], sizes = [17, 32], strides = [1, 1]} : vector<17x96xbf16> to vector<17x32xbf16>
    %c0_2 = arith.constant 0 : index
    %c0_3 = arith.constant 0 : index
    %c0_4 = arith.constant 0 : index
    %5 = vector.load %arg3[%c0_2, %c0_3, %c0_4] : memref<1x17x1xbf16, #tpu.memory_space<vmem>>, vector<1x17x1xbf16>
    %6 = vector.shape_cast %5 : vector<1x17x1xbf16> to vector<17x1xbf16>
    %7 = vector.broadcast %6 : vector<17x1xbf16> to vector<17x32xbf16>
    %8 = arith.mulf %4, %7 : vector<17x32xbf16>
    %c0_5 = arith.constant 0 : index
    %c0_6 = arith.constant 0 : index
    %9 = vector.load %arg2[%c0_5, %c0_6] : memref<32x64xbf16, #tpu.memory_space<vmem>>, vector<32x64xbf16>
    %cst = arith.constant dense<0.000000e+00> : vector<17x64xf32>
    %10 = tpu.matmul %2, %9, %cst {dimension_numbers = #tpu.dot_dimension_numbers<[1], [0], [0], [1], [0, 0, 1, 1], [], []>} : vector<17x32xbf16>, vector<32x64xbf16>, vector<17x64xf32> -> vector<17x64xf32>
    %cst_7 = arith.constant dense<0.000000e+00> : vector<17x64xf32>
    %11 = tpu.matmul %3, %9, %cst_7 {dimension_numbers = #tpu.dot_dimension_numbers<[1], [0], [0], [1], [0, 0, 1, 1], [], []>} : vector<17x32xbf16>, vector<32x64xbf16>, vector<17x64xf32> -> vector<17x64xf32>
    %12 = arith.extf %2 : vector<17x32xbf16> to vector<17x32xf32>
    %13 = arith.extf %3 : vector<17x32xbf16> to vector<17x32xf32>
    %14 = vector.extract_strided_slice %12 {offsets = [0, 0], sizes = [17, 4], strides = [1, 1]} : vector<17x32xf32> to vector<17x4xf32>
    %15 = vector.extract_strided_slice %13 {offsets = [0, 0], sizes = [17, 4], strides = [1, 1]} : vector<17x32xf32> to vector<17x4xf32>
    %16 = vector.extract_strided_slice %8 {offsets = [0, 0], sizes = [17, 4], strides = [1, 1]} : vector<17x32xbf16> to vector<17x4xbf16>
    %17 = vector.extract_strided_slice %10 {offsets = [0, 0], sizes = [17, 8], strides = [1, 1]} : vector<17x64xf32> to vector<17x8xf32>
    %18 = vector.extract_strided_slice %11 {offsets = [0, 0], sizes = [17, 8], strides = [1, 1]} : vector<17x64xf32> to vector<17x8xf32>
    %19 = arith.mulf %14, %14 : vector<17x4xf32>
    %cst_8 = arith.constant dense<0.000000e+00> : vector<17xf32>
    %20 = vector.multi_reduction <add>, %19, %cst_8 [1] : vector<17x4xf32> to vector<17xf32>
    %21 = vector.shape_cast %20 : vector<17xf32> to vector<17x1xf32>
    %cst_9 = arith.constant 2.500000e-01 : f32
    %22 = vector.broadcast %cst_9 : f32 to vector<17x1xf32>
    %23 = arith.mulf %22, %21 : vector<17x1xf32>
    %24 = arith.mulf %15, %15 : vector<17x4xf32>
    %cst_10 = arith.constant dense<0.000000e+00> : vector<17xf32>
    %25 = vector.multi_reduction <add>, %24, %cst_10 [1] : vector<17x4xf32> to vector<17xf32>
    %26 = vector.shape_cast %25 : vector<17xf32> to vector<17x1xf32>
    %cst_11 = arith.constant 2.500000e-01 : f32
    %27 = vector.broadcast %cst_11 : f32 to vector<17x1xf32>
    %28 = arith.mulf %27, %26 : vector<17x1xf32>
    %29 = vector.broadcast %23 : vector<17x1xf32> to vector<17x8xf32>
    %30 = arith.subf %17, %29 : vector<17x8xf32>
    %cst_12 = arith.constant dense<0xFF800000> : vector<17xf32>
    %31 = vector.multi_reduction <maximumf>, %17, %cst_12 [1] : vector<17x8xf32> to vector<17xf32>
    %32 = vector.shape_cast %31 : vector<17xf32> to vector<17x1xf32>
    %33 = vector.broadcast %32 : vector<17x1xf32> to vector<17x8xf32>
    %34 = arith.subf %30, %33 : vector<17x8xf32>
    %35 = math.exp %34 : vector<17x8xf32>
    %cst_13 = arith.constant 9.99999974E-5 : f32
    %36 = vector.broadcast %cst_13 : f32 to vector<17x8xf32>
    %37 = arith.addf %35, %36 : vector<17x8xf32>
    %cst_14 = arith.constant 0.353553385 : f32
    %38 = vector.broadcast %cst_14 : f32 to vector<17x8xf32>
    %39 = arith.mulf %38, %37 : vector<17x8xf32>
    %40 = vector.broadcast %28 : vector<17x1xf32> to vector<17x8xf32>
    %41 = arith.subf %18, %40 : vector<17x8xf32>
    %42 = vector.shape_cast %18 : vector<17x8xf32> to vector<1x17x8xf32>
    %cst_15 = arith.constant dense<0xFF800000> : vector<1xf32>
    %43 = vector.multi_reduction <maximumf>, %42, %cst_15 [1, 2] : vector<1x17x8xf32> to vector<1xf32>
    %44 = vector.shape_cast %43 : vector<1xf32> to vector<1x1x1xf32>
    %45 = vector.extract %44[0, 0, 0] : f32 from vector<1x1x1xf32>
    %46 = vector.broadcast %45 : f32 to vector<17x8xf32>
    %47 = arith.subf %41, %46 : vector<17x8xf32>
    %48 = math.exp %47 : vector<17x8xf32>
    %cst_16 = arith.constant 9.99999974E-5 : f32
    %49 = vector.broadcast %cst_16 : f32 to vector<17x8xf32>
    %50 = arith.addf %48, %49 : vector<17x8xf32>
    %cst_17 = arith.constant 0.353553385 : f32
    %51 = vector.broadcast %cst_17 : f32 to vector<17x8xf32>
    %52 = arith.mulf %51, %50 : vector<17x8xf32>
    %cst_18 = arith.constant dense<0.000000e+00> : vector<8xf32>
    %53 = vector.multi_reduction <add>, %52, %cst_18 [0] : vector<17x8xf32> to vector<8xf32>
    %54 = vector.shape_cast %53 : vector<8xf32> to vector<1x8xf32>
    %55 = vector.broadcast %54 : vector<1x8xf32> to vector<17x8xf32>
    %56 = arith.mulf %39, %55 : vector<17x8xf32>
    %cst_19 = arith.constant dense<0.000000e+00> : vector<17xf32>
    %57 = vector.multi_reduction <add>, %56, %cst_19 [1] : vector<17x8xf32> to vector<17xf32>
    %58 = vector.shape_cast %57 : vector<17xf32> to vector<17x1xf32>
    %59 = arith.truncf %52 : vector<17x8xf32> to vector<17x8xbf16>
    %cst_20 = arith.constant dense<0.000000e+00> : vector<8x4xf32>
    %60 = tpu.matmul %59, %16, %cst_20 {dimension_numbers = #tpu.dot_dimension_numbers<[0], [0], [1], [1], [0, 1, 1, 1], [], []>} : vector<17x8xbf16>, vector<17x4xbf16>, vector<8x4xf32> -> vector<8x4xf32>
    %61 = arith.truncf %39 : vector<17x8xf32> to vector<17x8xbf16>
    %62 = arith.truncf %60 : vector<8x4xf32> to vector<8x4xbf16>
    %cst_21 = arith.constant dense<0.000000e+00> : vector<17x4xf32>
    %63 = tpu.matmul %61, %62, %cst_21 {dimension_numbers = #tpu.dot_dimension_numbers<[1], [0], [0], [1], [0, 0, 1, 1], [], []>} : vector<17x8xbf16>, vector<8x4xbf16>, vector<17x4xf32> -> vector<17x4xf32>
    %64 = vector.broadcast %58 : vector<17x1xf32> to vector<17x4xf32>
    %65 = arith.divf %63, %64 : vector<17x4xf32>
    %66 = arith.truncf %65 : vector<17x4xf32> to vector<17x4xbf16>
    %c0_22 = arith.constant 0 : index
    %c0_23 = arith.constant 0 : index
    %c0_24 = arith.constant 0 : index
    %67 = vector.load %arg4[%c0_22, %c0_23, %c0_24] : memref<1x17x32xbf16, #tpu.memory_space<vmem>>, vector<1x17x4xbf16>
    %68 = vector.shape_cast %67 : vector<1x17x4xbf16> to vector<17x4xbf16>
    %69 = vector.shape_cast %66 : vector<17x4xbf16> to vector<1x17x4xbf16>
    tpu.vector_store %arg4[%c0_22, %c0_23, %c0_24], %69 {strides = array<i32>} : memref<1x17x32xbf16, #tpu.memory_space<vmem>>, vector<1x17x4xbf16>,
    %70 = vector.extract_strided_slice %12 {offsets = [0, 4], sizes = [17, 4], strides = [1, 1]} : vector<17x32xf32> to vector<17x4xf32>
    %71 = vector.extract_strided_slice %13 {offsets = [0, 4], sizes = [17, 4], strides = [1, 1]} : vector<17x32xf32> to vector<17x4xf32>
    %72 = vector.extract_strided_slice %8 {offsets = [0, 4], sizes = [17, 4], strides = [1, 1]} : vector<17x32xbf16> to vector<17x4xbf16>
    %73 = vector.extract_strided_slice %10 {offsets = [0, 8], sizes = [17, 8], strides = [1, 1]} : vector<17x64xf32> to vector<17x8xf32>
    %74 = vector.extract_strided_slice %11 {offsets = [0, 8], sizes = [17, 8], strides = [1, 1]} : vector<17x64xf32> to vector<17x8xf32>
    %75 = arith.mulf %70, %70 : vector<17x4xf32>
    %cst_25 = arith.constant dense<0.000000e+00> : vector<17xf32>
    %76 = vector.multi_reduction <add>, %75, %cst_25 [1] : vector<17x4xf32> to vector<17xf32>
    %77 = vector.shape_cast %76 : vector<17xf32> to vector<17x1xf32>
    %cst_26 = arith.constant 2.500000e-01 : f32
    %78 = vector.broadcast %cst_26 : f32 to vector<17x1xf32>
    %79 = arith.mulf %78, %77 : vector<17x1xf32>
    %80 = arith.mulf %71, %71 : vector<17x4xf32>
    %cst_27 = arith.constant dense<0.000000e+00> : vector<17xf32>
    %81 = vector.multi_reduction <add>, %80, %cst_27 [1] : vector<17x4xf32> to vector<17xf32>
    %82 = vector.shape_cast %81 : vector<17xf32> to vector<17x1xf32>
    %cst_28 = arith.constant 2.500000e-01 : f32
    %83 = vector.broadcast %cst_28 : f32 to vector<17x1xf32>
    %84 = arith.mulf %83, %82 : vector<17x1xf32>
    %85 = vector.broadcast %79 : vector<17x1xf32> to vector<17x8xf32>
    %86 = arith.subf %73, %85 : vector<17x8xf32>
    %cst_29 = arith.constant dense<0xFF800000> : vector<17xf32>
    %87 = vector.multi_reduction <maximumf>, %73, %cst_29 [1] : vector<17x8xf32> to vector<17xf32>
    %88 = vector.shape_cast %87 : vector<17xf32> to vector<17x1xf32>
    %89 = vector.broadcast %88 : vector<17x1xf32> to vector<17x8xf32>
    %90 = arith.subf %86, %89 : vector<17x8xf32>
    %91 = math.exp %90 : vector<17x8xf32>
    %cst_30 = arith.constant 9.99999974E-5 : f32
    %92 = vector.broadcast %cst_30 : f32 to vector<17x8xf32>
    %93 = arith.addf %91, %92 : vector<17x8xf32>
    %cst_31 = arith.constant 0.353553385 : f32
    %94 = vector.broadcast %cst_31 : f32 to vector<17x8xf32>
    %95 = arith.mulf %94, %93 : vector<17x8xf32>
    %96 = vector.broadcast %84 : vector<17x1xf32> to vector<17x8xf32>
    %97 = arith.subf %74, %96 : vector<17x8xf32>
    %98 = vector.shape_cast %74 : vector<17x8xf32> to vector<1x17x8xf32>
    %cst_32 = arith.constant dense<0xFF800000> : vector<1xf32>
    %99 = vector.multi_reduction <maximumf>, %98, %cst_32 [1, 2] : vector<1x17x8xf32> to vector<1xf32>
    %100 = vector.shape_cast %99 : vector<1xf32> to vector<1x1x1xf32>
    %101 = vector.extract %100[0, 0, 0] : f32 from vector<1x1x1xf32>
    %102 = vector.broadcast %101 : f32 to vector<17x8xf32>
    %103 = arith.subf %97, %102 : vector<17x8xf32>
    %104 = math.exp %103 : vector<17x8xf32>
    %cst_33 = arith.constant 9.99999974E-5 : f32
    %105 = vector.broadcast %cst_33 : f32 to vector<17x8xf32>
    %106 = arith.addf %104, %105 : vector<17x8xf32>
    %cst_34 = arith.constant 0.353553385 : f32
    %107 = vector.broadcast %cst_34 : f32 to vector<17x8xf32>
    %108 = arith.mulf %107, %106 : vector<17x8xf32>
    %cst_35 = arith.constant dense<0.000000e+00> : vector<8xf32>
    %109 = vector.multi_reduction <add>, %108, %cst_35 [0] : vector<17x8xf32> to vector<8xf32>
    %110 = vector.shape_cast %109 : vector<8xf32> to vector<1x8xf32>
    %111 = vector.broadcast %110 : vector<1x8xf32> to vector<17x8xf32>
    %112 = arith.mulf %95, %111 : vector<17x8xf32>
    %cst_36 = arith.constant dense<0.000000e+00> : vector<17xf32>
    %113 = vector.multi_reduction <add>, %112, %cst_36 [1] : vector<17x8xf32> to vector<17xf32>
    %114 = vector.shape_cast %113 : vector<17xf32> to vector<17x1xf32>
    %115 = arith.truncf %108 : vector<17x8xf32> to vector<17x8xbf16>
    %cst_37 = arith.constant dense<0.000000e+00> : vector<8x4xf32>
    %116 = tpu.matmul %115, %72, %cst_37 {dimension_numbers = #tpu.dot_dimension_numbers<[0], [0], [1], [1], [0, 1, 1, 1], [], []>} : vector<17x8xbf16>, vector<17x4xbf16>, vector<8x4xf32> -> vector<8x4xf32>
    %117 = arith.truncf %95 : vector<17x8xf32> to vector<17x8xbf16>
    %118 = arith.truncf %116 : vector<8x4xf32> to vector<8x4xbf16>
    %cst_38 = arith.constant dense<0.000000e+00> : vector<17x4xf32>
    %119 = tpu.matmul %117, %118, %cst_38 {dimension_numbers = #tpu.dot_dimension_numbers<[1], [0], [0], [1], [0, 0, 1, 1], [], []>} : vector<17x8xbf16>, vector<8x4xbf16>, vector<17x4xf32> -> vector<17x4xf32>
    %120 = vector.broadcast %114 : vector<17x1xf32> to vector<17x4xf32>
    %121 = arith.divf %119, %120 : vector<17x4xf32>
    %122 = arith.truncf %121 : vector<17x4xf32> to vector<17x4xbf16>
    %c0_39 = arith.constant 0 : index
    %c0_40 = arith.constant 0 : index
    %c4 = arith.constant 4 : index
    %123 = vector.load %arg4[%c0_39, %c0_40, %c4] : memref<1x17x32xbf16, #tpu.memory_space<vmem>>, vector<1x17x4xbf16>
    %124 = vector.shape_cast %123 : vector<1x17x4xbf16> to vector<17x4xbf16>
    %125 = vector.shape_cast %122 : vector<17x4xbf16> to vector<1x17x4xbf16>
    tpu.vector_store %arg4[%c0_39, %c0_40, %c4], %125 {strides = array<i32>} : memref<1x17x32xbf16, #tpu.memory_space<vmem>>, vector<1x17x4xbf16>,
    %126 = vector.extract_strided_slice %12 {offsets = [0, 8], sizes = [17, 4], strides = [1, 1]} : vector<17x32xf32> to vector<17x4xf32>
    %127 = vector.extract_strided_slice %13 {offsets = [0, 8], sizes = [17, 4], strides = [1, 1]} : vector<17x32xf32> to vector<17x4xf32>
    %128 = vector.extract_strided_slice %8 {offsets = [0, 8], sizes = [17, 4], strides = [1, 1]} : vector<17x32xbf16> to vector<17x4xbf16>
    %129 = vector.extract_strided_slice %10 {offsets = [0, 16], sizes = [17, 8], strides = [1, 1]} : vector<17x64xf32> to vector<17x8xf32>
    %130 = vector.extract_strided_slice %11 {offsets = [0, 16], sizes = [17, 8], strides = [1, 1]} : vector<17x64xf32> to vector<17x8xf32>
    %131 = arith.mulf %126, %126 : vector<17x4xf32>
    %cst_41 = arith.constant dense<0.000000e+00> : vector<17xf32>
    %132 = vector.multi_reduction <add>, %131, %cst_41 [1] : vector<17x4xf32> to vector<17xf32>
    %133 = vector.shape_cast %132 : vector<17xf32> to vector<17x1xf32>
    %cst_42 = arith.constant 2.500000e-01 : f32
    %134 = vector.broadcast %cst_42 : f32 to vector<17x1xf32>
    %135 = arith.mulf %134, %133 : vector<17x1xf32>
    %136 = arith.mulf %127, %127 : vector<17x4xf32>
    %cst_43 = arith.constant dense<0.000000e+00> : vector<17xf32>
    %137 = vector.multi_reduction <add>, %136, %cst_43 [1] : vector<17x4xf32> to vector<17xf32>
    %138 = vector.shape_cast %137 : vector<17xf32> to vector<17x1xf32>
    %cst_44 = arith.constant 2.500000e-01 : f32
    %139 = vector.broadcast %cst_44 : f32 to vector<17x1xf32>
    %140 = arith.mulf %139, %138 : vector<17x1xf32>
    %141 = vector.broadcast %135 : vector<17x1xf32> to vector<17x8xf32>
    %142 = arith.subf %129, %141 : vector<17x8xf32>
    %cst_45 = arith.constant dense<0xFF800000> : vector<17xf32>
    %143 = vector.multi_reduction <maximumf>, %129, %cst_45 [1] : vector<17x8xf32> to vector<17xf32>
    %144 = vector.shape_cast %143 : vector<17xf32> to vector<17x1xf32>
    %145 = vector.broadcast %144 : vector<17x1xf32> to vector<17x8xf32>
    %146 = arith.subf %142, %145 : vector<17x8xf32>
    %147 = math.exp %146 : vector<17x8xf32>
    %cst_46 = arith.constant 9.99999974E-5 : f32
    %148 = vector.broadcast %cst_46 : f32 to vector<17x8xf32>
    %149 = arith.addf %147, %148 : vector<17x8xf32>
    %cst_47 = arith.constant 0.353553385 : f32
    %150 = vector.broadcast %cst_47 : f32 to vector<17x8xf32>
    %151 = arith.mulf %150, %149 : vector<17x8xf32>
    %152 = vector.broadcast %140 : vector<17x1xf32> to vector<17x8xf32>
    %153 = arith.subf %130, %152 : vector<17x8xf32>
    %154 = vector.shape_cast %130 : vector<17x8xf32> to vector<1x17x8xf32>
    %cst_48 = arith.constant dense<0xFF800000> : vector<1xf32>
    %155 = vector.multi_reduction <maximumf>, %154, %cst_48 [1, 2] : vector<1x17x8xf32> to vector<1xf32>
    %156 = vector.shape_cast %155 : vector<1xf32> to vector<1x1x1xf32>
    %157 = vector.extract %156[0, 0, 0] : f32 from vector<1x1x1xf32>
    %158 = vector.broadcast %157 : f32 to vector<17x8xf32>
    %159 = arith.subf %153, %158 : vector<17x8xf32>
    %160 = math.exp %159 : vector<17x8xf32>
    %cst_49 = arith.constant 9.99999974E-5 : f32
    %161 = vector.broadcast %cst_49 : f32 to vector<17x8xf32>
    %162 = arith.addf %160, %161 : vector<17x8xf32>
    %cst_50 = arith.constant 0.353553385 : f32
    %163 = vector.broadcast %cst_50 : f32 to vector<17x8xf32>
    %164 = arith.mulf %163, %162 : vector<17x8xf32>
    %cst_51 = arith.constant dense<0.000000e+00> : vector<8xf32>
    %165 = vector.multi_reduction <add>, %164, %cst_51 [0] : vector<17x8xf32> to vector<8xf32>
    %166 = vector.shape_cast %165 : vector<8xf32> to vector<1x8xf32>
    %167 = vector.broadcast %166 : vector<1x8xf32> to vector<17x8xf32>
    %168 = arith.mulf %151, %167 : vector<17x8xf32>
    %cst_52 = arith.constant dense<0.000000e+00> : vector<17xf32>
    %169 = vector.multi_reduction <add>, %168, %cst_52 [1] : vector<17x8xf32> to vector<17xf32>
    %170 = vector.shape_cast %169 : vector<17xf32> to vector<17x1xf32>
    %171 = arith.truncf %164 : vector<17x8xf32> to vector<17x8xbf16>
    %cst_53 = arith.constant dense<0.000000e+00> : vector<8x4xf32>
    %172 = tpu.matmul %171, %128, %cst_53 {dimension_numbers = #tpu.dot_dimension_numbers<[0], [0], [1], [1], [0, 1, 1, 1], [], []>} : vector<17x8xbf16>, vector<17x4xbf16>, vector<8x4xf32> -> vector<8x4xf32>
    %173 = arith.truncf %151 : vector<17x8xf32> to vector<17x8xbf16>
    %174 = arith.truncf %172 : vector<8x4xf32> to vector<8x4xbf16>
    %cst_54 = arith.constant dense<0.000000e+00> : vector<17x4xf32>
    %175 = tpu.matmul %173, %174, %cst_54 {dimension_numbers = #tpu.dot_dimension_numbers<[1], [0], [0], [1], [0, 0, 1, 1], [], []>} : vector<17x8xbf16>, vector<8x4xbf16>, vector<17x4xf32> -> vector<17x4xf32>
    %176 = vector.broadcast %170 : vector<17x1xf32> to vector<17x4xf32>
    %177 = arith.divf %175, %176 : vector<17x4xf32>
    %178 = arith.truncf %177 : vector<17x4xf32> to vector<17x4xbf16>
    %c0_55 = arith.constant 0 : index
    %c0_56 = arith.constant 0 : index
    %c8 = arith.constant 8 : index
    %179 = vector.load %arg4[%c0_55, %c0_56, %c8] : memref<1x17x32xbf16, #tpu.memory_space<vmem>>, vector<1x17x4xbf16>
    %180 = vector.shape_cast %179 : vector<1x17x4xbf16> to vector<17x4xbf16>
    %181 = vector.shape_cast %178 : vector<17x4xbf16> to vector<1x17x4xbf16>
    tpu.vector_store %arg4[%c0_55, %c0_56, %c8], %181 {strides = array<i32>} : memref<1x17x32xbf16, #tpu.memory_space<vmem>>, vector<1x17x4xbf16>,
    %182 = vector.extract_strided_slice %12 {offsets = [0, 12], sizes = [17, 4], strides = [1, 1]} : vector<17x32xf32> to vector<17x4xf32>
    %183 = vector.extract_strided_slice %13 {offsets = [0, 12], sizes = [17, 4], strides = [1, 1]} : vector<17x32xf32> to vector<17x4xf32>
    %184 = vector.extract_strided_slice %8 {offsets = [0, 12], sizes = [17, 4], strides = [1, 1]} : vector<17x32xbf16> to vector<17x4xbf16>
    %185 = vector.extract_strided_slice %10 {offsets = [0, 24], sizes = [17, 8], strides = [1, 1]} : vector<17x64xf32> to vector<17x8xf32>
    %186 = vector.extract_strided_slice %11 {offsets = [0, 24], sizes = [17, 8], strides = [1, 1]} : vector<17x64xf32> to vector<17x8xf32>
    %187 = arith.mulf %182, %182 : vector<17x4xf32>
    %cst_57 = arith.constant dense<0.000000e+00> : vector<17xf32>
    %188 = vector.multi_reduction <add>, %187, %cst_57 [1] : vector<17x4xf32> to vector<17xf32>
    %189 = vector.shape_cast %188 : vector<17xf32> to vector<17x1xf32>
    %cst_58 = arith.constant 2.500000e-01 : f32
    %190 = vector.broadcast %cst_58 : f32 to vector<17x1xf32>
    %191 = arith.mulf %190, %189 : vector<17x1xf32>
    %192 = arith.mulf %183, %183 : vector<17x4xf32>
    %cst_59 = arith.constant dense<0.000000e+00> : vector<17xf32>
    %193 = vector.multi_reduction <add>, %192, %cst_59 [1] : vector<17x4xf32> to vector<17xf32>
    %194 = vector.shape_cast %193 : vector<17xf32> to vector<17x1xf32>
    %cst_60 = arith.constant 2.500000e-01 : f32
    %195 = vector.broadcast %cst_60 : f32 to vector<17x1xf32>
    %196 = arith.mulf %195, %194 : vector<17x1xf32>
    %197 = vector.broadcast %191 : vector<17x1xf32> to vector<17x8xf32>
    %198 = arith.subf %185, %197 : vector<17x8xf32>
    %cst_61 = arith.constant dense<0xFF800000> : vector<17xf32>
    %199 = vector.multi_reduction <maximumf>, %185, %cst_61 [1] : vector<17x8xf32> to vector<17xf32>
    %200 = vector.shape_cast %199 : vector<17xf32> to vector<17x1xf32>
    %201 = vector.broadcast %200 : vector<17x1xf32> to vector<17x8xf32>
    %202 = arith.subf %198, %201 : vector<17x8xf32>
    %203 = math.exp %202 : vector<17x8xf32>
    %cst_62 = arith.constant 9.99999974E-5 : f32
    %204 = vector.broadcast %cst_62 : f32 to vector<17x8xf32>
    %205 = arith.addf %203, %204 : vector<17x8xf32>
    %cst_63 = arith.constant 0.353553385 : f32
    %206 = vector.broadcast %cst_63 : f32 to vector<17x8xf32>
    %207 = arith.mulf %206, %205 : vector<17x8xf32>
    %208 = vector.broadcast %196 : vector<17x1xf32> to vector<17x8xf32>
    %209 = arith.subf %186, %208 : vector<17x8xf32>
    %210 = vector.shape_cast %186 : vector<17x8xf32> to vector<1x17x8xf32>
    %cst_64 = arith.constant dense<0xFF800000> : vector<1xf32>
    %211 = vector.multi_reduction <maximumf>, %210, %cst_64 [1, 2] : vector<1x17x8xf32> to vector<1xf32>
    %212 = vector.shape_cast %211 : vector<1xf32> to vector<1x1x1xf32>
    %213 = vector.extract %212[0, 0, 0] : f32 from vector<1x1x1xf32>
    %214 = vector.broadcast %213 : f32 to vector<17x8xf32>
    %215 = arith.subf %209, %214 : vector<17x8xf32>
    %216 = math.exp %215 : vector<17x8xf32>
    %cst_65 = arith.constant 9.99999974E-5 : f32
    %217 = vector.broadcast %cst_65 : f32 to vector<17x8xf32>
    %218 = arith.addf %216, %217 : vector<17x8xf32>
    %cst_66 = arith.constant 0.353553385 : f32
    %219 = vector.broadcast %cst_66 : f32 to vector<17x8xf32>
    %220 = arith.mulf %219, %218 : vector<17x8xf32>
    %cst_67 = arith.constant dense<0.000000e+00> : vector<8xf32>
    %221 = vector.multi_reduction <add>, %220, %cst_67 [0] : vector<17x8xf32> to vector<8xf32>
    %222 = vector.shape_cast %221 : vector<8xf32> to vector<1x8xf32>
    %223 = vector.broadcast %222 : vector<1x8xf32> to vector<17x8xf32>
    %224 = arith.mulf %207, %223 : vector<17x8xf32>
    %cst_68 = arith.constant dense<0.000000e+00> : vector<17xf32>
    %225 = vector.multi_reduction <add>, %224, %cst_68 [1] : vector<17x8xf32> to vector<17xf32>
    %226 = vector.shape_cast %225 : vector<17xf32> to vector<17x1xf32>
    %227 = arith.truncf %220 : vector<17x8xf32> to vector<17x8xbf16>
    %cst_69 = arith.constant dense<0.000000e+00> : vector<8x4xf32>
    %228 = tpu.matmul %227, %184, %cst_69 {dimension_numbers = #tpu.dot_dimension_numbers<[0], [0], [1], [1], [0, 1, 1, 1], [], []>} : vector<17x8xbf16>, vector<17x4xbf16>, vector<8x4xf32> -> vector<8x4xf32>
    %229 = arith.truncf %207 : vector<17x8xf32> to vector<17x8xbf16>
    %230 = arith.truncf %228 : vector<8x4xf32> to vector<8x4xbf16>
    %cst_70 = arith.constant dense<0.000000e+00> : vector<17x4xf32>
    %231 = tpu.matmul %229, %230, %cst_70 {dimension_numbers = #tpu.dot_dimension_numbers<[1], [0], [0], [1], [0, 0, 1, 1], [], []>} : vector<17x8xbf16>, vector<8x4xbf16>, vector<17x4xf32> -> vector<17x4xf32>
    %232 = vector.broadcast %226 : vector<17x1xf32> to vector<17x4xf32>
    %233 = arith.divf %231, %232 : vector<17x4xf32>
    %234 = arith.truncf %233 : vector<17x4xf32> to vector<17x4xbf16>
    %c0_71 = arith.constant 0 : index
    %c0_72 = arith.constant 0 : index
    %c12 = arith.constant 12 : index
    %235 = vector.load %arg4[%c0_71, %c0_72, %c12] : memref<1x17x32xbf16, #tpu.memory_space<vmem>>, vector<1x17x4xbf16>
    %236 = vector.shape_cast %235 : vector<1x17x4xbf16> to vector<17x4xbf16>
    %237 = vector.shape_cast %234 : vector<17x4xbf16> to vector<1x17x4xbf16>
    tpu.vector_store %arg4[%c0_71, %c0_72, %c12], %237 {strides = array<i32>} : memref<1x17x32xbf16, #tpu.memory_space<vmem>>, vector<1x17x4xbf16>,
    %238 = vector.extract_strided_slice %12 {offsets = [0, 16], sizes = [17, 4], strides = [1, 1]} : vector<17x32xf32> to vector<17x4xf32>
    %239 = vector.extract_strided_slice %13 {offsets = [0, 16], sizes = [17, 4], strides = [1, 1]} : vector<17x32xf32> to vector<17x4xf32>
    %240 = vector.extract_strided_slice %8 {offsets = [0, 16], sizes = [17, 4], strides = [1, 1]} : vector<17x32xbf16> to vector<17x4xbf16>
    %241 = vector.extract_strided_slice %10 {offsets = [0, 32], sizes = [17, 8], strides = [1, 1]} : vector<17x64xf32> to vector<17x8xf32>
    %242 = vector.extract_strided_slice %11 {offsets = [0, 32], sizes = [17, 8], strides = [1, 1]} : vector<17x64xf32> to vector<17x8xf32>
    %243 = arith.mulf %238, %238 : vector<17x4xf32>
    %cst_73 = arith.constant dense<0.000000e+00> : vector<17xf32>
    %244 = vector.multi_reduction <add>, %243, %cst_73 [1] : vector<17x4xf32> to vector<17xf32>
    %245 = vector.shape_cast %244 : vector<17xf32> to vector<17x1xf32>
    %cst_74 = arith.constant 2.500000e-01 : f32
    %246 = vector.broadcast %cst_74 : f32 to vector<17x1xf32>
    %247 = arith.mulf %246, %245 : vector<17x1xf32>
    %248 = arith.mulf %239, %239 : vector<17x4xf32>
    %cst_75 = arith.constant dense<0.000000e+00> : vector<17xf32>
    %249 = vector.multi_reduction <add>, %248, %cst_75 [1] : vector<17x4xf32> to vector<17xf32>
    %250 = vector.shape_cast %249 : vector<17xf32> to vector<17x1xf32>
    %cst_76 = arith.constant 2.500000e-01 : f32
    %251 = vector.broadcast %cst_76 : f32 to vector<17x1xf32>
    %252 = arith.mulf %251, %250 : vector<17x1xf32>
    %253 = vector.broadcast %247 : vector<17x1xf32> to vector<17x8xf32>
    %254 = arith.subf %241, %253 : vector<17x8xf32>
    %cst_77 = arith.constant dense<0xFF800000> : vector<17xf32>
    %255 = vector.multi_reduction <maximumf>, %241, %cst_77 [1] : vector<17x8xf32> to vector<17xf32>
    %256 = vector.shape_cast %255 : vector<17xf32> to vector<17x1xf32>
    %257 = vector.broadcast %256 : vector<17x1xf32> to vector<17x8xf32>
    %258 = arith.subf %254, %257 : vector<17x8xf32>
    %259 = math.exp %258 : vector<17x8xf32>
    %cst_78 = arith.constant 9.99999974E-5 : f32
    %260 = vector.broadcast %cst_78 : f32 to vector<17x8xf32>
    %261 = arith.addf %259, %260 : vector<17x8xf32>
    %cst_79 = arith.constant 0.353553385 : f32
    %262 = vector.broadcast %cst_79 : f32 to vector<17x8xf32>
    %263 = arith.mulf %262, %261 : vector<17x8xf32>
    %264 = vector.broadcast %252 : vector<17x1xf32> to vector<17x8xf32>
    %265 = arith.subf %242, %264 : vector<17x8xf32>
    %266 = vector.shape_cast %242 : vector<17x8xf32> to vector<1x17x8xf32>
    %cst_80 = arith.constant dense<0xFF800000> : vector<1xf32>
    %267 = vector.multi_reduction <maximumf>, %266, %cst_80 [1, 2] : vector<1x17x8xf32> to vector<1xf32>
    %268 = vector.shape_cast %267 : vector<1xf32> to vector<1x1x1xf32>
    %269 = vector.extract %268[0, 0, 0] : f32 from vector<1x1x1xf32>
    %270 = vector.broadcast %269 : f32 to vector<17x8xf32>
    %271 = arith.subf %265, %270 : vector<17x8xf32>
    %272 = math.exp %271 : vector<17x8xf32>
    %cst_81 = arith.constant 9.99999974E-5 : f32
    %273 = vector.broadcast %cst_81 : f32 to vector<17x8xf32>
    %274 = arith.addf %272, %273 : vector<17x8xf32>
    %cst_82 = arith.constant 0.353553385 : f32
    %275 = vector.broadcast %cst_82 : f32 to vector<17x8xf32>
    %276 = arith.mulf %275, %274 : vector<17x8xf32>
    %cst_83 = arith.constant dense<0.000000e+00> : vector<8xf32>
    %277 = vector.multi_reduction <add>, %276, %cst_83 [0] : vector<17x8xf32> to vector<8xf32>
    %278 = vector.shape_cast %277 : vector<8xf32> to vector<1x8xf32>
    %279 = vector.broadcast %278 : vector<1x8xf32> to vector<17x8xf32>
    %280 = arith.mulf %263, %279 : vector<17x8xf32>
    %cst_84 = arith.constant dense<0.000000e+00> : vector<17xf32>
    %281 = vector.multi_reduction <add>, %280, %cst_84 [1] : vector<17x8xf32> to vector<17xf32>
    %282 = vector.shape_cast %281 : vector<17xf32> to vector<17x1xf32>
    %283 = arith.truncf %276 : vector<17x8xf32> to vector<17x8xbf16>
    %cst_85 = arith.constant dense<0.000000e+00> : vector<8x4xf32>
    %284 = tpu.matmul %283, %240, %cst_85 {dimension_numbers = #tpu.dot_dimension_numbers<[0], [0], [1], [1], [0, 1, 1, 1], [], []>} : vector<17x8xbf16>, vector<17x4xbf16>, vector<8x4xf32> -> vector<8x4xf32>
    %285 = arith.truncf %263 : vector<17x8xf32> to vector<17x8xbf16>
    %286 = arith.truncf %284 : vector<8x4xf32> to vector<8x4xbf16>
    %cst_86 = arith.constant dense<0.000000e+00> : vector<17x4xf32>
    %287 = tpu.matmul %285, %286, %cst_86 {dimension_numbers = #tpu.dot_dimension_numbers<[1], [0], [0], [1], [0, 0, 1, 1], [], []>} : vector<17x8xbf16>, vector<8x4xbf16>, vector<17x4xf32> -> vector<17x4xf32>
    %288 = vector.broadcast %282 : vector<17x1xf32> to vector<17x4xf32>
    %289 = arith.divf %287, %288 : vector<17x4xf32>
    %290 = arith.truncf %289 : vector<17x4xf32> to vector<17x4xbf16>
    %c0_87 = arith.constant 0 : index
    %c0_88 = arith.constant 0 : index
    %c16 = arith.constant 16 : index
    %291 = vector.load %arg4[%c0_87, %c0_88, %c16] : memref<1x17x32xbf16, #tpu.memory_space<vmem>>, vector<1x17x4xbf16>
    %292 = vector.shape_cast %291 : vector<1x17x4xbf16> to vector<17x4xbf16>
    %293 = vector.shape_cast %290 : vector<17x4xbf16> to vector<1x17x4xbf16>
    tpu.vector_store %arg4[%c0_87, %c0_88, %c16], %293 {strides = array<i32>} : memref<1x17x32xbf16, #tpu.memory_space<vmem>>, vector<1x17x4xbf16>,
    %294 = vector.extract_strided_slice %12 {offsets = [0, 20], sizes = [17, 4], strides = [1, 1]} : vector<17x32xf32> to vector<17x4xf32>
    %295 = vector.extract_strided_slice %13 {offsets = [0, 20], sizes = [17, 4], strides = [1, 1]} : vector<17x32xf32> to vector<17x4xf32>
    %296 = vector.extract_strided_slice %8 {offsets = [0, 20], sizes = [17, 4], strides = [1, 1]} : vector<17x32xbf16> to vector<17x4xbf16>
    %297 = vector.extract_strided_slice %10 {offsets = [0, 40], sizes = [17, 8], strides = [1, 1]} : vector<17x64xf32> to vector<17x8xf32>
    %298 = vector.extract_strided_slice %11 {offsets = [0, 40], sizes = [17, 8], strides = [1, 1]} : vector<17x64xf32> to vector<17x8xf32>
    %299 = arith.mulf %294, %294 : vector<17x4xf32>
    %cst_89 = arith.constant dense<0.000000e+00> : vector<17xf32>
    %300 = vector.multi_reduction <add>, %299, %cst_89 [1] : vector<17x4xf32> to vector<17xf32>
    %301 = vector.shape_cast %300 : vector<17xf32> to vector<17x1xf32>
    %cst_90 = arith.constant 2.500000e-01 : f32
    %302 = vector.broadcast %cst_90 : f32 to vector<17x1xf32>
    %303 = arith.mulf %302, %301 : vector<17x1xf32>
    %304 = arith.mulf %295, %295 : vector<17x4xf32>
    %cst_91 = arith.constant dense<0.000000e+00> : vector<17xf32>
    %305 = vector.multi_reduction <add>, %304, %cst_91 [1] : vector<17x4xf32> to vector<17xf32>
    %306 = vector.shape_cast %305 : vector<17xf32> to vector<17x1xf32>
    %cst_92 = arith.constant 2.500000e-01 : f32
    %307 = vector.broadcast %cst_92 : f32 to vector<17x1xf32>
    %308 = arith.mulf %307, %306 : vector<17x1xf32>
    %309 = vector.broadcast %303 : vector<17x1xf32> to vector<17x8xf32>
    %310 = arith.subf %297, %309 : vector<17x8xf32>
    %cst_93 = arith.constant dense<0xFF800000> : vector<17xf32>
    %311 = vector.multi_reduction <maximumf>, %297, %cst_93 [1] : vector<17x8xf32> to vector<17xf32>
    %312 = vector.shape_cast %311 : vector<17xf32> to vector<17x1xf32>
    %313 = vector.broadcast %312 : vector<17x1xf32> to vector<17x8xf32>
    %314 = arith.subf %310, %313 : vector<17x8xf32>
    %315 = math.exp %314 : vector<17x8xf32>
    %cst_94 = arith.constant 9.99999974E-5 : f32
    %316 = vector.broadcast %cst_94 : f32 to vector<17x8xf32>
    %317 = arith.addf %315, %316 : vector<17x8xf32>
    %cst_95 = arith.constant 0.353553385 : f32
    %318 = vector.broadcast %cst_95 : f32 to vector<17x8xf32>
    %319 = arith.mulf %318, %317 : vector<17x8xf32>
    %320 = vector.broadcast %308 : vector<17x1xf32> to vector<17x8xf32>
    %321 = arith.subf %298, %320 : vector<17x8xf32>
    %322 = vector.shape_cast %298 : vector<17x8xf32> to vector<1x17x8xf32>
    %cst_96 = arith.constant dense<0xFF800000> : vector<1xf32>
    %323 = vector.multi_reduction <maximumf>, %322, %cst_96 [1, 2] : vector<1x17x8xf32> to vector<1xf32>
    %324 = vector.shape_cast %323 : vector<1xf32> to vector<1x1x1xf32>
    %325 = vector.extract %324[0, 0, 0] : f32 from vector<1x1x1xf32>
    %326 = vector.broadcast %325 : f32 to vector<17x8xf32>
    %327 = arith.subf %321, %326 : vector<17x8xf32>
    %328 = math.exp %327 : vector<17x8xf32>
    %cst_97 = arith.constant 9.99999974E-5 : f32
    %329 = vector.broadcast %cst_97 : f32 to vector<17x8xf32>
    %330 = arith.addf %328, %329 : vector<17x8xf32>
    %cst_98 = arith.constant 0.353553385 : f32
    %331 = vector.broadcast %cst_98 : f32 to vector<17x8xf32>
    %332 = arith.mulf %331, %330 : vector<17x8xf32>
    %cst_99 = arith.constant dense<0.000000e+00> : vector<8xf32>
    %333 = vector.multi_reduction <add>, %332, %cst_99 [0] : vector<17x8xf32> to vector<8xf32>
    %334 = vector.shape_cast %333 : vector<8xf32> to vector<1x8xf32>
    %335 = vector.broadcast %334 : vector<1x8xf32> to vector<17x8xf32>
    %336 = arith.mulf %319, %335 : vector<17x8xf32>
    %cst_100 = arith.constant dense<0.000000e+00> : vector<17xf32>
    %337 = vector.multi_reduction <add>, %336, %cst_100 [1] : vector<17x8xf32> to vector<17xf32>
    %338 = vector.shape_cast %337 : vector<17xf32> to vector<17x1xf32>
    %339 = arith.truncf %332 : vector<17x8xf32> to vector<17x8xbf16>
    %cst_101 = arith.constant dense<0.000000e+00> : vector<8x4xf32>
    %340 = tpu.matmul %339, %296, %cst_101 {dimension_numbers = #tpu.dot_dimension_numbers<[0], [0], [1], [1], [0, 1, 1, 1], [], []>} : vector<17x8xbf16>, vector<17x4xbf16>, vector<8x4xf32> -> vector<8x4xf32>
    %341 = arith.truncf %319 : vector<17x8xf32> to vector<17x8xbf16>
    %342 = arith.truncf %340 : vector<8x4xf32> to vector<8x4xbf16>
    %cst_102 = arith.constant dense<0.000000e+00> : vector<17x4xf32>
    %343 = tpu.matmul %341, %342, %cst_102 {dimension_numbers = #tpu.dot_dimension_numbers<[1], [0], [0], [1], [0, 0, 1, 1], [], []>} : vector<17x8xbf16>, vector<8x4xbf16>, vector<17x4xf32> -> vector<17x4xf32>
    %344 = vector.broadcast %338 : vector<17x1xf32> to vector<17x4xf32>
    %345 = arith.divf %343, %344 : vector<17x4xf32>
    %346 = arith.truncf %345 : vector<17x4xf32> to vector<17x4xbf16>
    %c0_103 = arith.constant 0 : index
    %c0_104 = arith.constant 0 : index
    %c20 = arith.constant 20 : index
    %347 = vector.load %arg4[%c0_103, %c0_104, %c20] : memref<1x17x32xbf16, #tpu.memory_space<vmem>>, vector<1x17x4xbf16>
    %348 = vector.shape_cast %347 : vector<1x17x4xbf16> to vector<17x4xbf16>
    %349 = vector.shape_cast %346 : vector<17x4xbf16> to vector<1x17x4xbf16>
    tpu.vector_store %arg4[%c0_103, %c0_104, %c20], %349 {strides = array<i32>} : memref<1x17x32xbf16, #tpu.memory_space<vmem>>, vector<1x17x4xbf16>,
    %350 = vector.extract_strided_slice %12 {offsets = [0, 24], sizes = [17, 4], strides = [1, 1]} : vector<17x32xf32> to vector<17x4xf32>
    %351 = vector.extract_strided_slice %13 {offsets = [0, 24], sizes = [17, 4], strides = [1, 1]} : vector<17x32xf32> to vector<17x4xf32>
    %352 = vector.extract_strided_slice %8 {offsets = [0, 24], sizes = [17, 4], strides = [1, 1]} : vector<17x32xbf16> to vector<17x4xbf16>
    %353 = vector.extract_strided_slice %10 {offsets = [0, 48], sizes = [17, 8], strides = [1, 1]} : vector<17x64xf32> to vector<17x8xf32>
    %354 = vector.extract_strided_slice %11 {offsets = [0, 48], sizes = [17, 8], strides = [1, 1]} : vector<17x64xf32> to vector<17x8xf32>
    %355 = arith.mulf %350, %350 : vector<17x4xf32>
    %cst_105 = arith.constant dense<0.000000e+00> : vector<17xf32>
    %356 = vector.multi_reduction <add>, %355, %cst_105 [1] : vector<17x4xf32> to vector<17xf32>
    %357 = vector.shape_cast %356 : vector<17xf32> to vector<17x1xf32>
    %cst_106 = arith.constant 2.500000e-01 : f32
    %358 = vector.broadcast %cst_106 : f32 to vector<17x1xf32>
    %359 = arith.mulf %358, %357 : vector<17x1xf32>
    %360 = arith.mulf %351, %351 : vector<17x4xf32>
    %cst_107 = arith.constant dense<0.000000e+00> : vector<17xf32>
    %361 = vector.multi_reduction <add>, %360, %cst_107 [1] : vector<17x4xf32> to vector<17xf32>
    %362 = vector.shape_cast %361 : vector<17xf32> to vector<17x1xf32>
    %cst_108 = arith.constant 2.500000e-01 : f32
    %363 = vector.broadcast %cst_108 : f32 to vector<17x1xf32>
    %364 = arith.mulf %363, %362 : vector<17x1xf32>
    %365 = vector.broadcast %359 : vector<17x1xf32> to vector<17x8xf32>
    %366 = arith.subf %353, %365 : vector<17x8xf32>
    %cst_109 = arith.constant dense<0xFF800000> : vector<17xf32>
    %367 = vector.multi_reduction <maximumf>, %353, %cst_109 [1] : vector<17x8xf32> to vector<17xf32>
    %368 = vector.shape_cast %367 : vector<17xf32> to vector<17x1xf32>
    %369 = vector.broadcast %368 : vector<17x1xf32> to vector<17x8xf32>
    %370 = arith.subf %366, %369 : vector<17x8xf32>
    %371 = math.exp %370 : vector<17x8xf32>
    %cst_110 = arith.constant 9.99999974E-5 : f32
    %372 = vector.broadcast %cst_110 : f32 to vector<17x8xf32>
    %373 = arith.addf %371, %372 : vector<17x8xf32>
    %cst_111 = arith.constant 0.353553385 : f32
    %374 = vector.broadcast %cst_111 : f32 to vector<17x8xf32>
    %375 = arith.mulf %374, %373 : vector<17x8xf32>
    %376 = vector.broadcast %364 : vector<17x1xf32> to vector<17x8xf32>
    %377 = arith.subf %354, %376 : vector<17x8xf32>
    %378 = vector.shape_cast %354 : vector<17x8xf32> to vector<1x17x8xf32>
    %cst_112 = arith.constant dense<0xFF800000> : vector<1xf32>
    %379 = vector.multi_reduction <maximumf>, %378, %cst_112 [1, 2] : vector<1x17x8xf32> to vector<1xf32>
    %380 = vector.shape_cast %379 : vector<1xf32> to vector<1x1x1xf32>
    %381 = vector.extract %380[0, 0, 0] : f32 from vector<1x1x1xf32>
    %382 = vector.broadcast %381 : f32 to vector<17x8xf32>
    %383 = arith.subf %377, %382 : vector<17x8xf32>
    %384 = math.exp %383 : vector<17x8xf32>
    %cst_113 = arith.constant 9.99999974E-5 : f32
    %385 = vector.broadcast %cst_113 : f32 to vector<17x8xf32>
    %386 = arith.addf %384, %385 : vector<17x8xf32>
    %cst_114 = arith.constant 0.353553385 : f32
    %387 = vector.broadcast %cst_114 : f32 to vector<17x8xf32>
    %388 = arith.mulf %387, %386 : vector<17x8xf32>
    %cst_115 = arith.constant dense<0.000000e+00> : vector<8xf32>
    %389 = vector.multi_reduction <add>, %388, %cst_115 [0] : vector<17x8xf32> to vector<8xf32>
    %390 = vector.shape_cast %389 : vector<8xf32> to vector<1x8xf32>
    %391 = vector.broadcast %390 : vector<1x8xf32> to vector<17x8xf32>
    %392 = arith.mulf %375, %391 : vector<17x8xf32>
    %cst_116 = arith.constant dense<0.000000e+00> : vector<17xf32>
    %393 = vector.multi_reduction <add>, %392, %cst_116 [1] : vector<17x8xf32> to vector<17xf32>
    %394 = vector.shape_cast %393 : vector<17xf32> to vector<17x1xf32>
    %395 = arith.truncf %388 : vector<17x8xf32> to vector<17x8xbf16>
    %cst_117 = arith.constant dense<0.000000e+00> : vector<8x4xf32>
    %396 = tpu.matmul %395, %352, %cst_117 {dimension_numbers = #tpu.dot_dimension_numbers<[0], [0], [1], [1], [0, 1, 1, 1], [], []>} : vector<17x8xbf16>, vector<17x4xbf16>, vector<8x4xf32> -> vector<8x4xf32>
    %397 = arith.truncf %375 : vector<17x8xf32> to vector<17x8xbf16>
    %398 = arith.truncf %396 : vector<8x4xf32> to vector<8x4xbf16>
    %cst_118 = arith.constant dense<0.000000e+00> : vector<17x4xf32>
    %399 = tpu.matmul %397, %398, %cst_118 {dimension_numbers = #tpu.dot_dimension_numbers<[1], [0], [0], [1], [0, 0, 1, 1], [], []>} : vector<17x8xbf16>, vector<8x4xbf16>, vector<17x4xf32> -> vector<17x4xf32>
    %400 = vector.broadcast %394 : vector<17x1xf32> to vector<17x4xf32>
    %401 = arith.divf %399, %400 : vector<17x4xf32>
    %402 = arith.truncf %401 : vector<17x4xf32> to vector<17x4xbf16>
    %c0_119 = arith.constant 0 : index
    %c0_120 = arith.constant 0 : index
    %c24 = arith.constant 24 : index
    %403 = vector.load %arg4[%c0_119, %c0_120, %c24] : memref<1x17x32xbf16, #tpu.memory_space<vmem>>, vector<1x17x4xbf16>
    %404 = vector.shape_cast %403 : vector<1x17x4xbf16> to vector<17x4xbf16>
    %405 = vector.shape_cast %402 : vector<17x4xbf16> to vector<1x17x4xbf16>
    tpu.vector_store %arg4[%c0_119, %c0_120, %c24], %405 {strides = array<i32>} : memref<1x17x32xbf16, #tpu.memory_space<vmem>>, vector<1x17x4xbf16>,
    %406 = vector.extract_strided_slice %12 {offsets = [0, 28], sizes = [17, 4], strides = [1, 1]} : vector<17x32xf32> to vector<17x4xf32>
    %407 = vector.extract_strided_slice %13 {offsets = [0, 28], sizes = [17, 4], strides = [1, 1]} : vector<17x32xf32> to vector<17x4xf32>
    %408 = vector.extract_strided_slice %8 {offsets = [0, 28], sizes = [17, 4], strides = [1, 1]} : vector<17x32xbf16> to vector<17x4xbf16>
    %409 = vector.extract_strided_slice %10 {offsets = [0, 56], sizes = [17, 8], strides = [1, 1]} : vector<17x64xf32> to vector<17x8xf32>
    %410 = vector.extract_strided_slice %11 {offsets = [0, 56], sizes = [17, 8], strides = [1, 1]} : vector<17x64xf32> to vector<17x8xf32>
    %411 = arith.mulf %406, %406 : vector<17x4xf32>
    %cst_121 = arith.constant dense<0.000000e+00> : vector<17xf32>
    %412 = vector.multi_reduction <add>, %411, %cst_121 [1] : vector<17x4xf32> to vector<17xf32>
    %413 = vector.shape_cast %412 : vector<17xf32> to vector<17x1xf32>
    %cst_122 = arith.constant 2.500000e-01 : f32
    %414 = vector.broadcast %cst_122 : f32 to vector<17x1xf32>
    %415 = arith.mulf %414, %413 : vector<17x1xf32>
    %416 = arith.mulf %407, %407 : vector<17x4xf32>
    %cst_123 = arith.constant dense<0.000000e+00> : vector<17xf32>
    %417 = vector.multi_reduction <add>, %416, %cst_123 [1] : vector<17x4xf32> to vector<17xf32>
    %418 = vector.shape_cast %417 : vector<17xf32> to vector<17x1xf32>
    %cst_124 = arith.constant 2.500000e-01 : f32
    %419 = vector.broadcast %cst_124 : f32 to vector<17x1xf32>
    %420 = arith.mulf %419, %418 : vector<17x1xf32>
    %421 = vector.broadcast %415 : vector<17x1xf32> to vector<17x8xf32>
    %422 = arith.subf %409, %421 : vector<17x8xf32>
    %cst_125 = arith.constant dense<0xFF800000> : vector<17xf32>
    %423 = vector.multi_reduction <maximumf>, %409, %cst_125 [1] : vector<17x8xf32> to vector<17xf32>
    %424 = vector.shape_cast %423 : vector<17xf32> to vector<17x1xf32>
    %425 = vector.broadcast %424 : vector<17x1xf32> to vector<17x8xf32>
    %426 = arith.subf %422, %425 : vector<17x8xf32>
    %427 = math.exp %426 : vector<17x8xf32>
    %cst_126 = arith.constant 9.99999974E-5 : f32
    %428 = vector.broadcast %cst_126 : f32 to vector<17x8xf32>
    %429 = arith.addf %427, %428 : vector<17x8xf32>
    %cst_127 = arith.constant 0.353553385 : f32
    %430 = vector.broadcast %cst_127 : f32 to vector<17x8xf32>
    %431 = arith.mulf %430, %429 : vector<17x8xf32>
    %432 = vector.broadcast %420 : vector<17x1xf32> to vector<17x8xf32>
    %433 = arith.subf %410, %432 : vector<17x8xf32>
    %434 = vector.shape_cast %410 : vector<17x8xf32> to vector<1x17x8xf32>
    %cst_128 = arith.constant dense<0xFF800000> : vector<1xf32>
    %435 = vector.multi_reduction <maximumf>, %434, %cst_128 [1, 2] : vector<1x17x8xf32> to vector<1xf32>
    %436 = vector.shape_cast %435 : vector<1xf32> to vector<1x1x1xf32>
    %437 = vector.extract %436[0, 0, 0] : f32 from vector<1x1x1xf32>
    %438 = vector.broadcast %437 : f32 to vector<17x8xf32>
    %439 = arith.subf %433, %438 : vector<17x8xf32>
    %440 = math.exp %439 : vector<17x8xf32>
    %cst_129 = arith.constant 9.99999974E-5 : f32
    %441 = vector.broadcast %cst_129 : f32 to vector<17x8xf32>
    %442 = arith.addf %440, %441 : vector<17x8xf32>
    %cst_130 = arith.constant 0.353553385 : f32
    %443 = vector.broadcast %cst_130 : f32 to vector<17x8xf32>
    %444 = arith.mulf %443, %442 : vector<17x8xf32>
    %cst_131 = arith.constant dense<0.000000e+00> : vector<8xf32>
    %445 = vector.multi_reduction <add>, %444, %cst_131 [0] : vector<17x8xf32> to vector<8xf32>
    %446 = vector.shape_cast %445 : vector<8xf32> to vector<1x8xf32>
    %447 = vector.broadcast %446 : vector<1x8xf32> to vector<17x8xf32>
    %448 = arith.mulf %431, %447 : vector<17x8xf32>
    %cst_132 = arith.constant dense<0.000000e+00> : vector<17xf32>
    %449 = vector.multi_reduction <add>, %448, %cst_132 [1] : vector<17x8xf32> to vector<17xf32>
    %450 = vector.shape_cast %449 : vector<17xf32> to vector<17x1xf32>
    %451 = arith.truncf %444 : vector<17x8xf32> to vector<17x8xbf16>
    %cst_133 = arith.constant dense<0.000000e+00> : vector<8x4xf32>
    %452 = tpu.matmul %451, %408, %cst_133 {dimension_numbers = #tpu.dot_dimension_numbers<[0], [0], [1], [1], [0, 1, 1, 1], [], []>} : vector<17x8xbf16>, vector<17x4xbf16>, vector<8x4xf32> -> vector<8x4xf32>
    %453 = arith.truncf %431 : vector<17x8xf32> to vector<17x8xbf16>
    %454 = arith.truncf %452 : vector<8x4xf32> to vector<8x4xbf16>
    %cst_134 = arith.constant dense<0.000000e+00> : vector<17x4xf32>
    %455 = tpu.matmul %453, %454, %cst_134 {dimension_numbers = #tpu.dot_dimension_numbers<[1], [0], [0], [1], [0, 0, 1, 1], [], []>} : vector<17x8xbf16>, vector<8x4xbf16>, vector<17x4xf32> -> vector<17x4xf32>
    %456 = vector.broadcast %450 : vector<17x1xf32> to vector<17x4xf32>
    %457 = arith.divf %455, %456 : vector<17x4xf32>
    %458 = arith.truncf %457 : vector<17x4xf32> to vector<17x4xbf16>
    %c0_135 = arith.constant 0 : index
    %c0_136 = arith.constant 0 : index
    %c28 = arith.constant 28 : index
    %459 = vector.load %arg4[%c0_135, %c0_136, %c28] : memref<1x17x32xbf16, #tpu.memory_space<vmem>>, vector<1x17x4xbf16>
    %460 = vector.shape_cast %459 : vector<1x17x4xbf16> to vector<17x4xbf16>
    %461 = vector.shape_cast %458 : vector<17x4xbf16> to vector<1x17x4xbf16>
    tpu.vector_store %arg4[%c0_135, %c0_136, %c28], %461 {strides = array<i32>} : memref<1x17x32xbf16, #tpu.memory_space<vmem>>, vector<1x17x4xbf16>,
    return
  }
  func.func @transform_0(%arg0: i32) -> (i32, i32, i32) {
    %c0_i32 = arith.constant 0 : i32
    %c0_i32_0 = arith.constant 0 : i32
    %c0_i32_1 = arith.constant 0 : i32
    return %arg0, %c0_i32, %c0_i32_0 : i32, i32, i32
  }
  func.func @transform_1(%arg0: i32) -> (i32, i32) {
    %c0_i32 = arith.constant 0 : i32
    %c0_i32_0 = arith.constant 0 : i32
    %c0_i32_1 = arith.constant 0 : i32
    return %c0_i32, %c0_i32_0 : i32, i32
  }
  func.func @transform_2(%arg0: i32) -> (i32, i32, i32) {
    %c0_i32 = arith.constant 0 : i32
    %c0_i32_0 = arith.constant 0 : i32
    %c0_i32_1 = arith.constant 0 : i32
    return %arg0, %c0_i32, %c0_i32_0 : i32, i32, i32
  }
  func.func @transform_3(%arg0: i32) -> (i32, i32, i32) {
    %c0_i32 = arith.constant 0 : i32
    %c0_i32_0 = arith.constant 0 : i32
    %c0_i32_1 = arith.constant 0 : i32
    return %arg0, %c0_i32, %c0_i32_0 : i32, i32, i32
  }
}

module attributes {stable_mosaic.version = 11 : i64} {
  func.func @_matmul_bias_res_kernel(%arg0: i32, %arg1: memref<34x128xbf16, #tpu.memory_space<vmem>>, %arg2: memref<128x32xbf16, #tpu.memory_space<vmem>>, %arg3: memref<1x32xf32, #tpu.memory_space<vmem>>, %arg4: memref<34x32xf32, #tpu.memory_space<vmem>>, %arg5: memref<34x32xf32, #tpu.memory_space<vmem>>) attributes {dimension_semantics = [#tpu.dimension_semantics<parallel>], iteration_bounds = array<i64: 1>, scalar_prefetch = 0 : i64, scratch_operands = 0 : i64, tpu.core_type = #tpu.core_type<tc>, window_params = [{transform_indices = @transform_0, window_bounds = array<i64: 34, 128>}, {pipeline_mode = #tpu.pipeline_mode<synchronous>, transform_indices = @transform_1, window_bounds = array<i64: 128, 32>}, {pipeline_mode = #tpu.pipeline_mode<synchronous>, transform_indices = @transform_2, window_bounds = array<i64: 1, 32>}, {transform_indices = @transform_3, window_bounds = array<i64: 34, 32>}, {transform_indices = @transform_4, window_bounds = array<i64: 34, 32>}]} {
    %c0 = arith.constant 0 : index
    %c0_0 = arith.constant 0 : index
    %0 = vector.load %arg1[%c0, %c0_0] : memref<34x128xbf16, #tpu.memory_space<vmem>>, vector<34x128xbf16>
    %c0_1 = arith.constant 0 : index
    %c0_2 = arith.constant 0 : index
    %1 = vector.load %arg2[%c0_1, %c0_2] : memref<128x32xbf16, #tpu.memory_space<vmem>>, vector<128x32xbf16>
    %cst = arith.constant dense<0.000000e+00> : vector<34x32xf32>
    %2 = tpu.matmul %0, %1, %cst {dimension_numbers = #tpu.dot_dimension_numbers<[1], [0], [0], [1], [0, 0, 1, 1], [], []>} : vector<34x128xbf16>, vector<128x32xbf16>, vector<34x32xf32> -> vector<34x32xf32>
    %c0_3 = arith.constant 0 : index
    %c0_4 = arith.constant 0 : index
    %3 = vector.load %arg3[%c0_3, %c0_4] : memref<1x32xf32, #tpu.memory_space<vmem>>, vector<1x32xf32>
    %4 = vector.broadcast %3 : vector<1x32xf32> to vector<34x32xf32>
    %5 = arith.addf %2, %4 : vector<34x32xf32>
    %c0_5 = arith.constant 0 : index
    %c0_6 = arith.constant 0 : index
    %6 = vector.load %arg4[%c0_5, %c0_6] : memref<34x32xf32, #tpu.memory_space<vmem>>, vector<34x32xf32>
    %7 = arith.addf %5, %6 : vector<34x32xf32>
    %c0_7 = arith.constant 0 : index
    %c0_8 = arith.constant 0 : index
    %8 = vector.load %arg5[%c0_7, %c0_8] : memref<34x32xf32, #tpu.memory_space<vmem>>, vector<34x32xf32>
    tpu.vector_store %arg5[%c0_7, %c0_8], %7 {strides = array<i32>} : memref<34x32xf32, #tpu.memory_space<vmem>>, vector<34x32xf32>,
    return
  }
  func.func @transform_0(%arg0: i32) -> (i32, i32) {
    %c0_i32 = arith.constant 0 : i32
    %c0_i32_0 = arith.constant 0 : i32
    return %arg0, %c0_i32 : i32, i32
  }
  func.func @transform_1(%arg0: i32) -> (i32, i32) {
    %c0_i32 = arith.constant 0 : i32
    %c0_i32_0 = arith.constant 0 : i32
    %c0_i32_1 = arith.constant 0 : i32
    return %c0_i32, %c0_i32_0 : i32, i32
  }
  func.func @transform_2(%arg0: i32) -> (i32, i32) {
    %c0_i32 = arith.constant 0 : i32
    %c0_i32_0 = arith.constant 0 : i32
    %c0_i32_1 = arith.constant 0 : i32
    return %c0_i32, %c0_i32_0 : i32, i32
  }
  func.func @transform_3(%arg0: i32) -> (i32, i32) {
    %c0_i32 = arith.constant 0 : i32
    %c0_i32_0 = arith.constant 0 : i32
    return %arg0, %c0_i32 : i32, i32
  }
  func.func @transform_4(%arg0: i32) -> (i32, i32) {
    %c0_i32 = arith.constant 0 : i32
    %c0_i32_0 = arith.constant 0 : i32
    return %arg0, %c0_i32 : i32, i32
  }
}

module attributes {stable_mosaic.version = 11 : i64} {
  func.func @_ln_matmul_kernel(%arg0: i32, %arg1: memref<2x32xf32, #tpu.memory_space<vmem>>, %arg2: memref<1x32xf32, #tpu.memory_space<vmem>>, %arg3: memref<1x32xf32, #tpu.memory_space<vmem>>, %arg4: memref<32x32xbf16, #tpu.memory_space<vmem>>, %arg5: memref<1x32xf32, #tpu.memory_space<vmem>>, %arg6: memref<2x32xf32, #tpu.memory_space<vmem>>) attributes {dimension_semantics = [#tpu.dimension_semantics<parallel>], iteration_bounds = array<i64: 1>, scalar_prefetch = 0 : i64, scratch_operands = 0 : i64, tpu.core_type = #tpu.core_type<tc>, window_params = [{transform_indices = @transform_0, window_bounds = array<i64: 2, 32>}, {pipeline_mode = #tpu.pipeline_mode<synchronous>, transform_indices = @transform_1, window_bounds = array<i64: 1, 32>}, {pipeline_mode = #tpu.pipeline_mode<synchronous>, transform_indices = @transform_2, window_bounds = array<i64: 1, 32>}, {pipeline_mode = #tpu.pipeline_mode<synchronous>, transform_indices = @transform_3, window_bounds = array<i64: 32, 32>}, {pipeline_mode = #tpu.pipeline_mode<synchronous>, transform_indices = @transform_4, window_bounds = array<i64: 1, 32>}, {transform_indices = @transform_5, window_bounds = array<i64: 2, 32>}]} {
    %c0 = arith.constant 0 : index
    %c0_0 = arith.constant 0 : index
    %0 = vector.load %arg1[%c0, %c0_0] : memref<2x32xf32, #tpu.memory_space<vmem>>, vector<2x32xf32>
    %cst = arith.constant dense<0.000000e+00> : vector<2xf32>
    %1 = vector.multi_reduction <add>, %0, %cst [1] : vector<2x32xf32> to vector<2xf32>
    %2 = vector.shape_cast %1 : vector<2xf32> to vector<2x1xf32>
    %cst_1 = arith.constant 3.200000e+01 : f32
    %3 = vector.broadcast %cst_1 : f32 to vector<2x1xf32>
    %4 = arith.divf %2, %3 : vector<2x1xf32>
    %5 = vector.broadcast %4 : vector<2x1xf32> to vector<2x32xf32>
    %6 = arith.subf %0, %5 : vector<2x32xf32>
    %7 = arith.mulf %6, %6 : vector<2x32xf32>
    %cst_2 = arith.constant dense<0.000000e+00> : vector<2xf32>
    %8 = vector.multi_reduction <add>, %7, %cst_2 [1] : vector<2x32xf32> to vector<2xf32>
    %9 = vector.shape_cast %8 : vector<2xf32> to vector<2x1xf32>
    %cst_3 = arith.constant 3.200000e+01 : f32
    %10 = vector.broadcast %cst_3 : f32 to vector<2x1xf32>
    %11 = arith.divf %9, %10 : vector<2x1xf32>
    %cst_4 = arith.constant 9.99999974E-6 : f32
    %12 = vector.broadcast %cst_4 : f32 to vector<2x1xf32>
    %13 = arith.addf %11, %12 : vector<2x1xf32>
    %14 = math.rsqrt %13 : vector<2x1xf32>
    %15 = vector.broadcast %14 : vector<2x1xf32> to vector<2x32xf32>
    %16 = arith.mulf %6, %15 : vector<2x32xf32>
    %c0_5 = arith.constant 0 : index
    %c0_6 = arith.constant 0 : index
    %17 = vector.load %arg2[%c0_5, %c0_6] : memref<1x32xf32, #tpu.memory_space<vmem>>, vector<1x32xf32>
    %18 = vector.broadcast %17 : vector<1x32xf32> to vector<2x32xf32>
    %19 = arith.mulf %16, %18 : vector<2x32xf32>
    %c0_7 = arith.constant 0 : index
    %c0_8 = arith.constant 0 : index
    %20 = vector.load %arg3[%c0_7, %c0_8] : memref<1x32xf32, #tpu.memory_space<vmem>>, vector<1x32xf32>
    %21 = vector.broadcast %20 : vector<1x32xf32> to vector<2x32xf32>
    %22 = arith.addf %19, %21 : vector<2x32xf32>
    %23 = arith.truncf %22 : vector<2x32xf32> to vector<2x32xbf16>
    %c0_9 = arith.constant 0 : index
    %c0_10 = arith.constant 0 : index
    %24 = vector.load %arg4[%c0_9, %c0_10] : memref<32x32xbf16, #tpu.memory_space<vmem>>, vector<32x32xbf16>
    %cst_11 = arith.constant dense<0.000000e+00> : vector<2x32xf32>
    %25 = tpu.matmul %23, %24, %cst_11 {dimension_numbers = #tpu.dot_dimension_numbers<[1], [0], [0], [1], [0, 0, 1, 1], [], []>} : vector<2x32xbf16>, vector<32x32xbf16>, vector<2x32xf32> -> vector<2x32xf32>
    %c0_12 = arith.constant 0 : index
    %c0_13 = arith.constant 0 : index
    %26 = vector.load %arg5[%c0_12, %c0_13] : memref<1x32xf32, #tpu.memory_space<vmem>>, vector<1x32xf32>
    %27 = vector.broadcast %26 : vector<1x32xf32> to vector<2x32xf32>
    %28 = arith.addf %25, %27 : vector<2x32xf32>
    %29 = arith.mulf %28, %28 : vector<2x32xf32>
    %30 = arith.mulf %28, %29 : vector<2x32xf32>
    %cst_14 = arith.constant 4.471500e-02 : f32
    %31 = vector.broadcast %cst_14 : f32 to vector<2x32xf32>
    %32 = arith.mulf %31, %30 : vector<2x32xf32>
    %33 = arith.addf %28, %32 : vector<2x32xf32>
    %cst_15 = arith.constant 0.797884583 : f32
    %34 = vector.broadcast %cst_15 : f32 to vector<2x32xf32>
    %35 = arith.mulf %34, %33 : vector<2x32xf32>
    %36 = math.tanh %35 : vector<2x32xf32>
    %cst_16 = arith.constant 1.000000e+00 : f32
    %37 = vector.broadcast %cst_16 : f32 to vector<2x32xf32>
    %38 = arith.addf %37, %36 : vector<2x32xf32>
    %cst_17 = arith.constant 5.000000e-01 : f32
    %39 = vector.broadcast %cst_17 : f32 to vector<2x32xf32>
    %40 = arith.mulf %39, %38 : vector<2x32xf32>
    %41 = arith.mulf %28, %40 : vector<2x32xf32>
    %c0_18 = arith.constant 0 : index
    %c0_19 = arith.constant 0 : index
    %42 = vector.load %arg6[%c0_18, %c0_19] : memref<2x32xf32, #tpu.memory_space<vmem>>, vector<2x32xf32>
    tpu.vector_store %arg6[%c0_18, %c0_19], %41 {strides = array<i32>} : memref<2x32xf32, #tpu.memory_space<vmem>>, vector<2x32xf32>,
    return
  }
  func.func @transform_0(%arg0: i32) -> (i32, i32) {
    %c0_i32 = arith.constant 0 : i32
    %c0_i32_0 = arith.constant 0 : i32
    return %arg0, %c0_i32 : i32, i32
  }
  func.func @transform_1(%arg0: i32) -> (i32, i32) {
    %c0_i32 = arith.constant 0 : i32
    %c0_i32_0 = arith.constant 0 : i32
    %c0_i32_1 = arith.constant 0 : i32
    return %c0_i32, %c0_i32_0 : i32, i32
  }
  func.func @transform_2(%arg0: i32) -> (i32, i32) {
    %c0_i32 = arith.constant 0 : i32
    %c0_i32_0 = arith.constant 0 : i32
    %c0_i32_1 = arith.constant 0 : i32
    return %c0_i32, %c0_i32_0 : i32, i32
  }
  func.func @transform_3(%arg0: i32) -> (i32, i32) {
    %c0_i32 = arith.constant 0 : i32
    %c0_i32_0 = arith.constant 0 : i32
    %c0_i32_1 = arith.constant 0 : i32
    return %c0_i32, %c0_i32_0 : i32, i32
  }
  func.func @transform_4(%arg0: i32) -> (i32, i32) {
    %c0_i32 = arith.constant 0 : i32
    %c0_i32_0 = arith.constant 0 : i32
    %c0_i32_1 = arith.constant 0 : i32
    return %c0_i32, %c0_i32_0 : i32, i32
  }
  func.func @transform_5(%arg0: i32) -> (i32, i32) {
    %c0_i32 = arith.constant 0 : i32
    %c0_i32_0 = arith.constant 0 : i32
    return %arg0, %c0_i32 : i32, i32
  }
}

</mosaic_0001>

<bundles_post_ra>
// kernel: sub.5
= control target key start
LH: loop header
LB: loop body
LE: loop exit
PB: predicated region body
PF: predicated region fallthrough
CT: control target
= control target key end

     0   :  { %s34_s0 = inlined_call_operand.vmem [shape: f32[2], index: 0, kind: input, shape index: {}]   ;;  %s35_s1 = inlined_call_operand.vmem [shape: f32[2], index: 1, kind: input, shape index: {}]   ;;  %s36_s2 = inlined_call_operand.vmem [shape: f32[2], index: 2, kind: output, shape index: {}]  }
   0x1   :  { %v3_v0 = vld [vmem:[%s34_s0] sm:$0x1] }
   0x2   :  { %v4_v1 = vld [vmem:[%s35_s1] sm:$0x1] }
   0x3   :  { %v7_v2 = vsub.f32 %v3_v0, %v4_v1 }
   0x5   :  { %9 = vst [vmem:[%s36_s2] sm:$0x1] %v7_v2 }

// kernel: cnvcaller_forward.13
= control target key start
LH: loop header
LB: loop body
LE: loop exit
PB: predicated region body
PF: predicated region fallthrough
CT: control target
= control target key end

     0   :  { %v186_v0 = vmov 0.0   ;;  %vm187_vm0 = vmmov 0   ;;  %vm59_vm1 = vcmask 261120   ;;  %vm139_vm2 = vcmask 254976   ;;  %s271_s1 = inlined_call_operand.vmem [shape: bf16[32,32], index: 1, kind: input, shape index: {}]   ;;  %s272_s0 = inlined_call_operand.vmem [shape: bf16[34,32], index: 0, kind: input, shape index: {}]   ;;  %s273_s2 = inlined_call_operand.vmem [shape: f32[1,32], index: 2, kind: input, shape index: {}]   ;;  %s274_s3 = inlined_call_operand.vmem [shape: f32[34,32], index: 3, kind: input, shape index: {}]   ;;  %s275_s4 = inlined_call_operand.vmem [shape: f32[34,32], index: 4, kind: output, shape index: {}]  }
   0x1   :  { %175 = vmatprep.subr.bf16.mxu1 %v186_v0  ;;  %v181_v1 = vld [vmem:[%s271_s1] sm:$0xff]   ;;  %159 = vmatprep.subr.bf16.mxu0 %v186_v0  ;;  %v182_v2 = vld [vmem:[%s271_s1 + $0x8] sm:$0xff]   ;;  %v185_v5 = vld [vmem:[%s272_s0 + $0x10] ss:$0 sps:$4 sm:$0x11]  }
   0x2   :  { %167 = vmatprep.mubr.msk.bf16.mxu1 %vm187_vm0, %v186_v0  ;;  %163 = vmatprep.mubr.msk.bf16.mxu0 %vm187_vm0, %v186_v0  ;;  %v183_v3 = vld [vmem:[%s272_s0 + $0x8] sm:$0xff]   ;;  %v184_v4 = vld [vmem:[%s272_s0] sm:$0xff]   ;;  %v127_v8 = vld [vmem:[%s274_s3 + $0x10] sm:$0xff] }
   0x3   :  { %177 = vmatpush3.bf16.msra.mxu1 %v181_v1  ;;  %160 = vmatpush3.bf16.msra.mxu0 %v181_v1  ;;  %v145_v6 = vld [vmem:[%s273_s2] ss:$0 sm:$0xff]  ;;  %v128_v16 = vld [vmem:[%s274_s3 + $0x18] sm:$0xff]  ;;  %v126_v18 = vld [vmem:[%s274_s3 + $0x8] sm:$0xff] }
   0x4   :  { %176 = vmatprep.subr.bf16.mxu1 %v186_v0  ;;  %161 = vmatprep.subr.bf16.mxu0 %v186_v0  ;;  %v125_v10 = vld [vmem:[%s274_s3] sm:$0xff] }
   0x5   :  { %v129_v28 = vld [vmem:[%s274_s3 + $0x20] sm:$0x3] }
   0x7   :  { %178 = vmatpush3.bf16.msra.mxu1 %v182_v2  ;;  %162 = vmatpush3.bf16.msra.mxu0 %v182_v2 }
   0xa   :  { %168 = vmatmul.mubr.msk.bf16.vlgmr.msra.gmra.mrb[0].mxu1 %vm59_vm1, %v183_v3  ;;  %164 = vmatmul.mubr.msk.bf16.vlgmr.msra.gmra.mrb[0].mxu0 %vm59_vm1, %v184_v4 }
   0xb   :  { %171 = vmatprep.mubr.msk.bf16.mxu1 %vm187_vm0, %v186_v0 }
  0x12   :  { %172 = vmatmul.mubr.msk.bf16.gmra.mrb[4].mxu1 %vm59_vm1, %v185_v5 }
  0xdd   :  { %v111_v7 = vpop.f32.mrb[0].mxu1  ;;  %v103_v9 = vpop.f32.mrb[0].mxu0 }
  0xde   :  { %v112_v11 = vadd.f32 %v145_v6, %v111_v7  ;;  %v169_v12 = vpop.f32.mrb[1].mxu1  ;;  %v104_v13 = vadd.f32 %v145_v6, %v103_v9  ;;  %v165_v14 = vpop.f32.mrb[1].mxu0 }
  0xdf   :  { %v114_v15 = vpop.f32.mrb[2].mxu1  ;;  %v106_v17 = vpop.f32.mrb[2].mxu0 }
  0xe0   :  { %v132_v19 = vadd.f32 %v127_v8, %v112_v11  ;;  %v115_v20 = vadd.f32 %v145_v6, %v114_v15  ;;  %v130_v21 = vadd.f32 %v125_v10, %v104_v13  ;;  %v170_v22 = vpop.f32.mrb[3].mxu1  ;;  %v107_v23 = vadd.f32 %v145_v6, %v106_v17  ;;  %v166_v24 = vpop.f32.mrb[3].mxu0 }
  0xe2   :  { %137 = vst.msk [vmem:[%s275_s4 + $0x10] sm:$0xff] %vm59_vm1, %v132_v19  ;;  %v133_v25 = vadd.f32 %v128_v16, %v115_v20  ;;  %135 = vst.msk [vmem:[%s275_s4] sm:$0xff] %vm59_vm1, %v130_v21  ;;  %v131_v26 = vadd.f32 %v126_v18, %v107_v23 }
  0xe4   :  { %138 = vst.msk [vmem:[%s275_s4 + $0x18] sm:$0xff] %vm59_vm1, %v133_v25  ;;  %136 = vst.msk [vmem:[%s275_s4 + $0x8] sm:$0xff] %vm59_vm1, %v131_v26 }
  0xe5   :  { %v119_v27 = vpop.f32.mrb[4].mxu1 }
  0xe6   :  { %v120_v29 = vadd.f32 %v145_v6, %v119_v27  ;;  %v173_v30 = vpop.f32.mrb[5].mxu1 }
  0xe7   :  { %v122_v31 = vpop.f32.mrb[6].mxu1 }
  0xe8   :  { %v134_v32 = vadd.f32 %v129_v28, %v120_v29  ;;  %v174_v33 = vpop.f32.mrb[7].mxu1 }
  0xea   :  { %140 = vst.msk [vmem:[%s275_s4 + $0x20] sm:$0x3] %vm139_vm2, %v134_v32 }

// kernel: cnvcaller_forward.11
= control target key start
LH: loop header
LB: loop body
LE: loop exit
PB: predicated region body
PF: predicated region fallthrough
CT: control target
= control target key end

     0   :  { %vm26_vm0 = vcmask 261120   ;;  %vm39_vm1 = vcmask 254976   ;;  %v298_v36 = vmov 0.0   ;;  %vm299_vm2 = vmmov 0   ;;  %s410_s0 = inlined_call_operand.vmem [shape: f32[34,32], index: 0, kind: input, shape index: {}]   ;;  %s411_s3 = inlined_call_operand.vmem [shape: bf16[32,96], index: 3, kind: input, shape index: {}]   ;;  %s412_s1 = inlined_call_operand.vmem [shape: f32[1,32], index: 1, kind: input, shape index: {}]   ;;  %s413_s2 = inlined_call_operand.vmem [shape: f32[1,32], index: 2, kind: input, shape index: {}]   ;;  %s414_s4 = inlined_call_operand.vmem [shape: f32[1,96], index: 4, kind: input, shape index: {}]   ;;  %s415_s5 = inlined_call_operand.vmem [shape: bf16[34,96], index: 5, kind: output, shape index: {}]  }
   0x1   :  { %v23_v0 = vld [vmem:[%s410_s0 + $0x10] sm:$0xff]  ;;  %v24_v1 = vld [vmem:[%s410_s0 + $0x18] sm:$0xff]  ;;  %v21_v2 = vld [vmem:[%s410_s0] sm:$0xff]  ;;  %280 = vmatprep.subr.bf16.mxu1 %v298_v36  ;;  %264 = vmatprep.subr.bf16.mxu0 %v298_v36  ;;  %vm230_vm3 = vcmask 781312   ;;  %vm235_vm4 = vcmask 778240  }
   0x2   :  { %v33_v3 = vsel %vm26_vm0, %v23_v0, 0.0  ;;  %v27_v4 = vsel %vm26_vm0, %v21_v2, 0.0  ;;  %v22_v5 = vld [vmem:[%s410_s0 + $0x8] sm:$0xff]  ;;  %v36_v6 = vsel %vm26_vm0, %v24_v1, 0.0  ;;  %v25_v8 = vld [vmem:[%s410_s0 + $0x20] sm:$0x3]  ;;  %272 = vmatprep.mubr.msk.bf16.mxu1 %vm299_vm2, %v298_v36  ;;  %268 = vmatprep.mubr.msk.bf16.mxu0 %vm299_vm2, %v298_v36 }
   0x3   :  { %34 = vadd.xlane.f32.xlu0 %v33_v3  ;;  %28 = vadd.xlane.f32.xlu1 %v27_v4  ;;  %v30_v7 = vsel %vm26_vm0, %v22_v5, 0.0  ;;  %v40_v9 = vsel %vm39_vm1, %v25_v8, 0.0  ;;  %v286_v35 = vld [vmem:[%s411_s3] sm:$0xff]   ;;  %v287_v37 = vld [vmem:[%s411_s3 + $0x8] sm:$0xff]  }
   0x4   :  { %282 = vmatpush3.bf16.msra.mxu1 %v286_v35  ;;  %265 = vmatpush3.bf16.msra.mxu0 %v286_v35  ;;  %v241_v55 = vld [vmem:[%s412_s1] ss:$0 sm:$0xff] }
   0x5   :  { %281 = vmatprep.subr.bf16.mxu1 %v298_v36  ;;  %266 = vmatprep.subr.bf16.mxu0 %v298_v36  ;;  %v242_v61 = vld [vmem:[%s413_s2] ss:$0 sm:$0xff] }
   0x7   :  { %37 = vadd.xlane.f32.xlu0 %v36_v6  ;;  %31 = vadd.xlane.f32.xlu1 %v30_v7 }
   0x8   :  { %283 = vmatpush3.bf16.msra.mxu1 %v287_v37  ;;  %267 = vmatpush3.bf16.msra.mxu0 %v287_v37 }
   0xb   :  { %41 = vadd.xlane.f32.xlu0 %v40_v9 }
  0x90   :  { %v35_v10 = vpop.xlane.xlu0 %34  ;;  %v29_v11 = vpop.xlane.xlu1 %28 }
  0x91   :  { %v46_v12 = vmul.f32 0.03125, %v35_v10  ;;  %v44_v13 = vmul.f32 0.03125, %v29_v11 }
  0x93   :  { %v350_v14 = vsub.f32 %v23_v0, %v46_v12  ;;  %v352_v15 = vsub.f32 %v21_v2, %v44_v13 }
  0x94   :  { %v38_v16 = vpop.xlane.xlu0 %37  ;;  %v32_v17 = vpop.xlane.xlu1 %31 }
  0x95   :  { %v47_v18 = vmul.f32 0.03125, %v38_v16  ;;  %v56_v19 = vmul.f32 %v350_v14, %v350_v14  ;;  %v45_v20 = vmul.f32 0.03125, %v32_v17  ;;  %v54_v21 = vmul.f32 %v352_v15, %v352_v15 }
  0x97   :  { %v52_v22 = vsub.f32 %v24_v1, %v47_v18  ;;  %v65_v23 = vsel %vm26_vm0, %v56_v19, 0.0  ;;  %v359_v24 = vsub.f32 %v22_v5, %v45_v20  ;;  %v59_v28 = vsel %vm26_vm0, %v54_v21, 0.0 }
  0x98   :  { %v42_v25 = vpop.xlane.xlu0 %41  ;;  %66 = vadd.xlane.f32.xlu1 %v65_v23 }
  0x99   :  { %v48_v26 = vmul.f32 0.03125, %v42_v25  ;;  %v57_v27 = vmul.f32 %v52_v22, %v52_v22  ;;  %v55_v29 = vmul.f32 %v359_v24, %v359_v24 }
  0x9b   :  { %v53_v30 = vsub.f32 %v25_v8, %v48_v26  ;;  %v68_v31 = vsel %vm26_vm0, %v57_v27, 0.0  ;;  %v62_v33 = vsel %vm26_vm0, %v55_v29, 0.0 }
  0x9c   :  { %69 = vadd.xlane.f32.xlu0 %v68_v31  ;;  %60 = vadd.xlane.f32.xlu1 %v59_v28 }
  0x9d   :  { %v58_v32 = vmul.f32 %v53_v30, %v53_v30 }
  0x9f   :  { %v71_v34 = vsel %vm39_vm1, %v58_v32, 0.0 }
  0xa0   :  { %72 = vadd.xlane.f32.xlu1 %v71_v34  ;;  %63 = vadd.xlane.f32.xlu0 %v62_v33 }
 0x125   :  { %v67_v38 = vpop.xlane.xlu1 %66 }
 0x126   :  { %v76_v39 = vmul.f32 0.03125, %v67_v38 }
 0x128   :  { %v81_v40 = vadd.f32 1e-05, %v76_v39 }
 0x129   :  { %v70_v41 = vpop.xlane.xlu0 %69  ;;  %v61_v42 = vpop.xlane.xlu1 %60 }
 0x12a   :  { %288 = vrsqrt.f32 %v81_v40  ;;  %v77_v43 = vmul.f32 0.03125, %v70_v41  ;;  %v74_v44 = vmul.f32 0.03125, %v61_v42 }
 0x12c   :  { %v82_v45 = vadd.f32 1e-05, %v77_v43  ;;  %v79_v46 = vadd.f32 1e-05, %v74_v44 }
 0x12d   :  { %v64_v47 = vpop.xlane.xlu0 %63  ;;  %v73_v48 = vpop.xlane.xlu1 %72 }
 0x12e   :  { %290 = vrsqrt.f32 %v82_v45  ;;  %v75_v49 = vmul.f32 0.03125, %v64_v47  ;;  %v78_v50 = vmul.f32 0.03125, %v73_v48 }
 0x12f   :  { %292 = vrsqrt.f32 %v79_v46 }
 0x130   :  { %v80_v51 = vadd.f32 1e-05, %v75_v49  ;;  %v83_v52 = vadd.f32 1e-05, %v78_v50 }
 0x132   :  { %294 = vrsqrt.f32 %v80_v51 }
 0x133   :  { %296 = vrsqrt.f32 %v83_v52 }
 0x134   :  { %v289_v53 = vpop.eup %288 }
 0x135   :  { %v91_v54 = vmul.f32 %v289_v53, %v350_v14  ;;  %v243_v14 = vld [vmem:[%s414_s4] ss:$0 sm:$0xff] }
 0x137   :  { %v103_v59 = vmul.f32 %v241_v55, %v91_v54 }
 0x138   :  { %v291_v56 = vpop.eup %290 }
 0x139   :  { %v293_v57 = vpop.eup %292  ;;  %v92_v58 = vmul.f32 %v291_v56, %v52_v22  ;;  %v115_v2 = vadd.f32 %v242_v61, %v103_v59 }
 0x13a   :  { %v89_v60 = vmul.f32 %v293_v57, %v352_v15 }
 0x13b   :  { %v104_v62 = vmul.f32 %v241_v55, %v92_v58 }
 0x13c   :  { %v295_v63 = vpop.eup %294  ;;  %v101_v4 = vmul.f32 %v241_v55, %v89_v60 }
 0x13d   :  { %v297_v0 = vpop.eup %296  ;;  %v90_v1 = vmul.f32 %v295_v63, %v359_v24  ;;  %v116_v3 = vadd.f32 %v242_v61, %v104_v62 }
 0x13e   :  { %v93_v5 = vmul.f32 %v297_v0, %v53_v30  ;;  %v113_v9 = vadd.f32 %v242_v61, %v101_v4 }
 0x13f   :  { %v119_v6 = vpack.c.bf16 %v116_v3, %v115_v2  ;;  %v102_v7 = vmul.f32 %v241_v55, %v90_v1 }
 0x140   :  { %v105_v8 = vmul.f32 %v241_v55, %v93_v5 }
 0x141   :  { %273 = vmatmul.mubr.msk.bf16.vlgmr.msra.gmra.mrb[0].mxu1 %vm26_vm0, %v119_v6  ;;  %v114_v10 = vadd.f32 %v242_v61, %v102_v7 }
 0x142   :  { %276 = vmatprep.mubr.msk.bf16.mxu1 %vm299_vm2, %v298_v36  ;;  %v117_v12 = vadd.f32 %v242_v61, %v105_v8 }
 0x143   :  { %v118_v11 = vpack.c.bf16 %v114_v10, %v113_v9 }
 0x144   :  { %v120_v13 = vpack.c.bf16 %v117_v12, %v117_v12 }
 0x145   :  { %269 = vmatmul.mubr.msk.bf16.vlgmr.msra.gmra.mrb[0].mxu0 %vm26_vm0, %v118_v11 }
 0x149   :  { %277 = vmatmul.mubr.msk.bf16.gmra.mrb[4].mxu1 %vm26_vm0, %v120_v13 }
 0x214   :  { %v195_v15 = vpop.f32.mrb[0].mxu1 }
 0x215   :  { %v196_v16 = vadd.f32 %v243_v14, %v195_v15  ;;  %v274_v17 = vpop.f32.mrb[1].mxu1 }
 0x216   :  { %v198_v18 = vpop.f32.mrb[2].mxu1 }
 0x217   :  { %v256_v19 = vpack.c.bf16 %v196_v16, %v196_v16  ;;  %v199_v20 = vadd.f32 %v243_v14, %v198_v18  ;;  %v275_v21 = vpop.f32.mrb[3].mxu1 }
 0x218   :  { %v187_v22 = vpop.f32.mrb[0].mxu0 }
 0x219   :  { %233 = vst.msk [vmem:[%s415_s5 + $0x8] sm:$0xf] %vm230_vm3, %v256_v19  ;;  %v257_v23 = vpack.c.bf16 %v199_v20, %v199_v20  ;;  %v188_v24 = vadd.f32 %v243_v14, %v187_v22  ;;  %v270_v25 = vpop.f32.mrb[1].mxu0 }
 0x21a   :  { %v190_v26 = vpop.f32.mrb[2].mxu0 }
 0x21b   :  { %234 = vst.msk [vmem:[%s415_s5 + $0xc] sm:$0xf] %vm230_vm3, %v257_v23  ;;  %v254_v27 = vpack.c.bf16 %v188_v24, %v188_v24  ;;  %v191_v28 = vadd.f32 %v243_v14, %v190_v26  ;;  %v271_v29 = vpop.f32.mrb[3].mxu0 }
 0x21c   :  { %v203_v30 = vpop.f32.mrb[4].mxu1 }
 0x21d   :  { %231 = vst.msk [vmem:[%s415_s5] sm:$0xf] %vm230_vm3, %v254_v27  ;;  %v255_v31 = vpack.c.bf16 %v191_v28, %v191_v28  ;;  %v204_v32 = vadd.f32 %v243_v14, %v203_v30  ;;  %v278_v33 = vpop.f32.mrb[5].mxu1 }
 0x21e   :  { %v206_v34 = vpop.f32.mrb[6].mxu1 }
 0x21f   :  { %232 = vst.msk [vmem:[%s415_s5 + $0x4] sm:$0xf] %vm230_vm3, %v255_v31  ;;  %v258_v35 = vpack.c.bf16 %v204_v32, %v204_v32  ;;  %v279_v36 = vpop.f32.mrb[7].mxu1 }
 0x221   :  { %236 = vst.msk [vmem:[%s415_s5 + $0x10] sm:$0x1] %vm235_vm4, %v258_v35 }

// kernel: cnvcaller_forward.14
= control target key start
LH: loop header
LB: loop body
LE: loop exit
PB: predicated region body
PF: predicated region fallthrough
CT: control target
= control target key end

     0   :  { %vm26_vm0 = vcmask 261120   ;;  %vm39_vm1 = vcmask 254976   ;;  %v362_v36 = vmov 0.0   ;;  %vm363_vm2 = vmmov 0   ;;  %s464_s0 = inlined_call_operand.vmem [shape: f32[34,32], index: 0, kind: input, shape index: {}]   ;;  %s465_s3 = inlined_call_operand.vmem [shape: bf16[32,128], index: 3, kind: input, shape index: {}]   ;;  %s466_s1 = inlined_call_operand.vmem [shape: f32[1,32], index: 1, kind: input, shape index: {}]   ;;  %s467_s2 = inlined_call_operand.vmem [shape: f32[1,32], index: 2, kind: input, shape index: {}]   ;;  %s468_s4 = inlined_call_operand.vmem [shape: f32[1,128], index: 4, kind: input, shape index: {}]   ;;  %s469_s5 = inlined_call_operand.vmem [shape: bf16[34,128], index: 5, kind: output, shape index: {}]  }
   0x1   :  { %v23_v0 = vld [vmem:[%s464_s0 + $0x10] sm:$0xff]  ;;  %v24_v1 = vld [vmem:[%s464_s0 + $0x18] sm:$0xff]  ;;  %v21_v2 = vld [vmem:[%s464_s0] sm:$0xff]  ;;  %334 = vmatprep.subr.bf16.mxu1 %v362_v36  ;;  %318 = vmatprep.subr.bf16.mxu0 %v362_v36 }
   0x2   :  { %v33_v3 = vsel %vm26_vm0, %v23_v0, 0.0  ;;  %v27_v4 = vsel %vm26_vm0, %v21_v2, 0.0  ;;  %v22_v5 = vld [vmem:[%s464_s0 + $0x8] sm:$0xff]  ;;  %v36_v6 = vsel %vm26_vm0, %v24_v1, 0.0  ;;  %v25_v8 = vld [vmem:[%s464_s0 + $0x20] sm:$0x3]  ;;  %326 = vmatprep.mubr.msk.bf16.mxu1 %vm363_vm2, %v362_v36  ;;  %322 = vmatprep.mubr.msk.bf16.mxu0 %vm363_vm2, %v362_v36 }
   0x3   :  { %34 = vadd.xlane.f32.xlu0 %v33_v3  ;;  %28 = vadd.xlane.f32.xlu1 %v27_v4  ;;  %v30_v7 = vsel %vm26_vm0, %v22_v5, 0.0  ;;  %v40_v9 = vsel %vm39_vm1, %v25_v8, 0.0  ;;  %v340_v35 = vld [vmem:[%s465_s3] sm:$0xff]   ;;  %v341_v37 = vld [vmem:[%s465_s3 + $0x8] sm:$0xff]  }
   0x4   :  { %336 = vmatpush3.bf16.msra.mxu1 %v340_v35  ;;  %319 = vmatpush3.bf16.msra.mxu0 %v340_v35  ;;  %v284_v55 = vld [vmem:[%s466_s1] ss:$0 sm:$0xff] }
   0x5   :  { %335 = vmatprep.subr.bf16.mxu1 %v362_v36  ;;  %320 = vmatprep.subr.bf16.mxu0 %v362_v36  ;;  %v285_v61 = vld [vmem:[%s467_s2] ss:$0 sm:$0xff] }
   0x7   :  { %37 = vadd.xlane.f32.xlu0 %v36_v6  ;;  %31 = vadd.xlane.f32.xlu1 %v30_v7 }
   0x8   :  { %337 = vmatpush3.bf16.msra.mxu1 %v341_v37  ;;  %321 = vmatpush3.bf16.msra.mxu0 %v341_v37 }
   0xb   :  { %41 = vadd.xlane.f32.xlu0 %v40_v9 }
  0x90   :  { %v35_v10 = vpop.xlane.xlu0 %34  ;;  %v29_v11 = vpop.xlane.xlu1 %28 }
  0x91   :  { %v46_v12 = vmul.f32 0.03125, %v35_v10  ;;  %v44_v13 = vmul.f32 0.03125, %v29_v11 }
  0x93   :  { %v414_v14 = vsub.f32 %v23_v0, %v46_v12  ;;  %v416_v15 = vsub.f32 %v21_v2, %v44_v13 }
  0x94   :  { %v38_v16 = vpop.xlane.xlu0 %37  ;;  %v32_v17 = vpop.xlane.xlu1 %31 }
  0x95   :  { %v47_v18 = vmul.f32 0.03125, %v38_v16  ;;  %v56_v19 = vmul.f32 %v414_v14, %v414_v14  ;;  %v45_v20 = vmul.f32 0.03125, %v32_v17  ;;  %v54_v21 = vmul.f32 %v416_v15, %v416_v15 }
  0x97   :  { %v52_v22 = vsub.f32 %v24_v1, %v47_v18  ;;  %v65_v23 = vsel %vm26_vm0, %v56_v19, 0.0  ;;  %v423_v24 = vsub.f32 %v22_v5, %v45_v20  ;;  %v59_v28 = vsel %vm26_vm0, %v54_v21, 0.0 }
  0x98   :  { %v42_v25 = vpop.xlane.xlu0 %41  ;;  %66 = vadd.xlane.f32.xlu1 %v65_v23 }
  0x99   :  { %v48_v26 = vmul.f32 0.03125, %v42_v25  ;;  %v57_v27 = vmul.f32 %v52_v22, %v52_v22  ;;  %v55_v29 = vmul.f32 %v423_v24, %v423_v24 }
  0x9b   :  { %v53_v30 = vsub.f32 %v25_v8, %v48_v26  ;;  %v68_v31 = vsel %vm26_vm0, %v57_v27, 0.0  ;;  %v62_v33 = vsel %vm26_vm0, %v55_v29, 0.0 }
  0x9c   :  { %69 = vadd.xlane.f32.xlu0 %v68_v31  ;;  %60 = vadd.xlane.f32.xlu1 %v59_v28 }
  0x9d   :  { %v58_v32 = vmul.f32 %v53_v30, %v53_v30 }
  0x9f   :  { %v71_v34 = vsel %vm39_vm1, %v58_v32, 0.0 }
  0xa0   :  { %72 = vadd.xlane.f32.xlu1 %v71_v34  ;;  %63 = vadd.xlane.f32.xlu0 %v62_v33 }
 0x125   :  { %v67_v38 = vpop.xlane.xlu1 %66 }
 0x126   :  { %v76_v39 = vmul.f32 0.03125, %v67_v38 }
 0x128   :  { %v81_v40 = vadd.f32 1e-05, %v76_v39 }
 0x129   :  { %v70_v41 = vpop.xlane.xlu0 %69  ;;  %v61_v42 = vpop.xlane.xlu1 %60 }
 0x12a   :  { %342 = vrsqrt.f32 %v81_v40  ;;  %v77_v43 = vmul.f32 0.03125, %v70_v41  ;;  %v74_v44 = vmul.f32 0.03125, %v61_v42 }
 0x12c   :  { %v82_v45 = vadd.f32 1e-05, %v77_v43  ;;  %v79_v46 = vadd.f32 1e-05, %v74_v44 }
 0x12d   :  { %v64_v47 = vpop.xlane.xlu0 %63  ;;  %v73_v48 = vpop.xlane.xlu1 %72 }
 0x12e   :  { %344 = vrsqrt.f32 %v82_v45  ;;  %v75_v49 = vmul.f32 0.03125, %v64_v47  ;;  %v78_v50 = vmul.f32 0.03125, %v73_v48 }
 0x12f   :  { %346 = vrsqrt.f32 %v79_v46 }
 0x130   :  { %v80_v51 = vadd.f32 1e-05, %v75_v49  ;;  %v83_v52 = vadd.f32 1e-05, %v78_v50 }
 0x132   :  { %348 = vrsqrt.f32 %v80_v51 }
 0x133   :  { %350 = vrsqrt.f32 %v83_v52 }
 0x134   :  { %v343_v53 = vpop.eup %342 }
 0x135   :  { %v91_v54 = vmul.f32 %v343_v53, %v414_v14  ;;  %v286_v14 = vld [vmem:[%s468_s4] ss:$0 sm:$0xff] }
 0x137   :  { %v103_v59 = vmul.f32 %v284_v55, %v91_v54 }
 0x138   :  { %v345_v56 = vpop.eup %344 }
 0x139   :  { %v347_v57 = vpop.eup %346  ;;  %v92_v58 = vmul.f32 %v345_v56, %v52_v22  ;;  %v115_v2 = vadd.f32 %v285_v61, %v103_v59 }
 0x13a   :  { %v89_v60 = vmul.f32 %v347_v57, %v416_v15 }
 0x13b   :  { %v104_v62 = vmul.f32 %v284_v55, %v92_v58 }
 0x13c   :  { %v349_v63 = vpop.eup %348  ;;  %v101_v4 = vmul.f32 %v284_v55, %v89_v60 }
 0x13d   :  { %v351_v0 = vpop.eup %350  ;;  %v90_v1 = vmul.f32 %v349_v63, %v423_v24  ;;  %v116_v3 = vadd.f32 %v285_v61, %v104_v62 }
 0x13e   :  { %v93_v5 = vmul.f32 %v351_v0, %v53_v30  ;;  %v113_v9 = vadd.f32 %v285_v61, %v101_v4 }
 0x13f   :  { %v119_v6 = vpack.c.bf16 %v116_v3, %v115_v2  ;;  %v102_v7 = vmul.f32 %v284_v55, %v90_v1 }
 0x140   :  { %v105_v8 = vmul.f32 %v284_v55, %v93_v5 }
 0x141   :  { %327 = vmatmul.mubr.msk.bf16.vlgmr.msra.gmra.mrb[0].mxu1 %vm26_vm0, %v119_v6  ;;  %v114_v10 = vadd.f32 %v285_v61, %v102_v7 }
 0x142   :  { %330 = vmatprep.mubr.msk.bf16.mxu1 %vm363_vm2, %v362_v36  ;;  %v117_v12 = vadd.f32 %v285_v61, %v105_v8 }
 0x143   :  { %v118_v11 = vpack.c.bf16 %v114_v10, %v113_v9 }
 0x144   :  { %v120_v13 = vpack.c.bf16 %v117_v12, %v117_v12 }
 0x145   :  { %323 = vmatmul.mubr.msk.bf16.vlgmr.msra.gmra.mrb[0].mxu0 %vm26_vm0, %v118_v11 }
 0x149   :  { %331 = vmatmul.mubr.msk.bf16.gmra.mrb[4].mxu1 %vm26_vm0, %v120_v13 }
 0x214   :  { %v195_v15 = vpop.f32.mrb[0].mxu1 }
 0x215   :  { %v196_v16 = vadd.f32 %v286_v14, %v195_v15  ;;  %v328_v17 = vpop.f32.mrb[1].mxu1 }
 0x216   :  { %v198_v18 = vpop.f32.mrb[2].mxu1 }
 0x217   :  { %v211_v19 = vmul.f32 %v196_v16, %v196_v16  ;;  %v199_v20 = vadd.f32 %v286_v14, %v198_v18  ;;  %v329_v21 = vpop.f32.mrb[3].mxu1 }
 0x218   :  { %v187_v22 = vpop.f32.mrb[0].mxu0 }
 0x219   :  { %v216_v23 = vmul.f32 %v211_v19, %v196_v16  ;;  %v212_v24 = vmul.f32 %v199_v20, %v199_v20  ;;  %v188_v25 = vadd.f32 %v286_v14, %v187_v22  ;;  %v324_v26 = vpop.f32.mrb[1].mxu0 }
 0x21a   :  { %v190_v27 = vpop.f32.mrb[2].mxu0 }
 0x21b   :  { %v221_v28 = vmul.f32 0.044715, %v216_v23  ;;  %v217_v29 = vmul.f32 %v212_v24, %v199_v20  ;;  %v209_v30 = vmul.f32 %v188_v25, %v188_v25  ;;  %v191_v31 = vadd.f32 %v286_v14, %v190_v27  ;;  %v325_v32 = vpop.f32.mrb[3].mxu0 }
 0x21c   :  { %v203_v33 = vpop.f32.mrb[4].mxu1 }
 0x21d   :  { %v226_v34 = vadd.f32 %v221_v28, %v196_v16  ;;  %v222_v35 = vmul.f32 0.044715, %v217_v29  ;;  %v214_v36 = vmul.f32 %v209_v30, %v188_v25  ;;  %v210_v37 = vmul.f32 %v191_v31, %v191_v31  ;;  %v332_v38 = vpop.f32.mrb[5].mxu1 }
 0x21e   :  { %v204_v39 = vadd.f32 %v286_v14, %v203_v33  ;;  %v206_v40 = vpop.f32.mrb[6].mxu1 }
 0x21f   :  { %v231_v41 = vmul.f32 0.7978846, %v226_v34  ;;  %v227_v42 = vadd.f32 %v222_v35, %v199_v20  ;;  %v219_v43 = vmul.f32 0.044715, %v214_v36  ;;  %v215_v44 = vmul.f32 %v210_v37, %v191_v31  ;;  %v333_v45 = vpop.f32.mrb[7].mxu1 }
 0x220   :  { %v213_v46 = vmul.f32 %v204_v39, %v204_v39 }
 0x221   :  { %352 = vtanh.f32 %v231_v41  ;;  %v232_v47 = vmul.f32 0.7978846, %v227_v42  ;;  %v224_v48 = vadd.f32 %v219_v43, %v188_v25  ;;  %v220_v49 = vmul.f32 0.044715, %v215_v44 }
 0x222   :  { %v218_v50 = vmul.f32 %v213_v46, %v204_v39 }
 0x223   :  { %354 = vtanh.f32 %v232_v47  ;;  %v229_v51 = vmul.f32 0.7978846, %v224_v48  ;;  %v225_v52 = vadd.f32 %v220_v49, %v191_v31 }
 0x224   :  { %v223_v53 = vmul.f32 0.044715, %v218_v50 }
 0x225   :  { %356 = vtanh.f32 %v229_v51  ;;  %v230_v54 = vmul.f32 0.7978846, %v225_v52 }
 0x226   :  { %v228_v55 = vadd.f32 %v223_v53, %v204_v39 }
 0x227   :  { %358 = vtanh.f32 %v230_v54 }
 0x228   :  { %v233_v56 = vmul.f32 0.7978846, %v228_v55 }
 0x22a   :  { %360 = vtanh.f32 %v233_v56 }
 0x22b   :  { %v353_v57 = vpop.eup %352 }
 0x22c   :  { %v241_v58 = vadd.f32 1.0, %v353_v57 }
 0x22d   :  { %v355_v59 = vpop.eup %354 }
 0x22e   :  { %v246_v60 = vmul.f32 0.5, %v241_v58  ;;  %v242_v61 = vadd.f32 1.0, %v355_v59 }
 0x22f   :  { %v357_v62 = vpop.eup %356 }
 0x230   :  { %v247_v63 = vmul.f32 0.5, %v242_v61  ;;  %v239_v0 = vadd.f32 1.0, %v357_v62  ;;  %v251_v2 = vmul.f32 %v246_v60, %v196_v16 }
 0x231   :  { %v359_v1 = vpop.eup %358 }
 0x232   :  { %v252_v3 = vmul.f32 %v247_v63, %v199_v20  ;;  %v244_v4 = vmul.f32 0.5, %v239_v0  ;;  %v240_v5 = vadd.f32 1.0, %v359_v1 }
 0x234   :  { %v361_v6 = vpop.eup %360  ;;  %v310_v7 = vpack.c.bf16 %v252_v3, %v251_v2  ;;  %v245_v8 = vmul.f32 0.5, %v240_v5  ;;  %v249_v10 = vmul.f32 %v244_v4, %v188_v25 }
 0x235   :  { %v243_v9 = vadd.f32 1.0, %v361_v6 }
 0x236   :  { %312 = vst [vmem:[%s469_s5 + $0x8] sm:$0xff] %v310_v7   ;;  %v250_v11 = vmul.f32 %v245_v8, %v191_v31 }
 0x237   :  { %v248_v12 = vmul.f32 0.5, %v243_v9 }
 0x238   :  { %v305_v13 = vpack.c.bf16 %v250_v11, %v249_v10 }
 0x239   :  { %v253_v14 = vmul.f32 %v248_v12, %v204_v39 }
 0x23a   :  { %306 = vst [vmem:[%s469_s5] sm:$0xff] %v305_v13  }
 0x23b   :  { %v301_v15 = vpack.c.bf16 %v253_v14, %v253_v14 }
 0x23d   :  { %279 = vst [vmem:[%s469_s5 + $0x10] sm:$0x1] %v301_v15 }

// kernel: cnvcaller_forward.15
= control target key start
LH: loop header
LB: loop body
LE: loop exit
PB: predicated region body
PF: predicated region fallthrough
CT: control target
= control target key end

     0   :  { %v267_v0 = vmov 0.0   ;;  %vm268_vm0 = vmmov 0   ;;  %vm176_vm1 = vcmask 261120   ;;  %vm181_vm2 = vcmask 254976   ;;  %s367_s1 = inlined_call_operand.vmem [shape: bf16[128,32], index: 1, kind: input, shape index: {}]   ;;  %s368_s0 = inlined_call_operand.vmem [shape: bf16[34,128], index: 0, kind: input, shape index: {}]   ;;  %s369_s2 = inlined_call_operand.vmem [shape: f32[1,32], index: 2, kind: input, shape index: {}]   ;;  %s370_s3 = inlined_call_operand.vmem [shape: f32[34,32], index: 3, kind: input, shape index: {}]   ;;  %s371_s4 = inlined_call_operand.vmem [shape: f32[34,32], index: 4, kind: output, shape index: {}]  }
   0x1   :  { %238 = vmatprep.subr.bf16.mxu1 %v267_v0  ;;  %v256_v1 = vld [vmem:[%s367_s1] sm:$0xff]   ;;  %210 = vmatprep.subr.bf16.mxu0 %v267_v0  ;;  %v257_v2 = vld [vmem:[%s367_s1 + $0x8] sm:$0xff]   ;;  %v258_v3 = vld [vmem:[%s367_s1 + $0x10] sm:$0xff]  }
   0x2   :  { %230 = vmatprep.mubr.msk.bf16.mxu1 %vm268_vm0, %v267_v0  ;;  %226 = vmatprep.mubr.msk.bf16.mxu0 %vm268_vm0, %v267_v0  ;;  %v259_v4 = vld [vmem:[%s367_s1 + $0x18] sm:$0xff]   ;;  %v260_v5 = vld [vmem:[%s367_s1 + $0x20] sm:$0xff]   ;;  %v261_v6 = vld [vmem:[%s367_s1 + $0x28] sm:$0xff]  }
   0x3   :  { %246 = vmatpush3.bf16.msra.mxu1 %v256_v1  ;;  %211 = vmatpush3.bf16.msra.mxu0 %v256_v1  ;;  %v262_v7 = vld [vmem:[%s367_s1 + $0x30] sm:$0xff]   ;;  %v263_v8 = vld [vmem:[%s367_s1 + $0x38] sm:$0xff]   ;;  %v264_v9 = vld [vmem:[%s368_s0 + $0x8] sm:$0xff]  }
   0x4   :  { %239 = vmatprep.subr.bf16.mxu1 %v267_v0  ;;  %212 = vmatprep.subr.bf16.mxu0 %v267_v0  ;;  %v265_v10 = vld [vmem:[%s368_s0] sm:$0xff]   ;;  %v266_v11 = vld [vmem:[%s368_s0 + $0x10] ss:$0 sps:$4 sm:$0x11]   ;;  %v169_v22 = vld [vmem:[%s370_s3 + $0x18] sm:$0xff] }
   0x5   :  { %v187_v12 = vld [vmem:[%s369_s2] ss:$0 sm:$0xff]  ;;  %v168_v14 = vld [vmem:[%s370_s3 + $0x10] sm:$0xff]  ;;  %v167_v24 = vld [vmem:[%s370_s3 + $0x8] sm:$0xff] }
   0x6   :  { %v166_v16 = vld [vmem:[%s370_s3] sm:$0xff] }
   0x7   :  { %247 = vmatpush3.bf16.msra.mxu1 %v257_v2  ;;  %213 = vmatpush3.bf16.msra.mxu0 %v257_v2  ;;  %v170_v34 = vld [vmem:[%s370_s3 + $0x20] sm:$0x3] }
   0x8   :  { %240 = vmatprep.subr.bf16.mxu1 %v267_v0  ;;  %214 = vmatprep.subr.bf16.mxu0 %v267_v0 }
   0xb   :  { %248 = vmatpush3.bf16.msra.mxu1 %v258_v3  ;;  %215 = vmatpush3.bf16.msra.mxu0 %v258_v3 }
   0xc   :  { %241 = vmatprep.subr.bf16.mxu1 %v267_v0  ;;  %216 = vmatprep.subr.bf16.mxu0 %v267_v0 }
   0xf   :  { %249 = vmatpush3.bf16.msra.mxu1 %v259_v4  ;;  %217 = vmatpush3.bf16.msra.mxu0 %v259_v4 }
  0x10   :  { %242 = vmatprep.subr.bf16.mxu1 %v267_v0  ;;  %218 = vmatprep.subr.bf16.mxu0 %v267_v0 }
  0x13   :  { %250 = vmatpush3.bf16.msra.mxu1 %v260_v5  ;;  %219 = vmatpush3.bf16.msra.mxu0 %v260_v5 }
  0x14   :  { %243 = vmatprep.subr.bf16.mxu1 %v267_v0  ;;  %220 = vmatprep.subr.bf16.mxu0 %v267_v0 }
  0x17   :  { %251 = vmatpush3.bf16.msra.mxu1 %v261_v6  ;;  %221 = vmatpush3.bf16.msra.mxu0 %v261_v6 }
  0x18   :  { %244 = vmatprep.subr.bf16.mxu1 %v267_v0  ;;  %222 = vmatprep.subr.bf16.mxu0 %v267_v0 }
  0x1b   :  { %252 = vmatpush3.bf16.msra.mxu1 %v262_v7  ;;  %223 = vmatpush3.bf16.msra.mxu0 %v262_v7 }
  0x1c   :  { %245 = vmatprep.subr.bf16.mxu1 %v267_v0  ;;  %224 = vmatprep.subr.bf16.mxu0 %v267_v0 }
  0x1f   :  { %253 = vmatpush3.bf16.msra.mxu1 %v263_v8  ;;  %225 = vmatpush3.bf16.msra.mxu0 %v263_v8 }
  0x22   :  { %231 = vmatmul.mubr.bf16.vlgmr.msra.gmra.mrb[0].mxu1 %v264_v9  ;;  %227 = vmatmul.mubr.bf16.vlgmr.msra.gmra.mrb[0].mxu0 %v265_v10 }
  0x23   :  { %234 = vmatprep.mubr.msk.bf16.mxu1 %vm268_vm0, %v267_v0 }
  0x2a   :  { %235 = vmatmul.mubr.bf16.gmra.mrb[4].mxu1 %v266_v11 }
  0xf5   :  { %v152_v13 = vpop.f32.mrb[0].mxu1  ;;  %v144_v15 = vpop.f32.mrb[0].mxu0 }
  0xf6   :  { %v153_v17 = vadd.f32 %v187_v12, %v152_v13  ;;  %v232_v18 = vpop.f32.mrb[1].mxu1  ;;  %v145_v19 = vadd.f32 %v187_v12, %v144_v15  ;;  %v228_v20 = vpop.f32.mrb[1].mxu0 }
  0xf7   :  { %v155_v21 = vpop.f32.mrb[2].mxu1  ;;  %v147_v23 = vpop.f32.mrb[2].mxu0 }
  0xf8   :  { %v173_v25 = vadd.f32 %v168_v14, %v153_v17  ;;  %v156_v26 = vadd.f32 %v187_v12, %v155_v21  ;;  %v171_v27 = vadd.f32 %v166_v16, %v145_v19  ;;  %v233_v28 = vpop.f32.mrb[3].mxu1  ;;  %v148_v29 = vadd.f32 %v187_v12, %v147_v23  ;;  %v229_v30 = vpop.f32.mrb[3].mxu0 }
  0xfa   :  { %179 = vst.msk [vmem:[%s371_s4 + $0x10] sm:$0xff] %vm176_vm1, %v173_v25  ;;  %v174_v31 = vadd.f32 %v169_v22, %v156_v26  ;;  %177 = vst.msk [vmem:[%s371_s4] sm:$0xff] %vm176_vm1, %v171_v27  ;;  %v172_v32 = vadd.f32 %v167_v24, %v148_v29 }
  0xfc   :  { %180 = vst.msk [vmem:[%s371_s4 + $0x18] sm:$0xff] %vm176_vm1, %v174_v31  ;;  %178 = vst.msk [vmem:[%s371_s4 + $0x8] sm:$0xff] %vm176_vm1, %v172_v32 }
  0xfd   :  { %v160_v33 = vpop.f32.mrb[4].mxu1 }
  0xfe   :  { %v161_v35 = vadd.f32 %v187_v12, %v160_v33  ;;  %v236_v36 = vpop.f32.mrb[5].mxu1 }
  0xff   :  { %v163_v37 = vpop.f32.mrb[6].mxu1 }
 0x100   :  { %v175_v38 = vadd.f32 %v170_v34, %v161_v35  ;;  %v237_v39 = vpop.f32.mrb[7].mxu1 }
 0x102   :  { %182 = vst.msk [vmem:[%s371_s4 + $0x20] sm:$0x3] %vm181_vm2, %v175_v38 }

// kernel: cnvcaller_forward.21
= control target key start
LH: loop header
LB: loop body
LE: loop exit
PB: predicated region body
PF: predicated region fallthrough
CT: control target
= control target key end

     0   :  { %vm22_vm0 = vcmask 254976   ;;  %v160_v8 = vmov 0.0   ;;  %vm161_vm1 = vmmov 0   ;;  %vm77_vm2 = vcmask 261120   ;;  %s216_s0 = inlined_call_operand.vmem [shape: f32[2,32], index: 0, kind: input, shape index: {}]   ;;  %s217_s3 = inlined_call_operand.vmem [shape: bf16[32,32], index: 3, kind: input, shape index: {}]   ;;  %s218_s1 = inlined_call_operand.vmem [shape: f32[1,32], index: 1, kind: input, shape index: {}]   ;;  %s219_s2 = inlined_call_operand.vmem [shape: f32[1,32], index: 2, kind: input, shape index: {}]   ;;  %s220_s4 = inlined_call_operand.vmem [shape: f32[1,32], index: 4, kind: input, shape index: {}]   ;;  %s221_s5 = inlined_call_operand.vmem [shape: f32[2,32], index: 5, kind: output, shape index: {}]  }
   0x1   :  { %v21_v0 = vld [vmem:[%s216_s0] sm:$0x3]  ;;  %144 = vmatprep.subr.bf16.mxu0 %v160_v8  ;;  %v155_v9 = vld [vmem:[%s217_s3 + $0x8] sm:$0xff]   ;;  %148 = vmatprep.mubr.msk.bf16.mxu0 %vm161_vm1, %v160_v8 }
   0x2   :  { %v23_v1 = vsel %vm22_vm0, %v21_v0, 0.0  ;;  %v154_v7 = vld [vmem:[%s217_s3] sm:$0xff]  }
   0x3   :  { %24 = vadd.xlane.f32.xlu0 %v23_v1  ;;  %145 = vmatpush3.bf16.msra.mxu0 %v154_v7  ;;  %v135_v14 = vld [vmem:[%s218_s1] ss:$0 sm:$0xff] }
   0x4   :  { %146 = vmatprep.subr.bf16.mxu0 %v160_v8  ;;  %v136_v16 = vld [vmem:[%s219_s2] ss:$0 sm:$0xff] }
   0x5   :  { %v137_v20 = vld [vmem:[%s220_s4] ss:$0 sm:$0xff] }
   0x7   :  { %147 = vmatpush3.bf16.msra.mxu0 %v155_v9 }
  0x90   :  { %v25_v2 = vpop.xlane.xlu0 %24 }
  0x91   :  { %v27_v3 = vmul.f32 0.03125, %v25_v2 }
  0x93   :  { %v28_v4 = vsub.f32 %v21_v0, %v27_v3 }
  0x95   :  { %v29_v5 = vmul.f32 %v28_v4, %v28_v4 }
  0x97   :  { %v30_v6 = vsel %vm22_vm0, %v29_v5, 0.0 }
  0x98   :  { %31 = vadd.xlane.f32.xlu0 %v30_v6 }
 0x125   :  { %v32_v10 = vpop.xlane.xlu0 %31 }
 0x126   :  { %v33_v11 = vmul.f32 0.03125, %v32_v10 }
 0x128   :  { %v34_v12 = vadd.f32 1e-05, %v33_v11 }
 0x12a   :  { %156 = vrsqrt.f32 %v34_v12 }
 0x134   :  { %v157_v13 = vpop.eup %156 }
 0x135   :  { %v36_v15 = vmul.f32 %v157_v13, %v28_v4 }
 0x137   :  { %v44_v17 = vmul.f32 %v135_v14, %v36_v15 }
 0x139   :  { %v52_v18 = vadd.f32 %v136_v16, %v44_v17 }
 0x13b   :  { %v53_v19 = vpack.c.bf16 %v52_v18, %v52_v18 }
 0x13d   :  { %149 = vmatmul.mubr.msk.bf16.vlgmr.msra.gmra.mrb[0].mxu0 %vm77_vm2, %v53_v19 }
 0x210   :  { %v115_v21 = vpop.f32.mrb[0].mxu0 }
 0x211   :  { %v116_v22 = vadd.f32 %v137_v20, %v115_v21  ;;  %v150_v23 = vpop.f32.mrb[1].mxu0 }
 0x212   :  { %v118_v24 = vpop.f32.mrb[2].mxu0 }
 0x213   :  { %v121_v25 = vmul.f32 %v116_v22, %v116_v22  ;;  %v151_v26 = vpop.f32.mrb[3].mxu0 }
 0x215   :  { %v122_v27 = vmul.f32 %v121_v25, %v116_v22 }
 0x217   :  { %v123_v28 = vmul.f32 0.044715, %v122_v27 }
 0x219   :  { %v124_v29 = vadd.f32 %v123_v28, %v116_v22 }
 0x21b   :  { %v125_v30 = vmul.f32 0.7978846, %v124_v29 }
 0x21d   :  { %158 = vtanh.f32 %v125_v30 }
 0x227   :  { %v159_v31 = vpop.eup %158 }
 0x228   :  { %v127_v32 = vadd.f32 1.0, %v159_v31 }
 0x22a   :  { %v128_v33 = vmul.f32 0.5, %v127_v32 }
 0x22c   :  { %v129_v34 = vmul.f32 %v128_v33, %v116_v22 }
 0x22e   :  { %130 = vst.msk [vmem:[%s221_s5] sm:$0x3] %vm22_vm0, %v129_v34 }

// kernel: cnvcaller_forward.12
= control target key start
LH: loop header
LB: loop body
LE: loop exit
PB: predicated region body
PF: predicated region fallthrough
CT: control target
= control target key end

     0   :  { %s3500_s12 = smov 0   ;;  %s4469_s0 = inlined_call_operand.vmem [shape: bf16[2,17,96], index: 0, kind: input, shape index: {}]   ;;  %s4470_s1 = inlined_call_operand.vmem [shape: bf16[32,64], index: 1, kind: input, shape index: {}]   ;;  %s4471_s2 = inlined_call_operand.vmem [shape: bf16[2,17,1], index: 2, kind: input, shape index: {}]   ;;  %s4472_s3 = inlined_call_operand.vmem [shape: bf16[2,17,32], index: 3, kind: output, shape index: {}]  }
   0x1 LB: > { %s2945_s13 = sadd.s32 4294967295, %s3444_s12   ;;  %p2949_p0 = scmp.ge.s32.totalorder %s3444_s12, 1  ;;  %s3444_s12 = sphi %s3500_s12, %s13_s12  }
   0x2   : > { %p147_p1 = scmp.lt.s32.totalorder %s3444_s12, 3 }
   0x4   : > { %p148_p2 = pnand %p2949_p0, %p147_p1 }
   0x6   : > { %151 = sbr.rel (%p148_p2) target bundleno = 2722 (0xaa2), region = 32 }
   0xd   : > { %v3290_v0 = vld [vmem:[%s4470_s1] sm:$0xff]   ;;  %v3291_v1 = vld [vmem:[%s4470_s1 + $0x8] sm:$0xff]   ;;  %v3446_v2 = vmov 0   ;;  %p176_p3 = scmp.lt.s32.totalorder %s2945_s13, 1  ;;  %vm261_vm0 = vcmask 261120   ;;  %s3447_s25 = smov 96   ;;  %v206_v30 = vlaneseq }
   0xe   : > { %3289 = vset.pattern.permute.xlu1 %v3446_v2  ;;  %3288 = vset.pattern.permute.xlu0 %v3446_v2  ;;  %vm380_vm1 = vcmask 31744   ;;  %vm4473_vm2 = vcmask 24576   ;;  %s3448_s26 = smov 124   ;;  %v3449_v28 = vmov 839922192   ;;  %v4476_v52 = vmov 0.0  }
   0xf   : > { %3093 = vmatprep.subr.bf16.mxu0 %v3290_v0  ;;  %3101 = vmatprep.subr.bf16.mxu1 %v3290_v0  ;;  %s4507_s13 = smov (!%p176_p3, %s2945_s13), 1  ;;  %v204_v29 = vunpack.c.l.s4 %v3449_v28  ;;  %v207_v35 = vshrl.u32 %v206_v30, 7  ;;  %s3451_s27 = smov 64   ;;  %vm428_vm3 = vcmask 57344   ;;  %vm421_vm4 = vcmask 64512  }
  0x10   : > { %3094 = vmatpush3.bf16.msra.mxu0 %v3290_v0  ;;  %3102 = vmatpush3.bf16.msra.mxu1 %v3290_v0  ;;  %s3516_s18 = smul.u32 12, %s4507_s13  ;;  %s3452_s28 = smov 92   ;;  %vm538_vm5 = vcmask 1040384   ;;  %vm718_vm6 = vcmask 130112   ;;  %vm725_vm7 = vcmask 122944   ;;  %vm1033_vm8 = vcmask 195712  }
  0x11   : > { %3095 = vmatprep.subr.bf16.mxu0 %v3291_v1  ;;  %3103 = vmatprep.subr.bf16.mxu1 %v3291_v1  ;;  %v205_v34 = vunpack.c.0.s8 %v204_v29  ;;  %v3606_v0 = vsel %vm538_vm5, 65535, %v3446_v2  ;;  %vm4475_vm9 = vcmask 326912   ;;  %vm4474_vm10 = vcmask 319744   ;;  %s3453_s29 = smov 120   ;;  %s3454_s30 = smov 60  }
  0x12   : > { %s185_s21 = scalar_lea.vmem %s4471_s2, %s3516_s18  ;;  %s180_s24 = scalar_lea.vmem %s4469_s0, %s3516_s18  ;;  %vm1348_vm11 = vcmask 261312   ;;  %vm1978_vm13 = vcmask 392512   ;;  %vm2608_vm14 = vcmask 523712   ;;  %vm1040_vm15 = vcmask 188544  }
  0x13   : > { %v197_v3 = vld [vmem:[%s185_s21 + $0x8] sm:$0x1]  ;;  %v195_v4 = vld [vmem:[%s185_s21] sm:$0xf]  ;;  %v3528_v6 = vld [vmem:[%s180_s24 + $0x4] sm:$0xf]  ;;  %v208_v39 = vsub.s32 %v205_v34, %v207_v35 }
  0x14   : > { %3096 = vmatpush3.bf16.msra.mxu0 %v3291_v1  ;;  %3104 = vmatpush3.bf16.msra.mxu1 %v3291_v1  ;;  %v3526_v5 = vld [vmem:[%s180_s24] sm:$0xf]  ;;  %v3530_v7 = vld [vmem:[%s180_s24 + $0x8] sm:$0x1]  ;;  %v196_v9 = vld [vmem:[%s185_s21 + $0x4] sm:$0xf]  ;;  %v375_v11 = vunpack.c.l.bf16 %v3528_v6 }
  0x15   : > { %224 = vperm.xlu1 %3289, %v197_v3   ;;  %200 = vperm.xlu0 %3288, %v195_v4   ;;  %v2953_v8 = vcombine.low %v3526_v5, %v3528_v6  ;;  %v2954_v10 = vcombine.low %v3530_v7, %v3530_v7  ;;  %v374_v12 = vunpack.c.l.bf16 %v3526_v5  ;;  %v376_v13 = vunpack.c.l.bf16 %v3530_v7  ;;  %s3455_s4 = smov 88   ;;  %s3456_s5 = smov 84  }
  0x16   : > { %v3543_v14 = vmul.f32 %v375_v11, %v375_v11  ;;  %3109 = vmatprep.subr.bf16.mxu0 %v4476_v52  ;;  %vm2300_vm5 = vcmask 450944   ;;  %vm2615_vm12 = vcmask 516544   ;;  %s3457_s6 = smov 80   ;;  %s3458_s7 = smov 76  }
  0x17   : > { %3097 = vmatprep.mubr.msk.bf16.mxu0 %vm261_vm0, %v2953_v8  ;;  %v3545_v15 = vmul.f32 %v374_v12, %v374_v12  ;;  %v3547_v16 = vmul.f32 %v376_v13, %v376_v13  ;;  %s3459_s8 = smov 72   ;;  %s3460_s9 = smov 68  }
  0x18   : > { %3098 = vmatmul.mubr.msk.bf16.vlgmr.msra.gmra.mrb[0].mxu0 %vm261_vm0, %v2954_v10  ;;  %v384_v17 = vsel %vm380_vm1, %v3543_v14, 0.0  ;;  %s3461_s14 = smov 112   ;;  %s3462_s21 = smov 104  }
  0x19   : > { %212 = vperm.xlu0 %3288, %v196_v9   ;;  %316 = vrot.lane.b32.xlu1 %v2953_v8, %s3447_s25  ;;  %v381_v18 = vsel %vm380_vm1, %v3545_v15, 0.0  ;;  %v388_v19 = vsel %vm4473_vm2, %v3547_v16, 0.0  ;;  %s3463_s22 = smov 56   ;;  %s3464_s23 = smov 52  }
  0x1a   : > { %s3465_s24 = smov 48  }
  0x1d   : > { %318 = vrot.lane.b32.xlu0 %v2954_v10, %s3447_s25 }
  0x3c   : > { %385 = vadd.xlane.f32.xlu0 %v384_v17 }
  0x3d   : > { %382 = vadd.xlane.f32.xlu1 %v381_v18 }
  0x40   : > { %389 = vadd.xlane.f32.xlu0 %v388_v19 }
  0x4e   : > { %397 = vrot.lane.b32.xlu1 %v3545_v15, %s3447_s25 }
  0x52   : > { %401 = vrot.lane.b32.xlu1 %v3547_v16, %s3447_s25 }
  0x56   : > { %399 = vrot.lane.b32.xlu0 %v3543_v14, %s3447_s25  ;;  %673 = vrot.lane.b32.xlu1 %v3545_v15, %s3448_s26 }
  0x5a   : > { %675 = vrot.lane.b32.xlu1 %v3543_v14, %s3448_s26 }
  0x5e   : > { %677 = vrot.lane.b32.xlu1 %v3547_v16, %s3448_s26  ;;  %s3467_s26 = smov 44  }
  0x94   : > { %v225_v20 = vpop.permute.xlu1 %224  ;;  %v201_v21 = vpop.permute.xlu0 %200 }
  0x95   : > { %v209_v41 = vrot.slane %v201_v21, %v208_v39  ;;  %v233_v44 = vrot.slane %v225_v20, %v208_v39 }
  0x97   : > { %v234_v45 = vmul.bf16 %v209_v41, %v3526_v5  ;;  %v236_v49 = vmul.bf16 %v233_v44, %v3530_v7 }
  0x98   : > { %v213_v22 = vpop.permute.xlu0 %212  ;;  %v317_v23 = vpop.permute.xlu1 %316 }
  0x99   : > { %3105 = vmatprep.mubr.msk.bf16.mxu1 %vm261_vm0, %v317_v23  ;;  %v221_v42 = vrot.slane %v213_v22, %v208_v39  ;;  %v3584_v53 = vcombine.low %v236_v49, %v236_v49 }
  0x9b   : > { %v235_v46 = vmul.bf16 %v221_v42, %v3528_v6 }
  0x9c   : > { %v319_v24 = vpop.permute.xlu0 %318 }
  0x9d   : > { %3106 = vmatmul.mubr.msk.bf16.vlgmr.msra.gmra.mrb[0].mxu1 %vm261_vm0, %v319_v24  ;;  %v3579_v50 = vcombine.low %v234_v45, %v235_v46  ;;  %vm1355_vm0 = vcmask 254144  }
  0xc9   : > { %v3566_v25 = vpop.xlane.xlu0 %385 }
  0xca   : > { %v3568_v26 = vpop.xlane.xlu1 %382 }
  0xcd   : > { %v3570_v27 = vpop.xlane.xlu0 %389 }
  0xce   : > { %v398_v31 = vpop.permute.xlu1 %397 }
  0xcf   : > { %v406_v32 = vsel %vm380_vm1, %v398_v31, 0.0 }
  0xd0   : > { %407 = vadd.xlane.f32.xlu1 %v406_v32 }
  0xd1   : > { %v400_v33 = vpop.permute.xlu0 %399 }
  0xd2   : > { %v409_v36 = vsel %vm380_vm1, %v400_v33, 0.0  ;;  %v402_v37 = vpop.permute.xlu1 %401 }
  0xd3   : > { %410 = vadd.xlane.f32.xlu0 %v409_v36  ;;  %v412_v38 = vsel %vm4473_vm2, %v402_v37, 0.0 }
  0xd6   : > { %v674_v40 = vpop.permute.xlu1 %673 }
  0xd7   : > { %413 = vadd.xlane.f32.xlu0 %v412_v38  ;;  %v682_v58 = vsel %vm380_vm1, %v674_v40, 0.0 }
  0xda   : > { %v676_v43 = vpop.permute.xlu1 %675 }
  0xdb   : > { %v685_v47 = vsel %vm380_vm1, %v676_v43, 0.0 }
  0xdc   : > { %686 = vadd.xlane.f32.xlu0 %v685_v47 }
  0xde   : > { %v678_v48 = vpop.permute.xlu1 %677 }
  0xdf   : > { %v688_v51 = vsel %vm4473_vm2, %v678_v48, 0.0  ;;  %vm1985_vm2 = vcmask 385344  }
  0xe0   : > { %689 = vadd.xlane.f32.xlu0 %v688_v51 }
  0xe1   : > { %529 = vrot.lane.b32.xlu1 %v3579_v50, %s3451_s27 }
  0xe5   : > { %531 = vrot.lane.b32.xlu1 %v3584_v53, %s3451_s27  ;;  %s3468_s27 = smov 40  }
  0xeb   : > { %v3587_v54 = vpop.f32.mrb[0].mxu0 }
  0xec   : > { %v3589_v55 = vpop.f32.mrb[1].mxu0  ;;  %v429_v59 = vsel %vm428_vm3, %v3587_v54, -inf }
  0xed   : > { %v3100_v56 = vpop.f32.mrb[2].mxu0  ;;  %v422_v60 = vsel %vm421_vm4, %v3589_v55, -inf }
  0xee   : > { %v3591_v57 = vpop.f32.mrb[3].mxu0 }
  0xf6   : > { %694 = vrot.lane.b32.xlu0 %v3545_v15, %s3452_s28 }
 0x109   : > { %683 = vadd.xlane.f32.xlu1 %v682_v58 }
 0x11a   : > { %696 = vrot.lane.b32.xlu1 %v3543_v14, %s3452_s28 }
 0x11e   : > { %698 = vrot.lane.b32.xlu1 %v3547_v16, %s3452_s28  ;;  %s3469_s28 = smov 36  }
 0x142   : > { %430 = vmax.xlane.f32.xlu1 %v429_v59 }
 0x146   : > { %423 = vmax.xlane.f32.xlu1 %v422_v60 }
 0x15d   : > { %v3601_v61 = vpop.xlane.xlu1 %407 }
 0x160   : > { %v3603_v62 = vpop.xlane.xlu0 %410 }
 0x161   : > { %v530_v63 = vpop.permute.xlu1 %529 }
 0x162   : > { %3110 = vmatpush3.bf16.msra.mxu0 %v530_v63 }
 0x163   : > { %3111 = vmatprep.subr.bf16.mxu0 %v4476_v52 }
 0x164   : > { %v3608_v1 = vpop.xlane.xlu0 %413 }
 0x165   : > { %v532_v3 = vpop.permute.xlu1 %531 }
 0x166   : > { %v542_v4 = vand.u32 %v3606_v0, %v532_v3 }
 0x168   : > { %3112 = vmatpush3.bf16.msra.mxu0 %v542_v4 }
 0x169   : > { %v3612_v5 = vpop.xlane.xlu0 %686  ;;  %3123 = vmatprep.subr.bf16.mxu0 %v4476_v52 }
 0x16d   : > { %v3615_v6 = vpop.xlane.xlu0 %689 }
 0x170   : > { %v3617_v2 = vpop.f32.mrb[0].mxu1 }
 0x171   : > { %v3619_v7 = vpop.f32.mrb[1].mxu1  ;;  %v1694_v8 = vsel %vm4474_vm10, %v3617_v2, -inf  ;;  %v452_v9 = vsel %vm428_vm3, %v3617_v2, -inf  ;;  %v749_v10 = vsel %vm725_vm7, %v3617_v2, -inf  ;;  %v695_v11 = vpop.permute.xlu0 %694  ;;  %v1064_v22 = vsel %vm1040_vm15, %v3617_v2, -inf }
 0x172   : > { %v3108_v12 = vpop.f32.mrb[2].mxu1  ;;  %v1692_v13 = vsel %vm4475_vm9, %v3619_v7, -inf  ;;  %v450_v17 = vsel %vm421_vm4, %v3619_v7, -inf  ;;  %v747_v18 = vsel %vm718_vm6, %v3619_v7, -inf  ;;  %v1062_v19 = vsel %vm1033_vm8, %v3619_v7, -inf }
 0x173   : > { %v703_v20 = vsel %vm380_vm1, %v695_v11, 0.0  ;;  %v3636_v21 = vpop.f32.mrb[3].mxu1  ;;  %v1377_v23 = vsel %vm1348_vm11, %v3619_v7, -inf  ;;  %v1379_v24 = vsel %vm1355_vm0, %v3617_v2, -inf  ;;  %vm4478_vm10 = vcmask 458112  }
 0x174   : > { %704 = vadd.xlane.f32.xlu0 %v703_v20  ;;  %v1693_v28 = vsel %vm4475_vm9, %v3636_v21, -inf  ;;  %v451_v29 = vsel %vm421_vm4, %v3636_v21, -inf  ;;  %v748_v30 = vsel %vm718_vm6, %v3636_v21, -inf  ;;  %v1063_v31 = vsel %vm1033_vm8, %v3636_v21, -inf  ;;  %vm4479_vm9 = vmmov %vm4478_vm10 }
 0x175   : > { %v1695_v32 = vmax.f32 %v1692_v13, %v1693_v28  ;;  %v453_v33 = vmax.f32 %v450_v17, %v451_v29  ;;  %v750_v34 = vmax.f32 %v747_v18, %v748_v30  ;;  %v1065_v35 = vmax.f32 %v1062_v19, %v1063_v31 }
 0x176   : > { %v1378_v36 = vsel %vm1348_vm11, %v3636_v21, -inf  ;;  %v2322_v37 = vsel %vm4478_vm10, %v3619_v7, -inf  ;;  %v2323_v38 = vsel %vm4479_vm9, %v3636_v21, -inf  ;;  %v2324_v39 = vsel %vm2300_vm5, %v3617_v2, -inf }
 0x177   : > { %v3660_v40 = vmax.f32 %v1695_v32, %v1694_v8  ;;  %v3662_v41 = vmax.f32 %v453_v33, %v452_v9  ;;  %v3664_v42 = vmax.f32 %v750_v34, %v749_v10  ;;  %v3666_v43 = vmax.f32 %v1065_v35, %v1064_v22 }
 0x178   : > { %v1380_v44 = vmax.f32 %v1377_v23, %v1378_v36  ;;  %v2325_v45 = vmax.f32 %v2322_v37, %v2323_v38  ;;  %v2007_v46 = vsel %vm1978_vm13, %v3619_v7, -inf  ;;  %v2008_v47 = vsel %vm1978_vm13, %v3636_v21, -inf }
 0x179   : > { %v2009_v48 = vsel %vm1985_vm2, %v3617_v2, -inf  ;;  %v2010_v49 = vmax.f32 %v2007_v46, %v2008_v47  ;;  %v2637_v51 = vsel %vm2608_vm14, %v3619_v7, -inf  ;;  %v2638_v56 = vsel %vm2608_vm14, %v3636_v21, -inf }
 0x17a   : > { %v3678_v58 = vmax.f32 %v1380_v44, %v1379_v24  ;;  %v3680_v59 = vmax.f32 %v2325_v45, %v2324_v39  ;;  %v2639_v60 = vsel %vm2615_vm12, %v3617_v2, -inf  ;;  %v2640_v63 = vmax.f32 %v2637_v51, %v2638_v56 }
 0x17b   : > { %v3684_v3 = vmax.f32 %v2010_v49, %v2009_v48  ;;  %v726_v12 = vsel %vm725_vm7, %v3587_v54, -inf  ;;  %vm4480_vm9 = vcmask 24576   ;;  %v719_v17 = vsel %vm718_vm6, %v3589_v55, -inf }
 0x17c   : > { %v3686_v4 = vmax.f32 %v2640_v63, %v2639_v60  ;;  %v425_v18 = vsel %vm421_vm4, %v3591_v57, -inf  ;;  %v722_v19 = vsel %vm718_vm6, %v3591_v57, -inf  ;;  %vm4482_vm10 = vmmov %vm4480_vm9  ;;  %v391_v38 = vmul.f32 0.25, %v3568_v26 }
 0x17d   : > { %v392_v45 = vmul.f32 0.25, %v3566_v25 }
 0x17e   : > { %v418_v39 = vsub.f32 %v3589_v55, %v391_v38  ;;  %v1037_v38 = vsel %vm1033_vm8, %v3591_v57, -inf }
 0x17f   : > { %v419_v48 = vsub.f32 %v3591_v57, %v392_v45 }
 0x196   : > { %v3688_v8 = vpop.xlane.xlu1 %683 }
 0x19a   : > { %v697_v9 = vpop.permute.xlu1 %696 }
 0x19b   : > { %v706_v10 = vsel %vm380_vm1, %v697_v9, 0.0 }
 0x19c   : > { %707 = vadd.xlane.f32.xlu1 %v706_v10 }
 0x19e   : > { %v699_v11 = vpop.permute.xlu1 %698 }
 0x19f   : > { %v709_v13 = vsel %vm4480_vm9, %v699_v11, 0.0 }
 0x1a0   : > { %727 = vmax.xlane.f32.xlu1 %v726_v12  ;;  %710 = vadd.xlane.f32.xlu0 %v709_v13 }
 0x1b1   : > { %990 = vrot.lane.b32.xlu1 %v3543_v14, %s3453_s29 }
 0x1b6   : > { %838 = vrot.lane.b32.xlu0 %v3579_v50, %s3454_s30 }
 0x1ba   : > { %840 = vrot.lane.b32.xlu0 %v3584_v53, %s3454_s30  ;;  %s3471_s30 = smov 108  }
 0x1be   : > { %988 = vrot.lane.b32.xlu0 %v3545_v15, %s3453_s29 }
 0x1c2   : > { %992 = vrot.lane.b32.xlu0 %v3547_v16, %s3453_s29 }
 0x1cf   : > { %v3708_v20 = vpop.xlane.xlu1 %430 }
 0x1d3   : > { %v424_v22 = vpop.xlane.xlu1 %423 }
 0x1d4   : > { %v432_v44 = vsub.f32 %v418_v39, %v424_v22  ;;  %v693_v39 = vmul.f32 0.25, %v3615_v6 }
 0x1d6   : > { %v435_v47 = vmul.f32 1.442695, %v432_v44  ;;  %v692_v44 = vmul.f32 0.25, %v3612_v5  ;;  %v717_v45 = vsub.f32 %v3587_v54, %v693_v39 }
 0x1d8   : > { %3294 = vpow2.f32 %v435_v47 }
 0x1e1   : > { %720 = vmax.xlane.f32.xlu0 %v719_v17 }
 0x1e2   : > { %v3295_v60 = vpop.eup %3294 }
 0x1e3   : > { %v441_v63 = vadd.f32 0.0001, %v3295_v60 }
 0x1e5   : > { %426 = vmax.xlane.f32.xlu0 %v425_v18  ;;  %v3735_v11 = vmul.f32 0.35355338, %v441_v63 }
 0x1e9   : > { %723 = vmax.xlane.f32.xlu0 %v722_v19 }
 0x201   : > { %v3710_v23 = vpop.xlane.xlu0 %704 }
 0x229   : > { %v3712_v24 = vpop.xlane.xlu1 %707 }
 0x22d   : > { %v3714_v28 = vpop.xlane.xlu0 %710  ;;  %v3716_v29 = vpop.xlane.xlu1 %727 }
 0x231   : > { %v3718_v30 = vpop.permute.xlu0 %838  ;;  %v991_v31 = vpop.permute.xlu1 %990 }
 0x232   : > { %v1000_v32 = vsel %vm380_vm1, %v991_v31, 0.0 }
 0x233   : > { %1001 = vadd.xlane.f32.xlu0 %v1000_v32 }
 0x235   : > { %v3721_v33 = vpop.permute.xlu0 %840 }
 0x236   : > { %4481 = vst [vmem:[#allocation2_spill] sm:$0xff] %v3721_v33 }
 0x239   : > { %v989_v34 = vpop.permute.xlu0 %988 }
 0x23a   : > { %v997_v35 = vsel %vm380_vm1, %v989_v34, 0.0 }
 0x23b   : > { %998 = vadd.xlane.f32.xlu1 %v997_v35  ;;  %v1034_v35 = vsel %vm1033_vm8, %v3589_v55, -inf }
 0x23d   : > { %v993_v36 = vpop.permute.xlu0 %992 }
 0x23e   : > { %v1003_v37 = vsel %vm4482_vm10, %v993_v36, 0.0 }
 0x23f   : > { %1004 = vadd.xlane.f32.xlu0 %v1003_v37  ;;  %v1041_v37 = vsel %vm1040_vm15, %v3587_v54, -inf }
 0x24c   : > { %1009 = vrot.lane.b32.xlu1 %v3545_v15, %s3455_s4 }
 0x250   : > { %1013 = vrot.lane.b32.xlu1 %v3547_v16, %s3455_s4 }
 0x255   : > { %1011 = vrot.lane.b32.xlu0 %v3543_v14, %s3455_s4 }
 0x26e   : > { %v721_v46 = vpop.xlane.xlu0 %720 }
 0x272   : > { %v427_v49 = vpop.xlane.xlu0 %426 }
 0x273   : > { %v433_v51 = vsub.f32 %v419_v48, %v427_v49 }
 0x275   : > { %v437_v56 = vmul.f32 1.442695, %v433_v51 }
 0x276   : > { %v724_v12 = vpop.xlane.xlu0 %723 }
 0x277   : > { %3296 = vpow2.f32 %v437_v56 }
 0x281   : > { %v3297_v9 = vpop.eup %3296 }
 0x282   : > { %v442_v10 = vadd.f32 0.0001, %v3297_v9 }
 0x284   : > { %v3737_v26 = vmul.f32 0.35355338, %v442_v10 }
 0x286   : > { %v584_v25 = vpack.c.bf16 %v3737_v26, %v3735_v11 }
 0x288   : > { %3119 = vmatprep.mubr.msk.bf16.mxu1 %vm421_vm4, %v584_v25 }
 0x2c0   : > { %v3742_v13 = vpop.xlane.xlu0 %1001 }
 0x2c8   : > { %v3744_v17 = vpop.xlane.xlu1 %998 }
 0x2cc   : > { %v3746_v18 = vpop.xlane.xlu0 %1004  ;;  %v1010_v19 = vpop.permute.xlu1 %1009 }
 0x2cd   : > { %v1018_v22 = vsel %vm380_vm1, %v1010_v19, 0.0 }
 0x2ce   : > { %1019 = vadd.xlane.f32.xlu1 %v1018_v22 }
 0x2d0   : > { %v1012_v31 = vpop.permute.xlu0 %1011  ;;  %v1014_v32 = vpop.permute.xlu1 %1013 }
 0x2d1   : > { %v1021_v34 = vsel %vm380_vm1, %v1012_v31, 0.0  ;;  %v1024_v36 = vsel %vm4480_vm9, %v1014_v32, 0.0 }
 0x2d2   : > { %1022 = vadd.xlane.f32.xlu0 %v1021_v34  ;;  %1035 = vmax.xlane.f32.xlu1 %v1034_v35 }
 0x2d6   : > { %1042 = vmax.xlane.f32.xlu1 %v1041_v37  ;;  %1025 = vadd.xlane.f32.xlu0 %v1024_v36 }
 0x2da   : > { %1038 = vmax.xlane.f32.xlu0 %v1037_v38 }
 0x2e7   : > { %1328 = vrot.lane.b32.xlu1 %v3547_v16, %s3456_s5 }
 0x2eb   : > { %1639 = vrot.lane.b32.xlu1 %v3545_v15, %s3457_s6 }
 0x2f0   : > { %1324 = vrot.lane.b32.xlu0 %v3545_v15, %s3456_s5 }
 0x2f4   : > { %1326 = vrot.lane.b32.xlu0 %v3543_v14, %s3456_s5  ;;  %s3472_s5 = smov 100  }
 0x30f   : > { %1697 = vmax.xlane.f32.xlu1 %v3660_v40  ;;  %v691_v40 = vmul.f32 0.25, %v3688_v8 }
 0x313   : > { %455 = vmax.xlane.f32.xlu0 %v3662_v41  ;;  %v731_v41 = vsub.f32 %v717_v45, %v3716_v29 }
 0x315   : > { %v736_v6 = vmul.f32 1.442695, %v731_v41 }
 0x317   : > { %752 = vmax.xlane.f32.xlu0 %v3664_v42  ;;  %v716_v42 = vsub.f32 %v3591_v57, %v692_v44  ;;  %3298 = vpow2.f32 %v736_v6 }
 0x319   : > { %v730_v5 = vsub.f32 %v716_v42, %v724_v12 }
 0x31b   : > { %1067 = vmax.xlane.f32.xlu0 %v3666_v43  ;;  %v715_v43 = vsub.f32 %v3589_v55, %v691_v40  ;;  %v734_v47 = vmul.f32 1.442695, %v730_v5 }
 0x31d   : > { %3300 = vpow2.f32 %v734_v47 }
 0x31f   : > { %1382 = vmax.xlane.f32.xlu0 %v3678_v58  ;;  %v729_v58 = vsub.f32 %v715_v43, %v721_v46 }
 0x320   : > { %1958 = vrot.lane.b32.xlu1 %v3547_v16, %s3458_s7 }
 0x321   : > { %v732_v48 = vmul.f32 1.442695, %v729_v58  ;;  %v3299_v8 = vpop.eup %3298 }
 0x322   : > { %v740_v29 = vadd.f32 0.0001, %v3299_v8 }
 0x323   : > { %3302 = vpow2.f32 %v732_v48 }
 0x324   : > { %2269 = vrot.lane.b32.xlu1 %v3545_v15, %s3459_s8  ;;  %v3784_v46 = vmul.f32 0.35355338, %v740_v29 }
 0x326   : > { %v890_v63 = vpack.c.bf16 %v3784_v46, %v3784_v46 }
 0x327   : > { %v3301_v49 = vpop.eup %3300 }
 0x328   : > { %2271 = vrot.lane.b32.xlu1 %v3543_v14, %s3459_s8  ;;  %v739_v56 = vadd.f32 0.0001, %v3301_v49 }
 0x32a   : > { %v3790_v9 = vmul.f32 0.35355338, %v739_v56 }
 0x32d   : > { %v3303_v51 = vpop.eup %3302 }
 0x32e   : > { %v738_v60 = vadd.f32 0.0001, %v3303_v51 }
 0x330   : > { %v3793_v10 = vmul.f32 0.35355338, %v738_v60 }
 0x332   : > { %v889_v25 = vpack.c.bf16 %v3790_v9, %v3793_v10 }
 0x335   : > { %1641 = vrot.lane.b32.xlu0 %v3543_v14, %s3457_s6 }
 0x339   : > { %1643 = vrot.lane.b32.xlu0 %v3547_v16, %s3457_s6 }
 0x33d   : > { %1954 = vrot.lane.b32.xlu0 %v3545_v15, %s3458_s7 }
 0x341   : > { %896 = vrot.lane.b32.xlu0 %v890_v63, %s3453_s29 }
 0x345   : > { %894 = vrot.lane.b32.xlu0 %v889_v25, %s3453_s29 }
 0x349   : > { %1956 = vrot.lane.b32.xlu0 %v3543_v14, %s3458_s7 }
 0x34c   : > { %2327 = vmax.xlane.f32.xlu1 %v3680_v59 }
 0x35b   : > { %v3808_v19 = vpop.xlane.xlu1 %1019 }
 0x35d   : > { %2588 = vrot.lane.b32.xlu1 %v3547_v16, %s3460_s9 }
 0x35f   : > { %v3806_v12 = vpop.xlane.xlu0 %1022  ;;  %v3813_v31 = vpop.xlane.xlu1 %1035 }
 0x363   : > { %v3811_v22 = vpop.xlane.xlu0 %1025  ;;  %v3817_v32 = vpop.xlane.xlu1 %1042 }
 0x367   : > { %v3815_v59 = vpop.xlane.xlu0 %1038 }
 0x368   : > { %2012 = vmax.xlane.f32.xlu0 %v3684_v3  ;;  %v3819_v3 = vpop.permute.xlu1 %1328 }
 0x36b   : > { %v3821_v34 = vpop.permute.xlu0 %1324 }
 0x36c   : > { %v3823_v35 = vpop.permute.xlu1 %1639 }
 0x36f   : > { %v3825_v36 = vpop.permute.xlu0 %1326 }
 0x37e   : > { %2273 = vrot.lane.b32.xlu0 %v3547_v16, %s3459_s8 }
 0x382   : > { %2584 = vrot.lane.b32.xlu0 %v3545_v15, %s3460_s9 }
 0x386   : > { %2586 = vrot.lane.b32.xlu0 %v3543_v14, %s3460_s9 }
 0x39c   : > { %v1698_v38 = vpop.xlane.xlu1 %1697 }
 0x39d   : > { %v1699_v45 = vrot.slane %v1698_v38, 4 }
 0x39f   : > { %v1700_v5 = vmax.f32 %v1698_v38, %v1699_v45 }
 0x3a0   : > { %v456_v37 = vpop.xlane.xlu0 %455 }
 0x3a1   : > { %v457_v39 = vrot.slane %v456_v37, 4  ;;  %v1701_v60 = vrot.slane %v1700_v5, 2 }
 0x3a3   : > { %v458_v44 = vmax.f32 %v456_v37, %v457_v39  ;;  %v1702_v33 = vmax.f32 %v1700_v5, %v1701_v60  ;;  %v416_v5 = vmul.f32 0.25, %v3603_v62 }
 0x3a4   : > { %v753_v40 = vpop.xlane.xlu0 %752 }
 0x3a5   : > { %v754_v41 = vrot.slane %v753_v40, 4  ;;  %2642 = vmax.xlane.f32.xlu0 %v3686_v4  ;;  %v459_v42 = vrot.slane %v458_v44, 2 }
 0x3a7   : > { %v755_v6 = vmax.f32 %v753_v40, %v754_v41  ;;  %v460_v43 = vmax.f32 %v458_v44, %v459_v42  ;;  %v1703_v41 = vrot.slane %v1702_v33, 1 }
 0x3a8   : > { %v1068_v58 = vpop.xlane.xlu0 %1067 }
 0x3a9   : > { %v1069_v47 = vrot.slane %v1068_v58, 4  ;;  %v461_v48 = vrot.slane %v460_v43, 1  ;;  %v756_v8 = vrot.slane %v755_v6, 2 }
 0x3ab   : > { %v1070_v29 = vmax.f32 %v1068_v58, %v1069_v47  ;;  %v462_v49 = vmax.f32 %v460_v43, %v461_v48  ;;  %v757_v51 = vmax.f32 %v755_v6, %v756_v8  ;;  %v1704_v6 = vmax.f32 %v1702_v33, %v1703_v41  ;;  %v3832_v48 = vpop.permute.xlu1 %1958 }
 0x3ac   : > { %v1383_v56 = vpop.xlane.xlu0 %1382  ;;  %v415_v8 = vmul.f32 0.25, %v3601_v61  ;;  %v714_v33 = vmul.f32 0.25, %v3714_v28  ;;  %v1027_v28 = vmul.f32 0.25, %v3808_v19 }
 0x3ad   : > { %v1384_v63 = vrot.slane %v1383_v56, 4  ;;  %3230 = vpush %v462_v49  ;;  %v758_v25 = vrot.slane %v757_v51, 1  ;;  %v1071_v37 = vrot.slane %v1070_v29, 2  ;;  %v713_v49 = vmul.f32 0.25, %v3712_v24 }
 0x3af   : > { %v1385_v39 = vmax.f32 %v1383_v56, %v1384_v63  ;;  %v759_v52 = vmax.f32 %v757_v51, %v758_v25  ;;  %v1072_v4 = vmax.f32 %v1070_v29, %v1071_v37  ;;  %v712_v29 = vmul.f32 0.25, %v3710_v23  ;;  %v3845_v62 = vpop.permute.xlu1 %2269 }
 0x3b0   : > { %v3828_v58 = vpop.permute.xlu0 %1641  ;;  %v447_v51 = vsub.f32 %v3619_v7, %v415_v8  ;;  %v448_v56 = vsub.f32 %v3636_v21, %v416_v5  ;;  %v745_v24 = vsub.f32 %v3636_v21, %v713_v49  ;;  %v1059_v5 = vsub.f32 %v3619_v7, %v1027_v28 }
 0x3b1   : > { %3232 = vpush %v759_v52  ;;  %v1073_v44 = vrot.slane %v1072_v4, 1  ;;  %v1386_v38 = vrot.slane %v1385_v39, 2  ;;  %v417_v52 = vmul.f32 0.25, %v3608_v1  ;;  %v744_v61 = vsub.f32 %v3619_v7, %v712_v29 }
 0x3b3   : > { %v1074_v45 = vmax.f32 %v1072_v4, %v1073_v44  ;;  %v1387_v40 = vmax.f32 %v1385_v39, %v1386_v38  ;;  %v449_v60 = vsub.f32 %v3617_v2, %v417_v52  ;;  %v1028_v39 = vmul.f32 0.25, %v3806_v12 }
 0x3b4   : > { %v3830_v47 = vpop.permute.xlu0 %1643  ;;  %v1029_v4 = vmul.f32 0.25, %v3811_v22  ;;  %v746_v44 = vsub.f32 %v3617_v2, %v714_v33  ;;  %v3858_v22 = vpop.permute.xlu1 %2271  ;;  %v1006_v33 = vmul.f32 0.25, %v3744_v17 }
 0x3b5   : > { %3234 = vpush %v1074_v45  ;;  %v1388_v42 = vrot.slane %v1387_v40, 1  ;;  %v1060_v52 = vsub.f32 %v3636_v21, %v1028_v39 }
 0x3b6   : > { %v1061_v19 = vsub.f32 %v3617_v2, %v1029_v4  ;;  %v1030_v39 = vsub.f32 %v3589_v55, %v1006_v33  ;;  %v1008_v4 = vmul.f32 0.25, %v3746_v18 }
 0x3b7   : > { %v1389_v43 = vmax.f32 %v1387_v40, %v1388_v42 }
 0x3b8   : > { %v3843_v63 = vpop.permute.xlu0 %1954  ;;  %v1032_v18 = vsub.f32 %v3587_v54, %v1008_v4 }
 0x3b9   : > { %3236 = vpush %v1389_v43 }
 0x3ba   : > { %3238 = vpush %v1704_v6 }
 0x3bc   : > { %v3856_v12 = vpop.permute.xlu0 %896 }
 0x3d9   : > { %v2328_v28 = vpop.xlane.xlu1 %2327 }
 0x3de   : > { %s3231_s10 = spop %3230 }
 0x3df   : > { %v464_v1 = vstv %s3231_s10  ;;  %s4300_s10 = scalar_lea.vmem %s4472_s3, %s3516_s18  ;;  %s3473_s18 = smov 8  }
 0x3e0   : > { %v465_v25 = vsub.f32 %v447_v51, %v464_v1  ;;  %v466_v23 = vsub.f32 %v448_v56, %v464_v1  ;;  %v467_v37 = vsub.f32 %v449_v60, %v464_v1 }
 0x3e2   : > { %v468_v38 = vmul.f32 1.442695, %v465_v25  ;;  %v470_v45 = vmul.f32 1.442695, %v466_v23  ;;  %v472_v40 = vmul.f32 1.442695, %v467_v37  ;;  %s3233_s11 = spop %3232 }
 0x3e3   : > { %v761_v41 = vstv %s3233_s11  ;;  %v1007_v37 = vmul.f32 0.25, %v3742_v13  ;;  %s3478_s11 = smov 24  }
 0x3e4   : > { %3304 = vpow2.f32 %v468_v38  ;;  %v762_v42 = vsub.f32 %v744_v61, %v761_v41  ;;  %v763_v43 = vsub.f32 %v745_v24, %v761_v41  ;;  %v764_v6 = vsub.f32 %v746_v44, %v761_v41  ;;  %v3862_v24 = vpop.permute.xlu0 %894 }
 0x3e5   : > { %3306 = vpow2.f32 %v470_v45  ;;  %v1044_v44 = vsub.f32 %v1030_v39, %v3813_v31  ;;  %v2329_v38 = vrot.slane %v2328_v28, 4 }
 0x3e6   : > { %3308 = vpow2.f32 %v472_v40  ;;  %v765_v8 = vmul.f32 1.442695, %v762_v42  ;;  %v767_v29 = vmul.f32 1.442695, %v763_v43  ;;  %v769_v49 = vmul.f32 1.442695, %v764_v6  ;;  %s3235_s13 = spop %3234 }
 0x3e7   : > { %v1076_v51 = vstv %s3235_s13  ;;  %v1031_v40 = vsub.f32 %v3591_v57, %v1007_v37  ;;  %v2330_v31 = vmax.f32 %v2328_v28, %v2329_v38  ;;  %s3479_s13 = smov 28  }
 0x3e8   : > { %3310 = vpow2.f32 %v765_v8  ;;  %v1077_v56 = vsub.f32 %v1059_v5, %v1076_v51  ;;  %v1078_v60 = vsub.f32 %v1060_v52, %v1076_v51  ;;  %v1079_v1 = vsub.f32 %v1061_v19, %v1076_v51  ;;  %v3868_v42 = vpop.permute.xlu0 %1956 }
 0x3e9   : > { %3312 = vpow2.f32 %v767_v29  ;;  %v1045_v6 = vsub.f32 %v1031_v40, %v3815_v59  ;;  %v1047_v8 = vmul.f32 1.442695, %v1044_v44  ;;  %v1046_v59 = vsub.f32 %v1032_v18, %v3817_v32 }
 0x3ea   : > { %3314 = vpow2.f32 %v769_v49  ;;  %v1080_v61 = vmul.f32 1.442695, %v1077_v56  ;;  %v1082_v25 = vmul.f32 1.442695, %v1078_v60  ;;  %v1084_v23 = vmul.f32 1.442695, %v1079_v1  ;;  %s3237_s15 = spop %3236 }
 0x3eb   : > { %v2331_v40 = vrot.slane %v2330_v31, 2  ;;  %s3239_s16 = spop %3238 }
 0x3ec   : > { %3316 = vpow2.f32 %v1080_v61 }
 0x3ed   : > { %3318 = vpow2.f32 %v1082_v25 }
 0x3ee   : > { %v3305_v17 = vpop.eup %3304  ;;  %3320 = vpow2.f32 %v1084_v23  ;;  %v1049_v23 = vmul.f32 1.442695, %v1045_v6 }
 0x3ef   : > { %v3307_v45 = vpop.eup %3306  ;;  %v474_v41 = vadd.f32 0.0001, %v3305_v17 }
 0x3f0   : > { %v3309_v13 = vpop.eup %3308  ;;  %v475_v43 = vadd.f32 0.0001, %v3307_v45  ;;  %3322 = vpow2.f32 %v1049_v23 }
 0x3f1   : > { %v476_v5 = vadd.f32 0.0001, %v3309_v13  ;;  %v3871_v52 = vmul.f32 0.35355338, %v474_v41  ;;  %3324 = vpow2.f32 %v1047_v8 }
 0x3f2   : > { %v3311_v19 = vpop.eup %3310  ;;  %v3874_v29 = vmul.f32 0.35355338, %v475_v43 }
 0x3f3   : > { %v3313_v49 = vpop.eup %3312  ;;  %v3876_v33 = vmul.f32 0.35355338, %v476_v5  ;;  %v480_v51 = vsel %vm421_vm4, %v3871_v52, 0.0  ;;  %v771_v56 = vadd.f32 0.0001, %v3311_v19 }
 0x3f4   : > { %v3315_v60 = vpop.eup %3314  ;;  %v481_v1 = vsel %vm421_vm4, %v3874_v29, 0.0  ;;  %v772_v61 = vadd.f32 0.0001, %v3313_v49 }
 0x3f5   : > { %v482_v37 = vadd.f32 %v481_v1, %v480_v51  ;;  %v2013_v28 = vpop.xlane.xlu0 %2012  ;;  %v773_v39 = vadd.f32 0.0001, %v3315_v60  ;;  %v774_v17 = vmul.f32 0.35355338, %v771_v56  ;;  %v483_v44 = vsel %vm428_vm3, %v3876_v33, 0.0 }
 0x3f6   : > { %v3317_v4 = vpop.eup %3316  ;;  %v2014_v38 = vrot.slane %v2013_v28, 4  ;;  %v775_v45 = vmul.f32 0.35355338, %v772_v61 }
 0x3f7   : > { %v3319_v32 = vpop.eup %3318  ;;  %v3887_v41 = vadd.f32 %v483_v44, %v482_v37  ;;  %v776_v13 = vmul.f32 0.35355338, %v773_v39  ;;  %v777_v43 = vsel %vm718_vm6, %v774_v17, 0.0  ;;  %v1086_v5 = vadd.f32 0.0001, %v3317_v4 }
 0x3f8   : > { %v3321_v19 = vpop.eup %3320  ;;  %v2015_v6 = vmax.f32 %v2013_v28, %v2014_v38  ;;  %v778_v18 = vsel %vm718_vm6, %v775_v45, 0.0  ;;  %v812_v49 = vpack.c.bf16 %v775_v45, %v774_v17  ;;  %v1087_v51 = vadd.f32 0.0001, %v3319_v32  ;;  %vm4483_vm6 = vmmov %vm4480_vm9 }
 0x3f9   : > { %v813_v56 = vpack.c.bf16 %v776_v13, %v776_v13  ;;  %v780_v60 = vsel %vm725_vm7, %v776_v13, 0.0  ;;  %v779_v1 = vadd.f32 %v778_v18, %v777_v43  ;;  %v1088_v61 = vadd.f32 0.0001, %v3321_v19  ;;  %vm4484_vm7 = vmmov %vm4483_vm6 }
 0x3fa   : > { %816 = vrot.lane.b32.xlu1 %v812_v49, %s3453_s29  ;;  %v1089_v37 = vmul.f32 0.35355338, %v1086_v5  ;;  %v1090_v44 = vmul.f32 0.35355338, %v1087_v51  ;;  %v2332_v39 = vmax.f32 %v2330_v31, %v2331_v40  ;;  %v2016_v25 = vrot.slane %v2015_v6, 2  ;;  %vm4487_vm10 = vmmov %vm4483_vm6 }
 0x3fb   : > { %818 = vrot.lane.b32.xlu0 %v813_v56, %s3453_s29  ;;  %v781_v4 = vadd.f32 %v780_v60, %v779_v1  ;;  %v1091_v28 = vmul.f32 0.35355338, %v1088_v61  ;;  %v1051_v43 = vmul.f32 1.442695, %v1046_v59  ;;  %v3323_v1 = vpop.eup %3322  ;;  %vm4488_vm9 = vcmask 326912  }
 0x3fc   : > { %v1093_v38 = vsel %vm1033_vm8, %v1090_v44, 0.0  ;;  %v1127_v17 = vpack.c.bf16 %v1090_v44, %v1089_v37  ;;  %v1092_v23 = vsel %vm1033_vm8, %v1089_v37, 0.0  ;;  %v2017_v13 = vmax.f32 %v2015_v6, %v2016_v25  ;;  %v3325_v37 = vpop.eup %3324  ;;  %vm4485_vm8 = vmmov %vm4483_vm6 }
 0x3fd   : > { %v782_v45 = vrot.slane %v781_v4, 4  ;;  %v1094_v32 = vadd.f32 %v1093_v38, %v1092_v23  ;;  %v1128_v18 = vpack.c.bf16 %v1091_v28, %v1091_v28  ;;  %v1095_v5 = vsel %vm1040_vm15, %v1091_v28, 0.0  ;;  %vm4486_vm15 = vmmov %vm4483_vm6 }
 0x3fe   : > { %1131 = vrot.lane.b32.xlu1 %v1127_v17, %s3461_s14  ;;  %v2333_v31 = vrot.slane %v2332_v39, 1  ;;  %v2018_v19 = vrot.slane %v2017_v13, 1  ;;  %3326 = vpow2.f32 %v1051_v43  ;;  %v1054_v44 = vadd.f32 0.0001, %v3323_v1  ;;  %v3922_v1 = vpop.permute.xlu0 %2273 }
 0x3ff   : > { %v1096_v40 = vadd.f32 %v1095_v5, %v1094_v32  ;;  %v783_v49 = vadd.f32 %v782_v45, %v781_v4  ;;  %1133 = vrot.lane.b32.xlu0 %v1128_v18, %s3461_s14  ;;  %v1053_v45 = vadd.f32 0.0001, %v3325_v37 }
 0x400   : > { %v2019_v56 = vmax.f32 %v2017_v13, %v2018_v19  ;;  %v2334_v8 = vmax.f32 %v2332_v39, %v2333_v31  ;;  %v3903_v39 = vmul.f32 0.35355338, %v1054_v44 }
 0x401   : > { %v1097_v51 = vrot.slane %v1096_v40, 4  ;;  %v784_v60 = vrot.slane %v783_v49, 2 }
 0x402   : > { %3240 = vpush %v2019_v56 }
 0x403   : > { %v785_v59 = vadd.f32 %v784_v60, %v783_v49  ;;  %v1098_v25 = vadd.f32 %v1097_v51, %v1096_v40  ;;  %3242 = vpush %v2334_v8  ;;  %v393_v49 = vmul.f32 0.25, %v3570_v27 }
 0x405   : > { %v786_v6 = vrot.slane %v785_v59, 1  ;;  %v1099_v61 = vrot.slane %v1098_v25, 2  ;;  %v420_v56 = vsub.f32 %v3587_v54, %v393_v49 }
 0x407   : > { %v787_v28 = vadd.f32 %v786_v6, %v785_v59  ;;  %v1100_v38 = vadd.f32 %v1099_v61, %v1098_v25  ;;  %v434_v8 = vsub.f32 %v420_v56, %v3708_v20  ;;  %v2585_v61 = vpop.permute.xlu0 %2584 }
 0x408   : > { %v3327_v13 = vpop.eup %3326 }
 0x409   : > { %v789_v4 = vmul.f32 %v787_v28, %v3790_v9  ;;  %v788_v17 = vmul.f32 %v787_v28, %v3793_v10  ;;  %v1101_v23 = vrot.slane %v1100_v38, 1  ;;  %v790_v43 = vmul.f32 %v787_v28, %v3784_v46 }
 0x40a   : > { %v1055_v5 = vadd.f32 0.0001, %v3327_v13  ;;  %v3909_v9 = vmul.f32 0.35355338, %v1053_v45  ;;  %v485_v10 = vrot.slane %v3887_v41, 4 }
 0x40b   : > { %796 = vrot.lane.b32.xlu0 %v789_v4, %s3453_s29  ;;  %794 = vrot.lane.b32.xlu1 %v788_v17, %s3453_s29  ;;  %v1102_v32 = vadd.f32 %v1101_v23, %v1100_v38  ;;  %v439_v25 = vmul.f32 1.442695, %v434_v8 }
 0x40c   : > { %v3914_v40 = vmul.f32 0.35355338, %v1055_v5  ;;  %v486_v46 = vadd.f32 %v485_v10, %v3887_v41  ;;  %v3925_v41 = vpop.permute.xlu0 %2586  ;;  %v2589_v10 = vpop.permute.xlu1 %2588 }
 0x40d   : > { %v1104_v18 = vmul.f32 %v1102_v32, %v3903_v39  ;;  %v1103_v31 = vmul.f32 %v1102_v32, %v3909_v9  ;;  %3328 = vpow2.f32 %v439_v25 }
 0x40e   : > { %v1105_v19 = vmul.f32 %v1102_v32, %v3914_v40  ;;  %v487_v51 = vrot.slane %v486_v46, 2 }
 0x40f   : > { %798 = vrot.lane.b32.xlu1 %v790_v43, %s3453_s29  ;;  %1111 = vrot.lane.b32.xlu0 %v1104_v18, %s3461_s14  ;;  %s3470_s29 = smov 116  }
 0x410   : > { %v488_v60 = vadd.f32 %v487_v51, %v486_v46 }
 0x412   : > { %v489_v59 = vrot.slane %v488_v60, 1 }
 0x413   : > { %1109 = vrot.lane.b32.xlu1 %v1103_v31, %s3461_s14 }
 0x414   : > { %v490_v6 = vadd.f32 %v489_v59, %v488_v60 }
 0x416   : > { %v492_v37 = vmul.f32 %v490_v6, %v3737_v26  ;;  %v491_v20 = vmul.f32 %v490_v6, %v3735_v11 }
 0x417   : > { %1113 = vrot.lane.b32.xlu1 %v1105_v19, %s3461_s14  ;;  %v3329_v27 = vpop.eup %3328 }
 0x418   : > { %v497_v44 = vsel %vm421_vm4, %v492_v37, 0.0  ;;  %v443_v4 = vadd.f32 0.0001, %v3329_v27  ;;  %v494_v13 = vsel %vm421_vm4, %v491_v20, 0.0  ;;  %v1333_v27 = vsel %vm380_vm1, %v3821_v34, 0.0 }
 0x419   : > { %v1654_v34 = vsel %vm4485_vm8, %v3830_v47, 0.0  ;;  %v2284_v47 = vsel %vm4487_vm10, %v3922_v1, 0.0  ;;  %vm4491_vm8 = vcmask 458112   ;;  %vm3466_vm10 = vmmov 0  }
 0x41a   : > { %v3929_v45 = vmul.f32 0.35355338, %v443_v4  ;;  %v2593_v4 = vsel %vm380_vm1, %v2585_v61, 0.0  ;;  %v2596_v61 = vsel %vm380_vm1, %v3925_v41, 0.0 }
 0x41c   : > { %v493_v26 = vmul.f32 %v490_v6, %v3929_v45  ;;  %v1336_v6 = vsel %vm380_vm1, %v3825_v36, 0.0  ;;  %v1651_v36 = vsel %vm380_vm1, %v3828_v58, 0.0  ;;  %v1966_v58 = vsel %vm380_vm1, %v3868_v42, 0.0 }
 0x41e   : > { %v500_v5 = vsel %vm428_vm3, %v493_v26, 0.0 }
 0x42e   : > { %498 = vadd.xlane.f32.xlu0 %v497_v44  ;;  %v1339_v44 = vsel %vm4483_vm6, %v3819_v3, 0.0  ;;  %v2281_v3 = vsel %vm380_vm1, %v3858_v22, 0.0  ;;  %v2278_v22 = vsel %vm380_vm1, %v3845_v62, 0.0  ;;  %vm4489_vm6 = vmmov %vm4488_vm9 }
 0x432   : > { %v2643_v28 = vpop.xlane.xlu0 %2642 }
 0x433   : > { %v2644_v38 = vrot.slane %v2643_v28, 4  ;;  %s3241_s17 = spop %3240 }
 0x434   : > { %s3243_s19 = spop %3242 }
 0x435   : > { %v2645_v17 = vmax.f32 %v2643_v28, %v2644_v38  ;;  %v1648_v28 = vsel %vm380_vm1, %v3823_v35, 0.0  ;;  %v1969_v38 = vsel %vm4484_vm7, %v3832_v48, 0.0  ;;  %v1963_v35 = vsel %vm380_vm1, %v3843_v63, 0.0 }
 0x436   : > { %v2599_v48 = vsel %vm4486_vm15, %v2589_v10, 0.0  ;;  %vm4490_vm7 = vcmask 319744   ;;  %vm4492_vm15 = vmmov %vm4491_vm8 }
 0x437   : > { %v2646_v23 = vrot.slane %v2645_v17, 2 }
 0x439   : > { %v2647_v32 = vmax.f32 %v2645_v17, %v2646_v23 }
 0x43b   : > { %495 = vadd.xlane.f32.xlu1 %v494_v13  ;;  %v2648_v43 = vrot.slane %v2647_v32, 1 }
 0x43d   : > { %v2649_v18 = vmax.f32 %v2647_v32, %v2648_v43 }
 0x43f   : > { %501 = vadd.xlane.f32.xlu1 %v500_v5  ;;  %3244 = vpush %v2649_v18 }
 0x46c   : > { %v817_v31 = vpop.permute.xlu1 %816 }
 0x46d   : > { %822 = vxpose.xlu1.c.b16.start [1/2] (short) (narrow) %v817_v31, 16  ;;  %v819_v19 = vpop.permute.xlu0 %818 }
 0x470   : > { %v1132_v11 = vpop.permute.xlu1 %1131  ;;  %s3245_s20 = spop %3244 }
 0x471   : > { %823 = vxpose.xlu1.c.b16.end [2/2] (short) (narrow) %v819_v19, 16  ;;  %v1134_v46 = vpop.permute.xlu0 %1133  ;;  %v1391_v19 = vstv %s3237_s15 }
 0x475   : > { %1137 = vxpose.xlu1.c.b16.start [1/2] (short) (narrow) %v1132_v11, 16 }
 0x479   : > { %1138 = vxpose.xlu1.c.b16.end [2/2] (short) (narrow) %v1134_v46, 16 }
 0x47d   : > { %v797_v49 = vpop.permute.xlu0 %796  ;;  %v795_v51 = vpop.permute.xlu1 %794 }
 0x47e   : > { %v806_v56 = vsel %vm421_vm4, %v797_v49, 0.0  ;;  %v803_v59 = vsel %vm421_vm4, %v795_v51, 0.0 }
 0x47f   : > { %807 = vadd.xlane.f32.xlu0 %v806_v56 }
 0x481   : > { %v799_v60 = vpop.permute.xlu1 %798  ;;  %v1112_v63 = vpop.permute.xlu0 %1111 }
 0x482   : > { %v809_v8 = vsel %vm428_vm3, %v799_v60, 0.0  ;;  %v1121_v17 = vsel %vm421_vm4, %v1112_v63, 0.0 }
 0x483   : > { %810 = vadd.xlane.f32.xlu0 %v809_v8 }
 0x485   : > { %v1110_v25 = vpop.permute.xlu1 %1109 }
 0x486   : > { %804 = vadd.xlane.f32.xlu1 %v803_v59  ;;  %v1118_v37 = vsel %vm421_vm4, %v1110_v25, 0.0 }
 0x487   : > { %1337 = vadd.xlane.f32.xlu0 %v1336_v6 }
 0x489   : > { %v1114_v20 = vpop.permute.xlu1 %1113 }
 0x48a   : > { %1119 = vadd.xlane.f32.xlu1 %v1118_v37  ;;  %v1124_v42 = vsel %vm428_vm3, %v1114_v20, 0.0 }
 0x48b   : > { %1340 = vadd.xlane.f32.xlu0 %v1339_v44 }
 0x48e   : > { %1334 = vadd.xlane.f32.xlu1 %v1333_v27 }
 0x48f   : > { %1649 = vadd.xlane.f32.xlu0 %v1648_v28 }
 0x492   : > { %1970 = vadd.xlane.f32.xlu1 %v1969_v38  ;;  %v1706_v38 = vstv %s3239_s16 }
 0x493   : > { %1652 = vadd.xlane.f32.xlu0 %v1651_v36 }
 0x496   : > { %2282 = vadd.xlane.f32.xlu1 %v2281_v3 }
 0x497   : > { %1655 = vadd.xlane.f32.xlu0 %v1654_v34 }
 0x49a   : > { %2594 = vadd.xlane.f32.xlu1 %v2593_v4 }
 0x49b   : > { %1964 = vadd.xlane.f32.xlu0 %v1963_v35 }
 0x49e   : > { %2600 = vadd.xlane.f32.xlu1 %v2599_v48 }
 0x49f   : > { %1967 = vadd.xlane.f32.xlu0 %v1966_v58 }
 0x4a3   : > { %2279 = vadd.xlane.f32.xlu0 %v2278_v22  ;;  %v2021_v22 = vstv %s3241_s17 }
 0x4a7   : > { %2285 = vadd.xlane.f32.xlu0 %v2284_v47 }
 0x4ab   : > { %2597 = vadd.xlane.f32.xlu0 %v2596_v61 }
 0x4af   : > { %1122 = vadd.xlane.f32.xlu0 %v1121_v17 }
 0x4b3   : > { %1125 = vadd.xlane.f32.xlu0 %v1124_v42 }
 0x4bb   : > { %v3974_v1 = vpop.xlane.xlu0 %498 }
 0x4c8   : > { %v3968_v23 = vpop.xlane.xlu1 %495 }
 0x4cc   : > { %v3970_v62 = vpop.xlane.xlu1 %501 }
 0x4d3   : > { %v3972_v32 = vpop.trf.xlu1 }
 0x4db   : > { %v3978_v41 = vpop.trf.xlu1 }
 0x50c   : > { %v3976_v13 = vpop.xlane.xlu0 %807 }
 0x510   : > { %v3980_v26 = vpop.xlane.xlu0 %810 }
 0x513   : > { %v3982_v43 = vpop.xlane.xlu1 %804 }
 0x514   : > { %v1338_v18 = vpop.xlane.xlu0 %1337 }
 0x515   : > { %v1343_v5 = vmul.f32 0.25, %v1338_v18 }
 0x517   : > { %v1375_v10 = vsub.f32 %v3636_v21, %v1343_v5  ;;  %v3985_v31 = vpop.xlane.xlu1 %1119 }
 0x518   : > { %v1341_v11 = vpop.xlane.xlu0 %1340 }
 0x519   : > { %v1393_v46 = vsub.f32 %v1375_v10, %v1391_v19  ;;  %v1344_v49 = vmul.f32 0.25, %v1341_v11 }
 0x51b   : > { %v1397_v51 = vmul.f32 1.442695, %v1393_v46  ;;  %v1376_v56 = vsub.f32 %v3617_v2, %v1344_v49  ;;  %v1335_v60 = vpop.xlane.xlu1 %1334 }
 0x51c   : > { %v1342_v8 = vmul.f32 0.25, %v1335_v60  ;;  %v1650_v59 = vpop.xlane.xlu0 %1649  ;;  %v3994_v60 = vstv %s3243_s19 }
 0x51d   : > { %3330 = vpow2.f32 %v1397_v51  ;;  %v1394_v25 = vsub.f32 %v1376_v56, %v1391_v19  ;;  %v1657_v6 = vmul.f32 0.25, %v1650_v59 }
 0x51e   : > { %v1374_v37 = vsub.f32 %v3619_v7, %v1342_v8 }
 0x51f   : > { %v1399_v44 = vmul.f32 1.442695, %v1394_v25  ;;  %v1689_v27 = vsub.f32 %v3619_v7, %v1657_v6  ;;  %v1971_v28 = vpop.xlane.xlu1 %1970 }
 0x520   : > { %v1392_v36 = vsub.f32 %v1374_v37, %v1391_v19  ;;  %v1974_v3 = vmul.f32 0.25, %v1971_v28  ;;  %v1653_v34 = vpop.xlane.xlu0 %1652 }
 0x521   : > { %3332 = vpow2.f32 %v1399_v44  ;;  %v1707_v4 = vsub.f32 %v1689_v27, %v1706_v38  ;;  %v1658_v35 = vmul.f32 0.25, %v1653_v34 }
 0x522   : > { %v1395_v48 = vmul.f32 1.442695, %v1392_v36  ;;  %v2006_v58 = vsub.f32 %v3617_v2, %v1974_v3 }
 0x523   : > { %v1710_v47 = vmul.f32 1.442695, %v1707_v4  ;;  %v1690_v61 = vsub.f32 %v3636_v21, %v1658_v35  ;;  %v2283_v63 = vpop.xlane.xlu1 %2282 }
 0x524   : > { %3334 = vpow2.f32 %v1395_v48  ;;  %v2024_v17 = vsub.f32 %v2006_v58, %v2021_v22  ;;  %v2288_v20 = vmul.f32 0.25, %v2283_v63  ;;  %v1656_v42 = vpop.xlane.xlu0 %1655 }
 0x525   : > { %3336 = vpow2.f32 %v1710_v47  ;;  %v1708_v18 = vsub.f32 %v1690_v61, %v1706_v38  ;;  %v1659_v5 = vmul.f32 0.25, %v1656_v42 }
 0x526   : > { %v2320_v10 = vsub.f32 %v3636_v21, %v2288_v20  ;;  %v2029_v11 = vmul.f32 1.442695, %v2024_v17 }
 0x527   : > { %v3331_v19 = vpop.eup %3330  ;;  %v1712_v46 = vmul.f32 1.442695, %v1708_v18  ;;  %v1691_v49 = vsub.f32 %v3617_v2, %v1659_v5  ;;  %v2595_v51 = vpop.xlane.xlu1 %2594 }
 0x528   : > { %v1965_v56 = vpop.xlane.xlu0 %1964  ;;  %v1402_v25 = vadd.f32 0.0001, %v3331_v19  ;;  %v2338_v6 = vsub.f32 %v2320_v10, %v3994_v60  ;;  %v2602_v37 = vmul.f32 0.25, %v2595_v51  ;;  %v2651_v10 = vstv %s3245_s20 }
 0x529   : > { %3338 = vpow2.f32 %v1712_v46  ;;  %v1709_v8 = vsub.f32 %v1691_v49, %v1706_v38  ;;  %v1972_v59 = vmul.f32 0.25, %v1965_v56 }
 0x52a   : > { %3340 = vpow2.f32 %v2029_v11  ;;  %v2342_v38 = vmul.f32 1.442695, %v2338_v6  ;;  %v2634_v47 = vsub.f32 %v3619_v7, %v2602_v37  ;;  %v1405_v63 = vmul.f32 0.35355338, %v1402_v25 }
 0x52b   : > { %v3333_v44 = vpop.eup %3332  ;;  %v1714_v27 = vmul.f32 1.442695, %v1709_v8  ;;  %v2004_v28 = vsub.f32 %v3619_v7, %v1972_v59  ;;  %v2601_v36 = vpop.xlane.xlu1 %2600 }
 0x52c   : > { %v1403_v3 = vadd.f32 0.0001, %v3333_v44  ;;  %v2604_v34 = vmul.f32 0.25, %v2601_v36  ;;  %v1968_v4 = vpop.xlane.xlu0 %1967  ;;  %v2652_v56 = vsub.f32 %v2634_v47, %v2651_v10  ;;  %v1408_v44 = vsel %vm1348_vm11, %v1405_v63, 0.0 }
 0x52d   : > { %3342 = vpow2.f32 %v1714_v27  ;;  %v2022_v35 = vsub.f32 %v2004_v28, %v2021_v22  ;;  %v1973_v48 = vmul.f32 0.25, %v1968_v4 }
 0x52e   : > { %v3335_v58 = vpop.eup %3334  ;;  %v1406_v61 = vmul.f32 0.35355338, %v1403_v3  ;;  %v2636_v18 = vsub.f32 %v3617_v2, %v2604_v34 }
 0x52f   : > { %v3337_v17 = vpop.eup %3336  ;;  %v1401_v20 = vadd.f32 0.0001, %v3335_v58  ;;  %v2025_v42 = vmul.f32 1.442695, %v2022_v35  ;;  %v2005_v5 = vsub.f32 %v3636_v21, %v1973_v48  ;;  %v2655_v58 = vmul.f32 1.442695, %v2652_v56 }
 0x530   : > { %v1716_v19 = vadd.f32 0.0001, %v3337_v17  ;;  %v2280_v11 = vpop.xlane.xlu0 %2279  ;;  %v1443_v51 = vpack.c.bf16 %v1406_v61, %v1406_v61  ;;  %v2654_v6 = vsub.f32 %v2636_v18, %v2651_v10 }
 0x531   : > { %3344 = vpow2.f32 %v2025_v42  ;;  %v2023_v46 = vsub.f32 %v2005_v5, %v2021_v22  ;;  %v2287_v49 = vmul.f32 0.25, %v2280_v11  ;;  %v1404_v8 = vmul.f32 0.35355338, %v1401_v20 }
 0x532   : > { %3346 = vpow2.f32 %v2342_v38  ;;  %1448 = vrot.lane.b32.xlu1 %v1443_v51, %s3462_s21  ;;  %v1719_v3 = vmul.f32 0.35355338, %v1716_v19  ;;  %v2659_v17 = vmul.f32 1.442695, %v2654_v6 }
 0x533   : > { %v3339_v59 = vpop.eup %3338  ;;  %v2027_v25 = vmul.f32 1.442695, %v2023_v46  ;;  %v2319_v37 = vsub.f32 %v3619_v7, %v2287_v49  ;;  %v1442_v36 = vpack.c.bf16 %v1405_v63, %v1404_v8  ;;  %v1407_v22 = vsel %vm1348_vm11, %v1404_v8, 0.0 }
 0x534   : > { %v1717_v27 = vadd.f32 0.0001, %v3339_v59  ;;  %v2286_v28 = vpop.xlane.xlu0 %2285  ;;  %v3341_v34 = vpop.eup %3340  ;;  %v1409_v48 = vadd.f32 %v1408_v44, %v1407_v22  ;;  %v1410_v7 = vsel %vm1355_vm0, %v1406_v61, 0.0  ;;  %v1722_v51 = vsel %vm4489_vm6, %v1719_v3, 0.0 }
 0x535   : > { %3348 = vpow2.f32 %v2027_v25  ;;  %v2337_v4 = vsub.f32 %v2319_v37, %v3994_v60  ;;  %v2289_v35 = vmul.f32 0.25, %v2286_v28  ;;  %1446 = vrot.lane.b32.xlu0 %v1442_v36, %s3462_s21  ;;  %v2033_v18 = vadd.f32 0.0001, %v3341_v34 }
 0x536   : > { %v1720_v38 = vmul.f32 0.35355338, %v1717_v27  ;;  %v4009_v42 = vadd.f32 %v1410_v7, %v1409_v48  ;;  %vm4496_vm6 = vcmask 24576  }
 0x537   : > { %v3343_v47 = vpop.eup %3342  ;;  %v2340_v20 = vmul.f32 1.442695, %v2337_v4  ;;  %v2321_v63 = vsub.f32 %v3617_v2, %v2289_v35  ;;  %v2036_v28 = vmul.f32 0.35355338, %v2033_v18 }
 0x538   : > { %v1718_v5 = vadd.f32 0.0001, %v3343_v47  ;;  %v2598_v19 = vpop.xlane.xlu0 %2597  ;;  %v1723_v11 = vsel %vm4488_vm9, %v1720_v38, 0.0  ;;  %v1757_v46 = vpack.c.bf16 %v1720_v38, %v1719_v3  ;;  %vm534_vm9 = vcmask 138240  }
 0x539   : > { %3350 = vpow2.f32 %v2340_v20  ;;  %v2339_v49 = vsub.f32 %v2321_v63, %v3994_v60  ;;  %v2603_v61 = vmul.f32 0.25, %v2598_v19  ;;  %v1724_v56 = vadd.f32 %v1723_v11, %v1722_v51 }
 0x53a   : > { %3352 = vpow2.f32 %v2655_v58  ;;  %1761 = vrot.lane.b32.xlu1 %v1757_v46, %s3447_s25  ;;  %v1721_v8 = vmul.f32 0.35355338, %v1718_v5  ;;  %v2073_v35 = vpack.c.bf16 %v2036_v28, %v2036_v28  ;;  %v2040_v5 = vsel %vm1985_vm2, %v2036_v28, 0.0 }
 0x53b   : > { %v3345_v2 = vpop.eup %3344  ;;  %3354 = vpow2.f32 %v2659_v17  ;;  %v2344_v59 = vmul.f32 1.442695, %v2339_v49  ;;  %v2635_v6 = vsub.f32 %v3636_v21, %v2603_v61 }
 0x53c   : > { %v3347_v25 = vpop.eup %3346  ;;  %v2031_v37 = vadd.f32 0.0001, %v3345_v2  ;;  %v1725_v44 = vsel %vm4490_vm7, %v1721_v8, 0.0  ;;  %v1758_v27 = vpack.c.bf16 %v1721_v8, %v1721_v8  ;;  %vm4497_vm7 = vmmov %vm4496_vm6 }
 0x53d   : > { %3356 = vpow2.f32 %v2344_v59  ;;  %v2653_v60 = vsub.f32 %v2635_v6, %v2651_v10  ;;  %v4017_v36 = vadd.f32 %v1725_v44, %v1724_v56  ;;  %v2347_v3 = vadd.f32 0.0001, %v3347_v25 }
 0x53e   : > { %1763 = vrot.lane.b32.xlu0 %v1758_v27, %s3447_s25  ;;  %v2034_v48 = vmul.f32 0.35355338, %v2031_v37 }
 0x53f   : > { %v3349_v22 = vpop.eup %3348  ;;  %v2657_v34 = vmul.f32 1.442695, %v2653_v60  ;;  %v2350_v7 = vmul.f32 0.35355338, %v2347_v3 }
 0x540   : > { %v2032_v4 = vadd.f32 0.0001, %v3349_v22  ;;  %v2037_v10 = vsel %vm1978_vm13, %v2034_v48, 0.0 }
 0x541   : > { %3358 = vpow2.f32 %v2657_v34  ;;  %v2353_v8 = vsel %vm4492_vm15, %v2350_v7, 0.0  ;;  %vm4501_vm15 = vcmask 319744  }
 0x542   : > { %2078 = vrot.lane.b32.xlu0 %v2073_v35, %s3455_s4  ;;  %v2035_v21 = vmul.f32 0.35355338, %v2032_v4 }
 0x543   : > { %v3351_v58 = vpop.eup %3350 }
 0x544   : > { %v3353_v38 = vpop.eup %3352  ;;  %v2346_v47 = vadd.f32 0.0001, %v3351_v58  ;;  %v2038_v17 = vsel %vm1978_vm13, %v2035_v21, 0.0  ;;  %v2072_v20 = vpack.c.bf16 %v2035_v21, %v2034_v48 }
 0x545   : > { %v3355_v63 = vpop.eup %3354  ;;  %v2039_v18 = vadd.f32 %v2038_v17, %v2037_v10  ;;  %v2661_v46 = vadd.f32 0.0001, %v3353_v38  ;;  %v4493_v38 = vmov 0.0   ;;  %v504_v10 = vpack.c.bf16 %v3876_v33, %v3876_v33  ;;  %v4060_v17 = vpop.xlane.xlu0 %1122 }
 0x546   : > { %2076 = vrot.lane.b32.xlu1 %v2072_v20, %s3455_s4  ;;  %1155 = vrot.lane.b32.xlu0 %v3584_v53, %s3463_s22  ;;  %v2349_v19 = vmul.f32 0.35355338, %v2346_v47  ;;  %v2663_v59 = vadd.f32 0.0001, %v3355_v63  ;;  %v4494_v47 = vpack.c.bf16 %v3874_v29, %v3871_v52 }
 0x547   : > { %v3357_v11 = vpop.eup %3356  ;;  %v4026_v49 = vadd.f32 %v2040_v5, %v2039_v18  ;;  %v2664_v28 = vmul.f32 0.35355338, %v2661_v46  ;;  %3113 = vmatprep.mubr.msk.bf16.mxu0 %vm3466_vm10, %v4493_v38 }
 0x548   : > { %v2348_v61 = vadd.f32 0.0001, %v3357_v11  ;;  %v2352_v51 = vsel %vm4491_vm8, %v2349_v19, 0.0  ;;  %v2387_v56 = vpack.c.bf16 %v2350_v7, %v2349_v19  ;;  %v2666_v3 = vmul.f32 0.35355338, %v2663_v59  ;;  %vm4500_vm8 = vmmov %vm4496_vm6 }
 0x549   : > { %v2354_v2 = vadd.f32 %v2353_v8, %v2352_v51  ;;  %v2667_v35 = vsel %vm2608_vm14, %v2664_v28, 0.0  ;;  %v4062_v20 = vpop.xlane.xlu0 %1125 }
 0x54a   : > { %1153 = vrot.lane.b32.xlu1 %v3579_v50, %s3463_s22  ;;  %v2351_v6 = vmul.f32 0.35355338, %v2348_v61  ;;  %v2670_v21 = vsel %vm2615_vm12, %v2666_v3, 0.0  ;;  %v2703_v7 = vpack.c.bf16 %v2666_v3, %v2666_v3 }
 0x54b   : > { %v3359_v25 = vpop.eup %3358 }
 0x54c   : > { %v2662_v37 = vadd.f32 0.0001, %v3359_v25  ;;  %v2355_v44 = vsel %vm2300_vm5, %v2351_v6, 0.0  ;;  %v2388_v27 = vpack.c.bf16 %v2351_v6, %v2351_v6 }
 0x54d   : > { %v4032_v60 = vadd.f32 %v2355_v44, %v2354_v2 }
 0x54e   : > { %2393 = vrot.lane.b32.xlu0 %v2388_v27, %s3457_s6  ;;  %2391 = vrot.lane.b32.xlu1 %v2387_v56, %s3457_s6  ;;  %v2665_v22 = vmul.f32 0.35355338, %v2662_v37 }
 0x550   : > { %v2668_v34 = vsel %vm2608_vm14, %v2665_v22, 0.0  ;;  %v2702_v4 = vpack.c.bf16 %v2665_v22, %v2664_v28 }
 0x551   : > { %v2669_v48 = vadd.f32 %v2668_v34, %v2667_v35 }
 0x552   : > { %1468 = vrot.lane.b32.xlu1 %v3579_v50, %s3464_s23  ;;  %2706 = vrot.lane.b32.xlu0 %v2702_v4, %s3459_s8 }
 0x553   : > { %v4041_v58 = vadd.f32 %v2670_v21, %v2669_v48 }
 0x556   : > { %1470 = vrot.lane.b32.xlu1 %v3584_v53, %s3464_s23  ;;  %2708 = vrot.lane.b32.xlu0 %v2703_v7, %s3459_s8 }
 0x55a   : > { %1783 = vrot.lane.b32.xlu1 %v3579_v50, %s3465_s24 }
 0x55e   : > { %2098 = vrot.lane.b32.xlu1 %v3579_v50, %s3467_s26 }
 0x562   : > { %2413 = vrot.lane.b32.xlu1 %v3579_v50, %s3468_s27 }
 0x566   : > { %2415 = vrot.lane.b32.xlu1 %v3584_v53, %s3468_s27 }
 0x56a   : > { %2728 = vrot.lane.b32.xlu1 %v3579_v50, %s3469_s28 }
 0x574   : > { %505 = vxpose.xlu0.c.b16.start [1/2] (short) (narrow) %v4494_v47, 16 }
 0x578   : > { %506 = vxpose.xlu0.c.b16.end [2/2] (short) (narrow) %v504_v10, 16 }
 0x5a4   : > { %v1449_v63 = vpop.permute.xlu1 %1448 }
 0x5a7   : > { %v1447_v18 = vpop.permute.xlu0 %1446 }
 0x5a8   : > { %1452 = vxpose.xlu0.c.b16.start [1/2] (short) (narrow) %v1447_v18, 16 }
 0x5ac   : > { %v1762_v5 = vpop.permute.xlu1 %1761  ;;  %1453 = vxpose.xlu0.c.b16.end [2/2] (short) (narrow) %v1449_v63, 16  ;;  %v1352_v63 = vsel %vm1348_vm11, %v3591_v57, -inf }
 0x5ad   : > { %1767 = vxpose.xlu1.c.b16.start [1/2] (short) (narrow) %v1762_v5, 16 }
 0x5b0   : > { %v1764_v19 = vpop.permute.xlu0 %1763 }
 0x5b1   : > { %1768 = vxpose.xlu1.c.b16.end [2/2] (short) (narrow) %v1764_v19, 16 }
 0x5b4   : > { %v2079_v50 = vpop.permute.xlu0 %2078 }
 0x5b8   : > { %v2077_v11 = vpop.permute.xlu1 %2076  ;;  %v1156_v52 = vpop.permute.xlu0 %1155 }
 0x5b9   : > { %2082 = vxpose.xlu0.c.b16.start [1/2] (short) (narrow) %v2077_v11, 16  ;;  %v1162_v2 = vand.u32 %v1156_v52, %v3606_v0 }
 0x5bc   : > { %v1154_v29 = vpop.permute.xlu1 %1153 }
 0x5bd   : > { %2083 = vxpose.xlu0.c.b16.end [2/2] (short) (narrow) %v2079_v50, 16  ;;  %v1349_v50 = vsel %vm1348_vm11, %v3589_v55, -inf  ;;  %vm4498_vm11 = vcmask 326912  }
 0x5c0   : > { %v2394_v33 = vpop.permute.xlu0 %2393  ;;  %v2392_v46 = vpop.permute.xlu1 %2391 }
 0x5c1   : > { %2397 = vxpose.xlu1.c.b16.start [1/2] (short) (narrow) %v2392_v46, 16  ;;  %v1356_v46 = vsel %vm1355_vm0, %v3587_v54, -inf  ;;  %vm4499_vm0 = vmmov %vm4498_vm11 }
 0x5c4   : > { %v2707_v61 = vpop.permute.xlu0 %2706 }
 0x5c5   : > { %2398 = vxpose.xlu1.c.b16.end [2/2] (short) (narrow) %v2394_v33, 16 }
 0x5c6   : > { %1785 = vrot.lane.b32.xlu0 %v3584_v53, %s3465_s24 }
 0x5c8   : > { %v2709_v51 = vpop.permute.xlu0 %2708 }
 0x5c9   : > { %2712 = vxpose.xlu1.c.b16.start [1/2] (short) (narrow) %v2707_v61, 16 }
 0x5ca   : > { %2100 = vrot.lane.b32.xlu0 %v3584_v53, %s3467_s26 }
 0x5cd   : > { %2713 = vxpose.xlu1.c.b16.end [2/2] (short) (narrow) %v2709_v51, 16 }
 0x5ce   : > { %2730 = vrot.lane.b32.xlu0 %v3584_v53, %s3469_s28  ;;  %v4495_v53 = vld [vmem:[#allocation2_spill] sm:$0xff] }
 0x5cf   : > { %v847_v8 = vand.u32 %v4495_v53, %v3606_v0 }
 0x5d1   : > { %1303 = vrot.lane.b32.xlu1 %v3545_v15, %s3470_s29 }
 0x5d2   : > { %1620 = vrot.lane.b32.xlu0 %v3543_v14, %s3461_s14 }
 0x5d5   : > { %1305 = vrot.lane.b32.xlu1 %v3543_v14, %s3470_s29 }
 0x5d6   : > { %1935 = vrot.lane.b32.xlu0 %v3543_v14, %s3471_s30 }
 0x5d9   : > { %1307 = vrot.lane.b32.xlu1 %v3547_v16, %s3470_s29 }
 0x5da   : > { %v513_v56 = vpop.trf.xlu0  ;;  %2248 = vrot.lane.b32.xlu0 %v3545_v15, %s3462_s21 }
 0x5db   : > { %3114 = vmatmul.mubr.msk.bf16.vlgmr.msra.gmra.mrb[4].mxu0 %vm534_vm9, %v513_v56 }
 0x5dc   : > { %3124 = vmatpush3.bf16.msra.mxu0 %v3718_v30  ;;  %3127 = vmatprep.mubr.msk.bf16.mxu0 %vm3466_vm10, %v4493_v38  ;;  %v1469_v30 = vpop.permute.xlu1 %1468 }
 0x5dd   : > { %1618 = vrot.lane.b32.xlu1 %v3545_v15, %s3461_s14  ;;  %3125 = vmatprep.subr.bf16.mxu0 %v4493_v38 }
 0x5de   : > { %2252 = vrot.lane.b32.xlu0 %v3547_v16, %s3462_s21 }
 0x5e0   : > { %3126 = vmatpush3.bf16.msra.mxu0 %v847_v8  ;;  %v1471_v59 = vpop.permute.xlu1 %1470 }
 0x5e1   : > { %1622 = vrot.lane.b32.xlu1 %v3547_v16, %s3461_s14  ;;  %3137 = vmatprep.subr.bf16.mxu0 %v4493_v38 }
 0x5e2   : > { %2565 = vrot.lane.b32.xlu0 %v3543_v14, %s3472_s5 }
 0x5e3   : > { %3128 = vmatmul.mubr.msk.bf16.vlgmr.msra.gmra.mrb[8].mxu0 %vm534_vm9, %v3972_v32  ;;  %v1477_v32 = vand.u32 %v1471_v59, %v3606_v0  ;;  %v1671_v59 = vsel %vm4501_vm15, %v3587_v54, -inf  ;;  %vm1610_vm15 = vcmask 126048  }
 0x5e4   : > { %3138 = vmatpush3.bf16.msra.mxu0 %v1154_v29  ;;  %3141 = vmatprep.mubr.msk.bf16.mxu0 %vm3466_vm10, %v4493_v38 }
 0x5e5   : > { %3139 = vmatprep.subr.bf16.mxu0 %v4493_v38  ;;  %1933 = vrot.lane.b32.xlu1 %v3545_v15, %s3471_s30 }
 0x5e8   : > { %3140 = vmatpush3.bf16.msra.mxu0 %v1162_v2 }
 0x5e9   : > { %3151 = vmatprep.subr.bf16.mxu0 %v4493_v38  ;;  %1937 = vrot.lane.b32.xlu1 %v3547_v16, %s3471_s30 }
 0x5eb   : > { %3142 = vmatmul.mubr.msk.bf16.vlgmr.msra.gmra.mrb[12].mxu0 %vm534_vm9, %v3978_v41  ;;  %v1784_v41 = vpop.permute.xlu1 %1783 }
 0x5ec   : > { %3152 = vmatpush3.bf16.msra.mxu0 %v1469_v30  ;;  %3155 = vmatprep.mubr.msk.bf16.mxu0 %vm3466_vm10, %v4493_v38  ;;  %v1664_v30 = vsel %vm4499_vm0, %v3589_v55, -inf  ;;  %vm1295_vm0 = vcmask 93248  }
 0x5ed   : > { %3153 = vmatprep.subr.bf16.mxu0 %v4493_v38  ;;  %2250 = vrot.lane.b32.xlu1 %v3543_v14, %s3462_s21 }
 0x5ef   : > { %v2099_v14 = vpop.permute.xlu1 %2098 }
 0x5f0   : > { %3154 = vmatpush3.bf16.msra.mxu0 %v1477_v32 }
 0x5f1   : > { %2563 = vrot.lane.b32.xlu1 %v3545_v15, %s3472_s5  ;;  %3165 = vmatprep.subr.bf16.mxu0 %v4493_v38 }
 0x5f3   : > { %v2414_v25 = vpop.permute.xlu1 %2413 }
 0x5f5   : > { %2567 = vrot.lane.b32.xlu1 %v3547_v16, %s3472_s5 }
 0x5f7   : > { %v2416_v37 = vpop.permute.xlu1 %2415 }
 0x5f8   : > { %v2422_v47 = vand.u32 %v2416_v37, %v3606_v0 }
 0x5fb   : > { %v2729_v44 = vpop.permute.xlu1 %2728 }
 0x60e   : > { %v1460_v6 = vpop.trf.xlu0 }
 0x60f   : > { %3156 = vmatmul.mubr.msk.bf16.vlgmr.msra.gmra.mrb[16].mxu0 %vm534_vm9, %v1460_v6 }
 0x610   : > { %3166 = vmatpush3.bf16.msra.mxu0 %v1784_v41  ;;  %3169 = vmatprep.mubr.msk.bf16.mxu0 %vm3466_vm10, %v4493_v38  ;;  %v1982_v41 = vsel %vm1978_vm13, %v3591_v57, -inf }
 0x611   : > { %3167 = vmatprep.subr.bf16.mxu0 %v4493_v38 }
 0x613   : > { %v1775_v27 = vpop.trf.xlu1 }
 0x61f   : > { %v2090_v15 = vpop.trf.xlu0 }
 0x627   : > { %v2405_v28 = vpop.trf.xlu1 }
 0x62f   : > { %v2720_v3 = vpop.trf.xlu1 }
 0x638   : > { %v1786_v22 = vpop.permute.xlu0 %1785 }
 0x639   : > { %v1792_v16 = vand.u32 %v1786_v22, %v3606_v0 }
 0x63b   : > { %3168 = vmatpush3.bf16.msra.mxu0 %v1792_v16 }
 0x63c   : > { %3179 = vmatprep.subr.bf16.mxu0 %v4493_v38  ;;  %v2101_v34 = vpop.permute.xlu0 %2100 }
 0x63d   : > { %v2107_v4 = vand.u32 %v2101_v34, %v3606_v0 }
 0x63e   : > { %3170 = vmatmul.mubr.msk.bf16.vlgmr.msra.gmra.mrb[20].mxu0 %vm534_vm9, %v1775_v27 }
 0x63f   : > { %3180 = vmatpush3.bf16.msra.mxu0 %v2099_v14  ;;  %3183 = vmatprep.mubr.msk.bf16.mxu0 %vm3466_vm10, %v4493_v38 }
 0x640   : > { %3181 = vmatprep.subr.bf16.mxu0 %v4493_v38  ;;  %v2731_v5 = vpop.permute.xlu0 %2730 }
 0x641   : > { %v2737_v52 = vand.u32 %v2731_v5, %v3606_v0  ;;  %v1667_v0 = vsel %vm4498_vm11, %v3591_v57, -inf  ;;  %v1205_v5 = vpack.c.bf16 %v3914_v40, %v3914_v40 }
 0x643   : > { %3182 = vmatpush3.bf16.msra.mxu0 %v2107_v4  ;;  %v1304_v35 = vpop.permute.xlu1 %1303 }
 0x644   : > { %v1312_v48 = vsel %vm380_vm1, %v1304_v35, 0.0  ;;  %3193 = vmatprep.subr.bf16.mxu0 %v4493_v38  ;;  %v1621_v33 = vpop.permute.xlu0 %1620 }
 0x645   : > { %1313 = vadd.xlane.f32.xlu0 %v1312_v48  ;;  %v1630_v51 = vsel %vm380_vm1, %v1621_v33, 0.0 }
 0x646   : > { %3184 = vmatmul.mubr.msk.bf16.vlgmr.msra.gmra.mrb[24].mxu0 %vm534_vm9, %v2090_v15  ;;  %v1986_v15 = vsel %vm1985_vm2, %v3587_v54, -inf  ;;  %vm668_vm2 = vsmask.f32 256 }
 0x647   : > { %3194 = vmatpush3.bf16.msra.mxu0 %v2414_v25  ;;  %v1306_v21 = vpop.permute.xlu1 %1305  ;;  %3197 = vmatprep.mubr.msk.bf16.mxu0 %vm3466_vm10, %v4493_v38 }
 0x648   : > { %v1315_v7 = vsel %vm380_vm1, %v1306_v21, 0.0  ;;  %3195 = vmatprep.subr.bf16.mxu0 %v4493_v38  ;;  %v1936_v8 = vpop.permute.xlu0 %1935  ;;  %v2301_v21 = vsel %vm2300_vm5, %v3587_v54, -inf  ;;  %vm664_vm5 = vcmask 27648  }
 0x649   : > { %1316 = vadd.xlane.f32.xlu1 %v1315_v7  ;;  %v1945_v6 = vsel %vm380_vm1, %v1936_v8, 0.0 }
 0x64b   : > { %3196 = vmatpush3.bf16.msra.mxu0 %v2422_v47  ;;  %v1308_v10 = vpop.permute.xlu1 %1307  ;;  %v2612_v47 = vsel %vm2608_vm14, %v3591_v57, -inf }
 0x64c   : > { %v1318_v18 = vsel %vm4496_vm6, %v1308_v10, 0.0  ;;  %3207 = vmatprep.subr.bf16.mxu0 %v4493_v38  ;;  %v2249_v32 = vpop.permute.xlu0 %2248  ;;  %v2609_v10 = vsel %vm2608_vm14, %v3589_v55, -inf }
 0x64d   : > { %1353 = vmax.xlane.f32.xlu1 %v1352_v63  ;;  %1319 = vadd.xlane.f32.xlu0 %v1318_v18  ;;  %v2257_v14 = vsel %vm380_vm1, %v2249_v32, 0.0  ;;  %v2616_v63 = vsel %vm2615_vm12, %v3587_v54, -inf  ;;  %v1204_v18 = vpack.c.bf16 %v3903_v39, %v3909_v9  ;;  %v585_v39 = vpack.c.bf16 %v3929_v45, %v3929_v45  ;;  %vm4505_vm12 = vmmov %vm4496_vm6 }
 0x64e   : > { %3198 = vmatmul.mubr.msk.bf16.vlgmr.msra.gmra.mrb[28].mxu0 %vm534_vm9, %v2405_v28  ;;  %v1412_v32 = vrot.slane %v4009_v42, 4  ;;  %vm669_vm14 = vmand %vm4505_vm12, %vm668_vm2 }
 0x64f   : > { %3208 = vmatpush3.bf16.msra.mxu0 %v2729_v44  ;;  %v1619_v19 = vpop.permute.xlu1 %1618  ;;  %3211 = vmatprep.mubr.msk.bf16.mxu0 %vm3466_vm10, %v4493_v38  ;;  %v1979_v44 = vsel %vm1978_vm13, %v3589_v55, -inf  ;;  %vm4502_vm10 = vmmov %vm4496_vm6 }
 0x650   : > { %v1627_v11 = vsel %vm380_vm1, %v1619_v19, 0.0  ;;  %3209 = vmatprep.subr.bf16.mxu0 %v4493_v38  ;;  %v2253_v25 = vpop.permute.xlu0 %2252 }
 0x651   : > { %1350 = vmax.xlane.f32.xlu0 %v1349_v50  ;;  %1628 = vadd.xlane.f32.xlu1 %v1627_v11  ;;  %v2263_v27 = vsel %vm4502_vm10, %v2253_v25, 0.0 }
 0x653   : > { %3210 = vmatpush3.bf16.msra.mxu0 %v2737_v52  ;;  %v1623_v29 = vpop.permute.xlu1 %1622 }
 0x654   : > { %v1633_v61 = vsel %vm4497_vm7, %v1623_v29, 0.0  ;;  %v2566_v48 = vpop.permute.xlu0 %2565  ;;  %vm983_vm7 = vcmask 57376  }
 0x655   : > { %1357 = vmax.xlane.f32.xlu0 %v1356_v46  ;;  %1634 = vadd.xlane.f32.xlu1 %v1633_v61  ;;  %v2575_v7 = vsel %vm380_vm1, %v2566_v48, 0.0  ;;  %vm984_vm11 = vmand %vm983_vm7, %vm668_vm2 }
 0x656   : > { %3212 = vmatmul.mubr.msk.bf16.vlgmr.msra.gmra.mrb[32].mxu0 %vm534_vm9, %v2720_v3  ;;  %vm4503_vm9 = vcmask 458112  }
 0x657   : > { %v1934_v56 = vpop.permute.xlu1 %1933  ;;  %v2297_v16 = vsel %vm4503_vm9, %v3591_v57, -inf  ;;  %vm4504_vm13 = vmmov %vm4503_vm9  ;;  %vm1613_vm9 = vcmask 122976  }
 0x658   : > { %v1942_v38 = vsel %vm380_vm1, %v1934_v56, 0.0  ;;  %v2294_v4 = vsel %vm4504_vm13, %v3589_v55, -inf  ;;  %vm1614_vm13 = vmand %vm1613_vm9, %vm668_vm2 }
 0x659   : > { %1631 = vadd.xlane.f32.xlu0 %v1630_v51  ;;  %1668 = vmax.xlane.f32.xlu1 %v1667_v0 }
 0x65b   : > { %v1938_v53 = vpop.permute.xlu1 %1937 }
 0x65c   : > { %v1948_v2 = vsel %vm4500_vm8, %v1938_v53, 0.0  ;;  %vm1298_vm8 = vcmask 90176  }
 0x65d   : > { %1665 = vmax.xlane.f32.xlu0 %v1664_v30  ;;  %1943 = vadd.xlane.f32.xlu1 %v1942_v38  ;;  %vm1299_vm10 = vmand %vm1298_vm8, %vm668_vm2  ;;  %vm2873_vm8 = vcmask 254176  }
 0x65f   : > { %v2251_v37 = vpop.permute.xlu1 %2250 }
 0x660   : > { %v2260_v22 = vsel %vm380_vm1, %v2251_v37, 0.0  ;;  %v1413_v37 = vadd.f32 %v1412_v32, %v4009_v42 }
 0x661   : > { %1672 = vmax.xlane.f32.xlu0 %v1671_v59  ;;  %1949 = vadd.xlane.f32.xlu1 %v1948_v2 }
 0x663   : > { %v2564_v28 = vpop.permute.xlu1 %2563 }
 0x664   : > { %v2572_v3 = vsel %vm380_vm1, %v2564_v28, 0.0  ;;  %vm593_vm1 = vcmask 1043456  }
 0x665   : > { %1946 = vadd.xlane.f32.xlu0 %v1945_v6  ;;  %1983 = vmax.xlane.f32.xlu1 %v1982_v41 }
 0x667   : > { %v2568_v34 = vpop.permute.xlu1 %2567 }
 0x668   : > { %v2578_v35 = vsel %vm4496_vm6, %v2568_v34, 0.0  ;;  %vm1925_vm6 = vcmask 158848  }
 0x669   : > { %1980 = vmax.xlane.f32.xlu0 %v1979_v44  ;;  %2258 = vadd.xlane.f32.xlu1 %v2257_v14 }
 0x66d   : > { %1987 = vmax.xlane.f32.xlu0 %v1986_v15  ;;  %2264 = vadd.xlane.f32.xlu1 %v2263_v27 }
 0x671   : > { %2298 = vmax.xlane.f32.xlu1 %v2297_v16  ;;  %2261 = vadd.xlane.f32.xlu0 %v2260_v22 }
 0x675   : > { %2295 = vmax.xlane.f32.xlu0 %v2294_v4  ;;  %2573 = vadd.xlane.f32.xlu1 %v2572_v3  ;;  %v1414_v3 = vrot.slane %v1413_v37, 2 }
 0x679   : > { %2302 = vmax.xlane.f32.xlu0 %v2301_v21  ;;  %2579 = vadd.xlane.f32.xlu1 %v2578_v35 }
 0x67d   : > { %2576 = vadd.xlane.f32.xlu0 %v2575_v7  ;;  %2613 = vmax.xlane.f32.xlu1 %v2612_v47  ;;  %v1415_v47 = vadd.f32 %v1414_v3, %v1413_v37 }
 0x681   : > { %2610 = vmax.xlane.f32.xlu0 %v2609_v10 }
 0x685   : > { %2617 = vmax.xlane.f32.xlu0 %v2616_v63 }
 0x68e   : > { %1209 = vrot.lane.b32.xlu1 %v1204_v18, %s3461_s14 }
 0x69b   : > { %1211 = vrot.lane.b32.xlu0 %v1205_v5, %s3461_s14 }
 0x6ae   : > { %v578_v19 = vpop.f32.mrb[4].mxu0 }
 0x6af   : > { %v586_v50 = vpack.c.bf16 %v578_v19, %v578_v19  ;;  %v3115_v11 = vpop.f32.mrb[5].mxu0 }
 0x6b0   : > { %v581_v52 = vpop.f32.mrb[6].mxu0 }
 0x6b1   : > { %v595_v29 = vsel %vm593_vm1, %v586_v50, 0  ;;  %3221 = vmatprep.subr.msk.bf16.mxu1 %vm593_vm1, %v586_v50  ;;  %v3116_v33 = vpop.f32.mrb[7].mxu0 }
 0x6b2   : > { %3118 = vmatpush3.bf16.msra.mxu1 %v595_v29  ;;  %v1727_v29 = vrot.slane %v4017_v36, 4  ;;  %v1416_v33 = vrot.slane %v1415_v47, 1 }
 0x6b5   : > { %3120 = vmatmul.mubr.msk.bf16.vlgmr.msra.gmra.mrb[4].mxu1 %vm421_vm4, %v585_v39 }
 0x6b6   : > { %v883_v9 = vpop.f32.mrb[8].mxu0  ;;  %3133 = vmatprep.mubr.msk.bf16.mxu1 %vm421_vm4, %v3862_v24 }
 0x6b7   : > { %v891_v40 = vpack.c.bf16 %v883_v9, %v883_v9  ;;  %v3129_v46 = vpop.f32.mrb[9].mxu0 }
 0x6b8   : > { %v886_v61 = vpop.f32.mrb[10].mxu0 }
 0x6b9   : > { %v905_v51 = vsel %vm593_vm1, %v891_v40, 0  ;;  %v3130_v56 = vpop.f32.mrb[11].mxu0  ;;  %3222 = vmatprep.subr.msk.bf16.mxu1 %vm593_vm1, %v891_v40 }
 0x6ba   : > { %3132 = vmatpush3.bf16.msra.mxu1 %v905_v51 }
 0x6bd   : > { %3134 = vmatmul.mubr.msk.bf16.vlgmr.msra.gmra.mrb[8].mxu1 %vm421_vm4, %v3856_v12 }
 0x6be   : > { %v1198_v0 = vpop.f32.mrb[12].mxu0 }
 0x6bf   : > { %v1206_v45 = vpack.c.bf16 %v1198_v0, %v1198_v0  ;;  %v3143_v38 = vpop.f32.mrb[13].mxu0 }
 0x6c0   : > { %v1201_v53 = vpop.f32.mrb[14].mxu0  ;;  %v1728_v38 = vadd.f32 %v1727_v29, %v4017_v36 }
 0x6c1   : > { %v1220_v8 = vsel %vm593_vm1, %v1206_v45, 0  ;;  %v3144_v30 = vpop.f32.mrb[15].mxu0  ;;  %3223 = vmatprep.subr.msk.bf16.mxu1 %vm593_vm1, %v1206_v45  ;;  %v1417_v53 = vadd.f32 %v1416_v33, %v1415_v47 }
 0x6c2   : > { %3146 = vmatpush3.bf16.msra.mxu1 %v1220_v8  ;;  %v1729_v37 = vrot.slane %v1728_v38, 2 }
 0x6d2   : > { %v1314_v24 = vpop.xlane.xlu0 %1313 }
 0x6d3   : > { %v1321_v6 = vmul.f32 0.25, %v1314_v24 }
 0x6d5   : > { %v1345_v15 = vsub.f32 %v3589_v55, %v1321_v6 }
 0x6d6   : > { %v1317_v2 = vpop.xlane.xlu1 %1316 }
 0x6d7   : > { %v1322_v59 = vmul.f32 0.25, %v1317_v2 }
 0x6d9   : > { %v1346_v41 = vsub.f32 %v3591_v57, %v1322_v59 }
 0x6da   : > { %v1320_v14 = vpop.xlane.xlu0 %1319  ;;  %v1354_v12 = vpop.xlane.xlu1 %1353 }
 0x6db   : > { %v1360_v25 = vsub.f32 %v1346_v41, %v1354_v12  ;;  %v1323_v44 = vmul.f32 0.25, %v1320_v14 }
 0x6dd   : > { %v1364_v27 = vmul.f32 1.442695, %v1360_v25  ;;  %v1347_v4 = vsub.f32 %v3587_v54, %v1323_v44 }
 0x6de   : > { %v1351_v28 = vpop.xlane.xlu0 %1350  ;;  %v1629_v22 = vpop.xlane.xlu1 %1628 }
 0x6df   : > { %3360 = vpow2.f32 %v1364_v27  ;;  %v1359_v16 = vsub.f32 %v1345_v15, %v1351_v28  ;;  %v1636_v63 = vmul.f32 0.25, %v1629_v22 }
 0x6e1   : > { %v1362_v34 = vmul.f32 1.442695, %v1359_v16  ;;  %v1660_v46 = vsub.f32 %v3589_v55, %v1636_v63 }
 0x6e2   : > { %v1358_v35 = vpop.xlane.xlu0 %1357  ;;  %v1635_v48 = vpop.xlane.xlu1 %1634 }
 0x6e3   : > { %3362 = vpow2.f32 %v1362_v34  ;;  %v1361_v21 = vsub.f32 %v1347_v4, %v1358_v35  ;;  %v1513_v7 = vpop.f32.mrb[16].mxu0  ;;  %v1638_v9 = vmul.f32 0.25, %v1635_v48  ;;  %v2042_v4 = vrot.slane %v4026_v49, 4 }
 0x6e4   : > { %v4206_v10 = vpack.c.bf16 %v1513_v7, %v1513_v7  ;;  %v3157_v42 = vpop.f32.mrb[17].mxu0  ;;  %v1730_v48 = vadd.f32 %v1729_v37, %v1728_v38  ;;  %v2357_v37 = vrot.slane %v4032_v60, 4 }
 0x6e5   : > { %v1366_v18 = vmul.f32 1.442695, %v1361_v21  ;;  %v1516_v5 = vpop.f32.mrb[18].mxu0  ;;  %v1662_v59 = vsub.f32 %v3587_v54, %v1638_v9 }
 0x6e6   : > { %v1632_v19 = vpop.xlane.xlu0 %1631  ;;  %v1669_v50 = vpop.xlane.xlu1 %1668  ;;  %3224 = vmatprep.subr.msk.bf16.mxu1 %vm593_vm1, %v4206_v10 }
 0x6e7   : > { %3364 = vpow2.f32 %v1366_v18  ;;  %v1637_v11 = vmul.f32 0.25, %v1632_v19  ;;  %v3158_v52 = vpop.f32.mrb[19].mxu0 }
 0x6e8   : > { %v2043_v52 = vadd.f32 %v2042_v4, %v4026_v49 }
 0x6e9   : > { %v3361_v39 = vpop.eup %3360  ;;  %v1661_v40 = vsub.f32 %v3591_v57, %v1637_v11  ;;  %v1731_v11 = vrot.slane %v1730_v48, 1 }
 0x6ea   : > { %v1369_v61 = vadd.f32 0.0001, %v3361_v39  ;;  %v1666_v51 = vpop.xlane.xlu0 %1665  ;;  %v1944_v56 = vpop.xlane.xlu1 %1943 }
 0x6eb   : > { %v1675_v0 = vsub.f32 %v1661_v40, %v1669_v50  ;;  %v1674_v45 = vsub.f32 %v1660_v46, %v1666_v51  ;;  %v1951_v27 = vmul.f32 0.25, %v1944_v56 }
 0x6ec   : > { %v1372_v8 = vmul.f32 0.35355338, %v1369_v61 }
 0x6ed   : > { %v3363_v30 = vpop.eup %3362  ;;  %v1679_v24 = vmul.f32 1.442695, %v1675_v0  ;;  %v1677_v2 = vmul.f32 1.442695, %v1674_v45  ;;  %v1975_v47 = vsub.f32 %v3589_v55, %v1951_v27  ;;  %v1732_v45 = vadd.f32 %v1731_v11, %v1730_v48 }
 0x6ee   : > { %v4215_v32 = vmul.f32 %v1417_v53, %v1372_v8  ;;  %v1368_v6 = vadd.f32 0.0001, %v3363_v30  ;;  %v1673_v41 = vpop.xlane.xlu0 %1672  ;;  %v1950_v14 = vpop.xlane.xlu1 %1949 }
 0x6ef   : > { %3366 = vpow2.f32 %v1679_v24  ;;  %v1676_v12 = vsub.f32 %v1662_v59, %v1673_v41  ;;  %v1953_v21 = vmul.f32 0.25, %v1950_v14 }
 0x6f0   : > { %v1371_v25 = vmul.f32 0.35355338, %v1368_v6  ;;  %3368 = vpow2.f32 %v1677_v2 }
 0x6f1   : > { %v3365_v44 = vpop.eup %3364  ;;  %v1681_v36 = vmul.f32 1.442695, %v1676_v12  ;;  %v1977_v9 = vsub.f32 %v3587_v54, %v1953_v21 }
 0x6f2   : > { %v4217_v15 = vmul.f32 %v1417_v53, %v1371_v25  ;;  %v1519_v28 = vpack.c.bf16 %v1372_v8, %v1371_v25  ;;  %v1370_v22 = vadd.f32 0.0001, %v3365_v44  ;;  %v1947_v16 = vpop.xlane.xlu0 %1946  ;;  %v1984_v3 = vpop.xlane.xlu1 %1983 }
 0x6f3   : > { %3370 = vpow2.f32 %v1681_v36  ;;  %v1952_v34 = vmul.f32 0.25, %v1947_v16 }
 0x6f4   : > { %v1373_v35 = vmul.f32 0.35355338, %v1370_v22  ;;  %1524 = vrot.lane.b32.xlu1 %v1519_v28, %s3462_s21 }
 0x6f5   : > { %v1976_v7 = vsub.f32 %v3591_v57, %v1952_v34 }
 0x6f6   : > { %v4223_v42 = vmul.f32 %v1417_v53, %v1373_v35  ;;  %v1520_v63 = vpack.c.bf16 %v1373_v35, %v1373_v35  ;;  %v1981_v18 = vpop.xlane.xlu0 %1980  ;;  %v2259_v5 = vpop.xlane.xlu1 %2258  ;;  %v2044_v53 = vrot.slane %v2043_v52, 2 }
 0x6f7   : > { %v1990_v19 = vsub.f32 %v1976_v7, %v1984_v3  ;;  %v1989_v50 = vsub.f32 %v1975_v47, %v1981_v18  ;;  %v2266_v30 = vmul.f32 0.25, %v2259_v5  ;;  %v2358_v7 = vadd.f32 %v2357_v37, %v4032_v60 }
 0x6f8   : > { %1526 = vrot.lane.b32.xlu1 %v1520_v63, %s3462_s21  ;;  %v2045_v27 = vadd.f32 %v2044_v53, %v2043_v52 }
 0x6f9   : > { %v3367_v29 = vpop.eup %3366  ;;  %v1994_v33 = vmul.f32 1.442695, %v1990_v19  ;;  %v1992_v39 = vmul.f32 1.442695, %v1989_v50  ;;  %v2290_v22 = vsub.f32 %v3589_v55, %v2266_v30  ;;  %v2672_v30 = vrot.slane %v4041_v58, 4 }
 0x6fa   : > { %v3369_v40 = vpop.eup %3368  ;;  %v1684_v46 = vadd.f32 0.0001, %v3367_v29  ;;  %v1988_v61 = vpop.xlane.xlu0 %1987  ;;  %v2046_v21 = vrot.slane %v2045_v27, 1 }
 0x6fb   : > { %v2265_v51 = vpop.xlane.xlu1 %2264  ;;  %v1683_v56 = vadd.f32 0.0001, %v3369_v40  ;;  %3372 = vpow2.f32 %v1994_v33  ;;  %v1991_v0 = vsub.f32 %v1977_v9, %v1988_v61  ;;  %v2359_v40 = vrot.slane %v2358_v7, 2 }
 0x6fc   : > { %v1687_v38 = vmul.f32 0.35355338, %v1684_v46  ;;  %3374 = vpow2.f32 %v1992_v39  ;;  %v2268_v36 = vmul.f32 0.25, %v2265_v51  ;;  %v2047_v39 = vadd.f32 %v2046_v21, %v2045_v27 }
 0x6fd   : > { %v3371_v8 = vpop.eup %3370  ;;  %v1686_v49 = vmul.f32 0.35355338, %v1683_v56  ;;  %v1996_v24 = vmul.f32 1.442695, %v1991_v0 }
 0x6fe   : > { %v4228_v2 = vmul.f32 %v1732_v45, %v1687_v38  ;;  %v1685_v59 = vadd.f32 0.0001, %v3371_v8  ;;  %v2262_v6 = vpop.xlane.xlu0 %2261  ;;  %v2292_v5 = vsub.f32 %v3587_v54, %v2268_v36 }
 0x6ff   : > { %v2299_v41 = vpop.xlane.xlu1 %2298  ;;  %v4230_v14 = vmul.f32 %v1732_v45, %v1686_v49  ;;  %v1834_v12 = vpack.c.bf16 %v1687_v38, %v1686_v49  ;;  %3376 = vpow2.f32 %v1996_v24  ;;  %v2267_v25 = vmul.f32 0.25, %v2262_v6 }
 0x700   : > { %v1688_v44 = vmul.f32 0.35355338, %v1685_v59  ;;  %v2360_v59 = vadd.f32 %v2359_v40, %v2358_v7 }
 0x701   : > { %v2291_v28 = vsub.f32 %v3591_v57, %v2267_v25  ;;  %1839 = vrot.lane.b32.xlu0 %v1834_v12, %s3447_s25 }
 0x702   : > { %v4236_v16 = vmul.f32 %v1732_v45, %v1688_v44  ;;  %v1835_v3 = vpack.c.bf16 %v1688_v44, %v1688_v44  ;;  %v2296_v34 = vpop.xlane.xlu0 %2295 }
 0x703   : > { %v2574_v4 = vpop.xlane.xlu1 %2573  ;;  %v2305_v35 = vsub.f32 %v2291_v28, %v2299_v41  ;;  %v2304_v48 = vsub.f32 %v2290_v22, %v2296_v34  ;;  %v2673_v22 = vadd.f32 %v2672_v30, %v4041_v58 }
 0x704   : > { %1841 = vrot.lane.b32.xlu1 %v1835_v3, %s3447_s25  ;;  %v2581_v61 = vmul.f32 0.25, %v2574_v4  ;;  %v2361_v3 = vrot.slane %v2360_v59, 1 }
 0x705   : > { %v3373_v47 = vpop.eup %3372  ;;  %v2309_v63 = vmul.f32 1.442695, %v2305_v35  ;;  %v2307_v18 = vmul.f32 1.442695, %v2304_v48  ;;  %v2674_v58 = vrot.slane %v2673_v22, 2 }
 0x706   : > { %v3375_v19 = vpop.eup %3374  ;;  %v1999_v50 = vadd.f32 0.0001, %v3373_v47  ;;  %v2303_v11 = vpop.xlane.xlu0 %2302  ;;  %v2605_v12 = vsub.f32 %v3589_v55, %v2581_v61 }
 0x707   : > { %v2580_v52 = vpop.xlane.xlu1 %2579  ;;  %v1998_v29 = vadd.f32 0.0001, %v3375_v19  ;;  %3378 = vpow2.f32 %v2309_v63  ;;  %v2306_v33 = vsub.f32 %v2292_v5, %v2303_v11  ;;  %v2362_v19 = vadd.f32 %v2361_v3, %v2360_v59 }
 0x708   : > { %v2002_v9 = vmul.f32 0.35355338, %v1999_v50  ;;  %3380 = vpow2.f32 %v2307_v18  ;;  %v2583_v6 = vmul.f32 0.25, %v2580_v52 }
 0x709   : > { %v3377_v46 = vpop.eup %3376  ;;  %v2001_v60 = vmul.f32 0.35355338, %v1998_v29  ;;  %v2311_v51 = vmul.f32 1.442695, %v2306_v33  ;;  %v1535_v33 = vsel %vm593_vm1, %v4206_v10, 0 }
 0x70a   : > { %v4241_v56 = vmul.f32 %v2047_v39, %v2002_v9  ;;  %v2000_v0 = vadd.f32 0.0001, %v3377_v46  ;;  %v2577_v45 = vpop.xlane.xlu0 %2576  ;;  %v2607_v55 = vsub.f32 %v3587_v54, %v2583_v6 }
 0x70b   : > { %v2614_v38 = vpop.xlane.xlu1 %2613  ;;  %v4243_v53 = vmul.f32 %v2047_v39, %v2001_v60  ;;  %v2149_v8 = vpack.c.bf16 %v2002_v9, %v2001_v60  ;;  %3382 = vpow2.f32 %v2311_v51  ;;  %v2582_v49 = vmul.f32 0.25, %v2577_v45 }
 0x70c   : > { %v2003_v24 = vmul.f32 0.35355338, %v2000_v0  ;;  %v2675_v0 = vadd.f32 %v2674_v58, %v2673_v22 }
 0x70d   : > { %v2606_v41 = vsub.f32 %v3591_v57, %v2582_v49  ;;  %2154 = vrot.lane.b32.xlu0 %v2149_v8, %s3455_s4 }
 0x70e   : > { %v4249_v25 = vmul.f32 %v2047_v39, %v2003_v24  ;;  %v2150_v37 = vpack.c.bf16 %v2003_v24, %v2003_v24  ;;  %v2611_v44 = vpop.xlane.xlu0 %2610  ;;  %v2676_v30 = vrot.slane %v2675_v0, 1 }
 0x70f   : > { %v1210_v27 = vpop.permute.xlu1 %1209  ;;  %v2620_v36 = vsub.f32 %v2606_v41, %v2614_v38  ;;  %v2619_v28 = vsub.f32 %v2605_v12, %v2611_v44 }
 0x710   : > { %3147 = vmatprep.mubr.msk.bf16.mxu1 %vm421_vm4, %v1210_v27  ;;  %2156 = vrot.lane.b32.xlu1 %v2150_v37, %s3455_s4  ;;  %v2677_v37 = vadd.f32 %v2676_v30, %v2675_v0 }
 0x711   : > { %v3379_v34 = vpop.eup %3378  ;;  %v2624_v57 = vmul.f32 1.442695, %v2620_v36  ;;  %v2622_v4 = vmul.f32 1.442695, %v2619_v28  ;;  %v1828_v35 = vpop.f32.mrb[20].mxu0 }
 0x712   : > { %v3381_v48 = vpop.eup %3380  ;;  %v2314_v21 = vadd.f32 0.0001, %v3379_v34  ;;  %v3171_v7 = vpop.f32.mrb[21].mxu0  ;;  %v1836_v61 = vpack.c.bf16 %v1828_v35, %v1828_v35 }
 0x713   : > { %v2618_v47 = vpop.xlane.xlu0 %2617  ;;  %v2313_v63 = vadd.f32 0.0001, %v3381_v48  ;;  %3384 = vpow2.f32 %v2624_v57  ;;  %v1831_v5 = vpop.f32.mrb[22].mxu0 }
 0x714   : > { %v2621_v18 = vsub.f32 %v2607_v55, %v2618_v47  ;;  %v2317_v50 = vmul.f32 0.35355338, %v2314_v21  ;;  %3386 = vpow2.f32 %v2622_v4  ;;  %v3172_v11 = vpop.f32.mrb[23].mxu0  ;;  %v1850_v58 = vsel %vm593_vm1, %v1836_v61, 0 }
 0x715   : > { %v3383_v52 = vpop.eup %3382  ;;  %v2316_v29 = vmul.f32 0.35355338, %v2313_v63 }
 0x716   : > { %v2626_v39 = vmul.f32 1.442695, %v2621_v18  ;;  %v4257_v54 = vmul.f32 %v2362_v19, %v2317_v50  ;;  %v2315_v9 = vadd.f32 0.0001, %v3383_v52 }
 0x717   : > { %v1212_v40 = vpop.permute.xlu0 %1211  ;;  %v4259_v46 = vmul.f32 %v2362_v19, %v2316_v29  ;;  %v2464_v60 = vpack.c.bf16 %v2317_v50, %v2316_v29 }
 0x718   : > { %3388 = vpow2.f32 %v2626_v39  ;;  %3148 = vmatmul.mubr.msk.bf16.vlgmr.msra.gmra.mrb[12].mxu1 %vm421_vm4, %v1212_v40  ;;  %v2318_v51 = vmul.f32 0.35355338, %v2315_v9 }
 0x719   : > { %3160 = vmatpush3.bf16.msra.mxu1 %v1535_v33  ;;  %2469 = vrot.lane.b32.xlu0 %v2464_v60, %s3457_s6  ;;  %v2143_v10 = vpop.f32.mrb[24].mxu0  ;;  %3390 = vrcp.f32 %v3970_v62 }
 0x71a   : > { %3225 = vmatprep.subr.msk.bf16.mxu1 %vm593_vm1, %v1836_v61  ;;  %v4264_v45 = vmul.f32 %v2362_v19, %v2318_v51  ;;  %v2465_v38 = vpack.c.bf16 %v2318_v51, %v2318_v51  ;;  %v3185_v8 = vpop.f32.mrb[25].mxu0  ;;  %v2151_v11 = vpack.c.bf16 %v2143_v10, %v2143_v10  ;;  %3392 = vrcp.f32 %v3968_v23  ;;  %v670_v61 = vld [vmem:[%s4300_s10 + $0x8] sm:$0x1] }
 0x71b   : > { %v2146_v49 = vpop.f32.mrb[26].mxu0  ;;  %3394 = vrcp.f32 %v3974_v1 }
 0x71c   : > { %v3186_v24 = vpop.f32.mrb[27].mxu0  ;;  %2471 = vrot.lane.b32.xlu1 %v2465_v38, %s3457_s6 }
 0x71d   : > { %v3385_v59 = vpop.eup %3384 }
 0x71e   : > { %v3387_v6 = vpop.eup %3386  ;;  %v2629_v41 = vadd.f32 0.0001, %v3385_v59 }
 0x71f   : > { %v2628_v12 = vadd.f32 0.0001, %v3387_v6 }
 0x720   : > { %v2632_v44 = vmul.f32 0.35355338, %v2629_v41 }
 0x721   : > { %v2631_v36 = vmul.f32 0.35355338, %v2628_v12  ;;  %v2458_v28 = vpop.f32.mrb[28].mxu0 }
 0x722   : > { %v3389_v27 = vpop.eup %3388  ;;  %v4267_v22 = vmul.f32 %v2677_v37, %v2632_v44  ;;  %v3199_v34 = vpop.f32.mrb[29].mxu0 }
 0x723   : > { %v2630_v3 = vadd.f32 0.0001, %v3389_v27  ;;  %v4269_v57 = vmul.f32 %v2677_v37, %v2631_v36  ;;  %v2779_v4 = vpack.c.bf16 %v2632_v44, %v2631_v36  ;;  %v2461_v35 = vpop.f32.mrb[30].mxu0  ;;  %v3391_v23 = vpop.eup %3390 }
 0x724   : > { %v3200_v48 = vpop.f32.mrb[31].mxu0  ;;  %v3393_v40 = vpop.eup %3392 }
 0x725   : > { %v2633_v55 = vmul.f32 0.35355338, %v2630_v3  ;;  %2784 = vrot.lane.b32.xlu0 %v2779_v4, %s3459_s8  ;;  %v3395_v10 = vpop.eup %3394 }
 0x727   : > { %v4272_v21 = vmul.f32 %v2677_v37, %v2633_v55  ;;  %v2780_v7 = vpack.c.bf16 %v2633_v55, %v2633_v55 }
 0x729   : > { %2786 = vrot.lane.b32.xlu1 %v2780_v7, %s3459_s8  ;;  %1426 = vrot.lane.b32.xlu0 %v4215_v32, %s3462_s21  ;;  %v2773_v47 = vpop.f32.mrb[32].mxu0 }
 0x72a   : > { %v3213_v63 = vpop.f32.mrb[33].mxu0  ;;  %v2781_v9 = vpack.c.bf16 %v2773_v47, %v2773_v47 }
 0x72b   : > { %v2776_v18 = vpop.f32.mrb[34].mxu0 }
 0x72c   : > { %v3214_v5 = vpop.f32.mrb[35].mxu0  ;;  %v2795_v12 = vsel %vm593_vm1, %v2781_v9, 0 }
 0x72d   : > { %1424 = vrot.lane.b32.xlu1 %v4217_v15, %s3462_s21  ;;  %v2165_v15 = vsel %vm593_vm1, %v2151_v11, 0 }
 0x731   : > { %1428 = vrot.lane.b32.xlu1 %v4223_v42, %s3462_s21  ;;  %v2466_v42 = vpack.c.bf16 %v2458_v28, %v2458_v28 }
 0x733   : > { %v2480_v39 = vsel %vm593_vm1, %v2466_v42, 0 }
 0x766   : > { %v1525_v19 = vpop.permute.xlu1 %1524 }
 0x767   : > { %3161 = vmatprep.mubr.msk.bf16.mxu1 %vm421_vm4, %v1525_v19 }
 0x76a   : > { %v1527_v50 = vpop.permute.xlu1 %1526 }
 0x76b   : > { %3162 = vmatmul.mubr.msk.bf16.vlgmr.msra.gmra.mrb[16].mxu1 %vm421_vm4, %v1527_v50 }
 0x76c   : > { %3174 = vmatpush3.bf16.msra.mxu1 %v1850_v58 }
 0x76d   : > { %3226 = vmatprep.subr.msk.bf16.mxu1 %vm593_vm1, %v2151_v11 }
 0x773   : > { %v1840_v32 = vpop.permute.xlu0 %1839 }
 0x774   : > { %3175 = vmatprep.mubr.msk.bf16.mxu1 %vm421_vm4, %v1840_v32 }
 0x776   : > { %v1842_v52 = vpop.permute.xlu1 %1841 }
 0x777   : > { %3176 = vmatmul.mubr.msk.bf16.vlgmr.msra.gmra.mrb[20].mxu1 %vm421_vm4, %v1842_v52 }
 0x778   : > { %3188 = vmatpush3.bf16.msra.mxu1 %v2165_v15 }
 0x779   : > { %3227 = vmatprep.subr.msk.bf16.mxu1 %vm593_vm1, %v2466_v42 }
 0x77f   : > { %v2155_v29 = vpop.permute.xlu0 %2154 }
 0x780   : > { %3189 = vmatprep.mubr.msk.bf16.mxu1 %vm421_vm4, %v2155_v29 }
 0x782   : > { %v2157_v33 = vpop.permute.xlu1 %2156 }
 0x783   : > { %3190 = vmatmul.mubr.msk.bf16.vlgmr.msra.gmra.mrb[24].mxu1 %vm421_vm4, %v2157_v33 }
 0x784   : > { %3202 = vmatpush3.bf16.msra.mxu1 %v2480_v39 }
 0x785   : > { %3228 = vmatprep.subr.msk.bf16.mxu1 %vm593_vm1, %v2781_v9  ;;  %vm1928_vm1 = vcmask 155776  }
 0x786   : > { %vm1929_vm12 = vmand %vm1928_vm1, %vm668_vm2 }
 0x788   : > { %v3121_v62 = vpop.f32.mrb[4].mxu1 }
 0x789   : > { %v650_v1 = vmul.f32 %v3391_v23, %v3121_v62  ;;  %v631_v60 = vpop.f32.mrb[5].mxu1 }
 0x78a   : > { %v646_v51 = vmul.f32 %v3393_v40, %v631_v60  ;;  %v3122_v0 = vpop.f32.mrb[6].mxu1 }
 0x78b   : > { %v3015_v38 = vpack.c.bf16 %v650_v1, %v650_v1  ;;  %v2470_v8 = vpop.permute.xlu0 %2469  ;;  %v634_v49 = vpop.f32.mrb[7].mxu1 }
 0x78c   : > { %v3013_v30 = vpack.c.bf16 %v646_v51, %v646_v51  ;;  %v648_v24 = vmul.f32 %v3395_v10, %v634_v49  ;;  %3203 = vmatprep.mubr.msk.bf16.mxu1 %vm421_vm4, %v2470_v8 }
 0x78d   : > { %v671_v59 = vsel %vm669_vm14, %v3015_v38, %v670_v61  ;;  %vm2555_vm14 = vcmask 224448  }
 0x78e   : > { %672 = vst [vmem:[%s4300_s10 + $0x8] sm:$0x1] %v671_v59  ;;  %665 = vst.msk [vmem:[%s4300_s10] sm:$0xf] %vm664_vm5, %v3013_v30  ;;  %v3014_v6 = vpack.c.bf16 %v648_v24, %v648_v24  ;;  %v2472_v41 = vpop.permute.xlu1 %2471 }
 0x78f   : > { %3204 = vmatmul.mubr.msk.bf16.vlgmr.msra.gmra.mrb[28].mxu1 %vm421_vm4, %v2472_v41 }
 0x790   : > { %666 = vst.msk [vmem:[%s4300_s10 + $0x4] sm:$0xf] %vm664_vm5, %v3014_v6  ;;  %3216 = vmatpush3.bf16.msra.mxu1 %v2795_v12  ;;  %v4311_v37 = vpop.f32.mrb[8].mxu1  ;;  %vm2243_vm5 = vcmask 188576  }
 0x791   : > { %v4313_v44 = vpop.f32.mrb[9].mxu1  ;;  %vm2244_vm7 = vmand %vm2243_vm5, %vm668_vm2 }
 0x792   : > { %v3136_v27 = vpop.f32.mrb[10].mxu1 }
 0x793   : > { %v4315_v36 = vpop.f32.mrb[11].mxu1 }
 0x797   : > { %v2785_v28 = vpop.permute.xlu0 %2784 }
 0x798   : > { %3217 = vmatprep.mubr.msk.bf16.mxu1 %vm421_vm4, %v2785_v28 }
 0x79b   : > { %v2787_v3 = vpop.permute.xlu1 %2786  ;;  %v1427_v34 = vpop.permute.xlu0 %1426 }
 0x79c   : > { %3218 = vmatmul.mubr.msk.bf16.vlgmr.msra.gmra.mrb[32].mxu1 %vm421_vm4, %v2787_v3  ;;  %v1436_v4 = vsel %vm421_vm4, %v1427_v34, 0.0 }
 0x79d   : > { %1437 = vadd.xlane.f32.xlu1 %v1436_v4 }
 0x79f   : > { %v1425_v35 = vpop.permute.xlu1 %1424 }
 0x7a0   : > { %v1433_v55 = vsel %vm421_vm4, %v1425_v35, 0.0 }
 0x7a1   : > { %1434 = vadd.xlane.f32.xlu0 %v1433_v55 }
 0x7a3   : > { %v1429_v48 = vpop.permute.xlu1 %1428 }
 0x7a4   : > { %v1439_v7 = vsel %vm428_vm3, %v1429_v48, 0.0 }
 0x7a5   : > { %1440 = vadd.xlane.f32.xlu0 %v1439_v7 }
 0x7ae   : > { %1741 = vrot.lane.b32.xlu1 %v4228_v2, %s3447_s25 }
 0x7bb   : > { %1739 = vrot.lane.b32.xlu0 %v4230_v14, %s3447_s25 }
 0x7bf   : > { %1743 = vrot.lane.b32.xlu0 %v4236_v16, %s3447_s25  ;;  %s3474_s25 = smov 12  }
 0x7eb   : > { %v4328_v47 = vpop.f32.mrb[12].mxu1 }
 0x7ec   : > { %v4330_v63 = vpop.f32.mrb[13].mxu1 }
 0x7ed   : > { %v3150_v18 = vpop.f32.mrb[14].mxu1 }
 0x7ee   : > { %v1259_v5 = vpop.f32.mrb[15].mxu1 }
 0x82a   : > { %v1438_v19 = vpop.xlane.xlu1 %1437 }
 0x82e   : > { %v1435_v50 = vpop.xlane.xlu0 %1434  ;;  %v1742_v58 = vpop.permute.xlu1 %1741 }
 0x82f   : > { %v1751_v11 = vsel %vm421_vm4, %v1742_v58, 0.0  ;;  %3396 = vrcp.f32 %v1435_v50 }
 0x830   : > { %1752 = vadd.xlane.f32.xlu0 %v1751_v11  ;;  %3398 = vrcp.f32 %v4060_v17 }
 0x832   : > { %v1441_v32 = vpop.xlane.xlu0 %1440 }
 0x833   : > { %3400 = vrcp.f32 %v1441_v32 }
 0x834   : > { %3402 = vrcp.f32 %v1438_v19 }
 0x836   : > { %v1740_v2 = vpop.permute.xlu0 %1739 }
 0x837   : > { %v1748_v14 = vsel %vm421_vm4, %v1740_v2, 0.0 }
 0x838   : > { %1749 = vadd.xlane.f32.xlu1 %v1748_v14 }
 0x839   : > { %v3397_v42 = vpop.eup %3396 }
 0x83a   : > { %v1744_v52 = vpop.permute.xlu0 %1743 }
 0x83b   : > { %v1754_v16 = vsel %vm428_vm3, %v1744_v52, 0.0 }
 0x83c   : > { %1755 = vadd.xlane.f32.xlu0 %v1754_v16 }
 0x83e   : > { %v3163_v15 = vpop.f32.mrb[16].mxu1 }
 0x83f   : > { %v1571_v29 = vpop.f32.mrb[17].mxu1 }
 0x840   : > { %v4335_v33 = vmul.f32 %v3397_v42, %v1571_v29  ;;  %v3164_v39 = vpop.f32.mrb[18].mxu1 }
 0x841   : > { %v1574_v9 = vpop.f32.mrb[19].mxu1 }
 0x849   : > { %2054 = vrot.lane.b32.xlu1 %v4243_v53, %s3455_s4 }
 0x84a   : > { %v3177_v23 = vpop.f32.mrb[20].mxu1 }
 0x84b   : > { %v1886_v62 = vpop.f32.mrb[21].mxu1 }
 0x84c   : > { %v3178_v40 = vpop.f32.mrb[22].mxu1 }
 0x84d   : > { %2056 = vrot.lane.b32.xlu1 %v4241_v56, %s3455_s4  ;;  %v1889_v1 = vpop.f32.mrb[23].mxu1 }
 0x851   : > { %2373 = vrot.lane.b32.xlu1 %v4264_v45, %s3457_s6 }
 0x852   : > { %2058 = vrot.lane.b32.xlu0 %v4249_v25, %s3455_s4  ;;  %v3399_v25 = vpop.eup %3398  ;;  %s3475_s4 = smov 16  }
 0x855   : > { %2369 = vrot.lane.b32.xlu1 %v4259_v46, %s3457_s6  ;;  %v1273_v46 = vmul.f32 %v3399_v25, %v1259_v5 }
 0x856   : > { %v4347_v60 = vpop.f32.mrb[24].mxu1 }
 0x857   : > { %v4350_v53 = vpop.f32.mrb[25].mxu1  ;;  %v3020_v10 = vpack.c.bf16 %v1273_v46, %v1273_v46 }
 0x858   : > { %v3192_v61 = vpop.f32.mrb[26].mxu1 }
 0x859   : > { %2371 = vrot.lane.b32.xlu1 %v4257_v54, %s3457_s6  ;;  %v4354_v56 = vpop.f32.mrb[27].mxu1  ;;  %v3401_v54 = vpop.eup %3400  ;;  %s3476_s6 = smov 4  }
 0x85a   : > { %v1590_v38 = vmul.f32 %v3401_v54, %v3163_v15  ;;  %v985_v54 = vld [vmem:[%s4300_s10 + $0x8] sm:$0x1] }
 0x85d   : > { %2688 = vrot.lane.b32.xlu1 %v4272_v21, %s3459_s8  ;;  %v3403_v21 = vpop.eup %3402 }
 0x85e   : > { %v1588_v8 = vmul.f32 %v3403_v21, %v1574_v9 }
 0x860   : > { %v3023_v49 = vpack.c.bf16 %v1588_v8, %v1588_v8 }
 0x861   : > { %2684 = vrot.lane.b32.xlu1 %v4269_v57, %s3459_s8  ;;  %v3024_v57 = vpack.c.bf16 %v1590_v38, %v1590_v38 }
 0x862   : > { %v4360_v45 = vpop.f32.mrb[28].mxu1 }
 0x863   : > { %v4362_v17 = vpop.f32.mrb[29].mxu1 }
 0x864   : > { %v3206_v51 = vpop.f32.mrb[30].mxu1 }
 0x865   : > { %2686 = vrot.lane.b32.xlu1 %v4267_v22, %s3459_s8  ;;  %v4366_v0 = vpop.f32.mrb[31].mxu1  ;;  %s3477_s8 = smov 20  }
 0x869   : > { %1288 = vrot.lane.b32.xlu1 %v3020_v10, %s3473_s18 }
 0x86d   : > { %1605 = vrot.lane.b32.xlu1 %v3024_v57, %s3474_s25 }
 0x86f   : > { %v4370_v30 = vpop.f32.mrb[32].mxu1 }
 0x870   : > { %v4372_v24 = vpop.f32.mrb[33].mxu1 }
 0x871   : > { %v3220_v22 = vpop.f32.mrb[34].mxu1  ;;  %1603 = vrot.lane.b32.xlu1 %v3023_v49, %s3474_s25 }
 0x872   : > { %v4375_v59 = vpop.f32.mrb[35].mxu1 }
 0x8bd   : > { %v1753_v6 = vpop.xlane.xlu0 %1752 }
 0x8be   : > { %3404 = vrcp.f32 %v1753_v6 }
 0x8c5   : > { %v1750_v41 = vpop.xlane.xlu1 %1749 }
 0x8c6   : > { %3406 = vrcp.f32 %v1750_v41 }
 0x8c8   : > { %v3405_v12 = vpop.eup %3404 }
 0x8c9   : > { %v1756_v27 = vpop.xlane.xlu0 %1755  ;;  %v2055_v28 = vpop.permute.xlu1 %2054  ;;  %v1903_v34 = vmul.f32 %v3405_v12, %v1889_v1 }
 0x8ca   : > { %3408 = vrcp.f32 %v1756_v27  ;;  %v2063_v3 = vsel %vm421_vm4, %v2055_v28, 0.0 }
 0x8cb   : > { %2064 = vadd.xlane.f32.xlu0 %v2063_v3  ;;  %3410 = vrcp.f32 %v3980_v26  ;;  %v3026_v25 = vpack.c.bf16 %v1903_v34, %v1903_v34 }
 0x8cc   : > { %3412 = vrcp.f32 %v3982_v43 }
 0x8cd   : > { %3414 = vrcp.f32 %v3976_v13  ;;  %v2057_v16 = vpop.permute.xlu1 %2056 }
 0x8ce   : > { %3416 = vrcp.f32 %v4062_v20  ;;  %v2066_v42 = vsel %vm421_vm4, %v2057_v16, 0.0 }
 0x8cf   : > { %3418 = vrcp.f32 %v3985_v31 }
 0x8d0   : > { %v3407_v4 = vpop.eup %3406 }
 0x8d1   : > { %v1901_v7 = vmul.f32 %v3407_v4, %v1886_v62 }
 0x8d3   : > { %v3025_v19 = vpack.c.bf16 %v1901_v7, %v1901_v7 }
 0x8d4   : > { %v3409_v35 = vpop.eup %3408 }
 0x8d5   : > { %v1905_v55 = vmul.f32 %v3409_v35, %v3177_v23  ;;  %v3411_v18 = vpop.eup %3410 }
 0x8d6   : > { %v960_v5 = vmul.f32 %v3411_v18, %v4311_v37  ;;  %v3413_v26 = vpop.eup %3412 }
 0x8d7   : > { %v3027_v48 = vpack.c.bf16 %v1905_v55, %v1905_v55  ;;  %v956_v43 = vmul.f32 %v3413_v26, %v4313_v44  ;;  %v3415_v13 = vpop.eup %3414  ;;  %v3022_v44 = vpack.c.bf16 %v4335_v33, %v4335_v33  ;;  %v2059_v33 = vpop.permute.xlu0 %2058 }
 0x8d8   : > { %v3018_v50 = vpack.c.bf16 %v960_v5, %v960_v5  ;;  %v958_v11 = vmul.f32 %v3415_v13, %v4315_v36  ;;  %v3417_v32 = vpop.eup %3416  ;;  %v4394_v36 = vpop.permute.xlu1 %2373  ;;  %v2069_v1 = vsel %vm428_vm3, %v2059_v33, 0.0 }
 0x8d9   : > { %1920 = vrot.lane.b32.xlu1 %v3027_v48, %s3475_s4  ;;  %v3016_v58 = vpack.c.bf16 %v956_v43, %v956_v43  ;;  %v1275_v2 = vmul.f32 %v3417_v32, %v4328_v47  ;;  %v3419_v20 = vpop.eup %3418  ;;  %v2384_v18 = vsel %vm428_vm3, %v4394_v36, 0.0 }
 0x8da   : > { %v3017_v37 = vpack.c.bf16 %v958_v11, %v958_v11  ;;  %v1271_v52 = vmul.f32 %v3419_v20, %v4330_v63 }
 0x8db   : > { %v3021_v14 = vpack.c.bf16 %v1275_v2, %v1275_v2 }
 0x8dc   : > { %v3019_v31 = vpack.c.bf16 %v1271_v52, %v1271_v52  ;;  %v2370_v15 = vpop.permute.xlu1 %2369 }
 0x8dd   : > { %1916 = vrot.lane.b32.xlu1 %v3025_v19, %s3475_s4  ;;  %v2378_v63 = vsel %vm421_vm4, %v2370_v15, 0.0 }
 0x8e0   : > { %v2372_v47 = vpop.permute.xlu1 %2371 }
 0x8e1   : > { %975 = vrot.lane.b32.xlu0 %v3018_v50, %s3476_s6  ;;  %v2381_v39 = vsel %vm421_vm4, %v2372_v47, 0.0 }
 0x8e4   : > { %v2689_v29 = vpop.permute.xlu1 %2688 }
 0x8e5   : > { %971 = vrot.lane.b32.xlu0 %v3016_v58, %s3476_s6  ;;  %v2699_v23 = vsel %vm428_vm3, %v2689_v29, 0.0  ;;  %vm2240_vm3 = vcmask 191648  }
 0x8e8   : > { %v2685_v9 = vpop.permute.xlu1 %2684 }
 0x8e9   : > { %973 = vrot.lane.b32.xlu0 %v3017_v37, %s3476_s6  ;;  %v2693_v62 = vsel %vm421_vm4, %v2685_v9, 0.0 }
 0x8ec   : > { %v2687_v40 = vpop.permute.xlu1 %2686 }
 0x8ed   : > { %1290 = vrot.lane.b32.xlu0 %v3021_v14, %s3473_s18  ;;  %v2696_v61 = vsel %vm421_vm4, %v2687_v40, 0.0  ;;  %vm980_vm4 = vcmask 60448  }
 0x8f0   : > { %v1289_v51 = vpop.permute.xlu1 %1288 }
 0x8f1   : > { %1286 = vrot.lane.b32.xlu0 %v3019_v31, %s3473_s18 }
 0x8f4   : > { %v1606_v21 = vpop.permute.xlu1 %1605 }
 0x8f5   : > { %1601 = vrot.lane.b32.xlu0 %v3022_v44, %s3474_s25 }
 0x8f8   : > { %v1604_v6 = vpop.permute.xlu1 %1603 }
 0x901   : > { %2067 = vadd.xlane.f32.xlu1 %v2066_v42 }
 0x905   : > { %2379 = vadd.xlane.f32.xlu1 %v2378_v63 }
 0x909   : > { %2382 = vadd.xlane.f32.xlu1 %v2381_v39 }
 0x90d   : > { %2700 = vadd.xlane.f32.xlu1 %v2699_v23 }
 0x911   : > { %2694 = vadd.xlane.f32.xlu1 %v2693_v62 }
 0x914   : > { %2070 = vadd.xlane.f32.xlu0 %v2069_v1 }
 0x915   : > { %2697 = vadd.xlane.f32.xlu1 %v2696_v61 }
 0x92a   : > { %1918 = vrot.lane.b32.xlu0 %v3026_v25, %s3475_s4 }
 0x94b   : > { %v1921_v28 = vpop.permute.xlu1 %1920 }
 0x94f   : > { %v1917_v4 = vpop.permute.xlu1 %1916 }
 0x958   : > { %v2065_v46 = vpop.xlane.xlu0 %2064 }
 0x959   : > { %3420 = vrcp.f32 %v2065_v46 }
 0x95c   : > { %v976_v10 = vpop.permute.xlu0 %975 }
 0x95d   : > { %v986_v38 = vsel %vm984_vm11, %v976_v10, %v985_v54  ;;  %vm2870_vm11 = vcmask 257248  }
 0x95e   : > { %987 = vst [vmem:[%s4300_s10 + $0x8] sm:$0x1] %v986_v38 }
 0x960   : > { %v972_v57 = vpop.permute.xlu0 %971 }
 0x961   : > { %981 = vst.msk [vmem:[%s4300_s10] sm:$0xf] %vm980_vm4, %v972_v57 }
 0x963   : > { %v3421_v8 = vpop.eup %3420 }
 0x964   : > { %v974_v49 = vpop.permute.xlu0 %973  ;;  %v2216_v22 = vmul.f32 %v3421_v8, %v4350_v53 }
 0x965   : > { %982 = vst.msk [vmem:[%s4300_s10 + $0x4] sm:$0xf] %vm980_vm4, %v974_v49  ;;  %v1300_v12 = vld [vmem:[%s4300_s10 + $0x8] sm:$0x1]  ;;  %vm2558_vm4 = vcmask 221376  }
 0x966   : > { %1297 = vst.msk [vmem:[%s4300_s10 + $0x4] sm:$0xf] %vm1295_vm0, %v1289_v51  ;;  %v3028_v41 = vpack.c.bf16 %v2216_v22, %v2216_v22 }
 0x967   : > { %1612 = vst.msk [vmem:[%s4300_s10 + $0x4] sm:$0xf] %vm1610_vm15, %v1604_v6 }
 0x968   : > { %2231 = vrot.lane.b32.xlu0 %v3028_v41, %s3477_s8  ;;  %v1291_v53 = vpop.permute.xlu0 %1290 }
 0x969   : > { %v1301_v27 = vsel %vm1299_vm10, %v1291_v53, %v1300_v12 }
 0x96a   : > { %1302 = vst [vmem:[%s4300_s10 + $0x8] sm:$0x1] %v1301_v27 }
 0x96c   : > { %v1287_v3 = vpop.permute.xlu0 %1286 }
 0x96d   : > { %1296 = vst.msk [vmem:[%s4300_s10] sm:$0xf] %vm1295_vm0, %v1287_v3  ;;  %vm2559_vm0 = vmand %vm2558_vm4, %vm668_vm2 }
 0x970   : > { %v1602_v34 = vpop.permute.xlu0 %1601 }
 0x971   : > { %v1615_v35 = vld [vmem:[%s4300_s10 + $0x8] sm:$0x1]  ;;  %1611 = vst.msk [vmem:[%s4300_s10] sm:$0xf] %vm1610_vm15, %v1602_v34  ;;  %vm2874_vm15 = vmand %vm2873_vm8, %vm668_vm2 }
 0x972   : > { %v1616_v55 = vsel %vm1614_vm13, %v1606_v21, %v1615_v35  ;;  %1926 = vst.msk [vmem:[%s4300_s10] sm:$0xf] %vm1925_vm6, %v1917_v4 }
 0x973   : > { %1617 = vst [vmem:[%s4300_s10 + $0x8] sm:$0x1] %v1616_v55 }
 0x97a   : > { %v1930_v48 = vld [vmem:[%s4300_s10 + $0x8] sm:$0x1] }
 0x97b   : > { %v1931_v7 = vsel %vm1929_vm12, %v1921_v28, %v1930_v48 }
 0x97c   : > { %1932 = vst [vmem:[%s4300_s10 + $0x8] sm:$0x1] %v1931_v7 }
 0x983   : > { %v2245_v25 = vld [vmem:[%s4300_s10 + $0x8] sm:$0x1] }
 0x987   : > { %2385 = vadd.xlane.f32.xlu0 %v2384_v18 }
 0x98e   : > { %v2068_v5 = vpop.xlane.xlu1 %2067 }
 0x98f   : > { %3422 = vrcp.f32 %v2068_v5 }
 0x992   : > { %v2380_v19 = vpop.xlane.xlu1 %2379 }
 0x993   : > { %3424 = vrcp.f32 %v2380_v19 }
 0x996   : > { %v2383_v26 = vpop.xlane.xlu1 %2382 }
 0x997   : > { %3426 = vrcp.f32 %v2383_v26 }
 0x999   : > { %v3423_v50 = vpop.eup %3422 }
 0x99a   : > { %v2701_v43 = vpop.xlane.xlu1 %2700  ;;  %v2218_v13 = vmul.f32 %v3423_v50, %v4354_v56 }
 0x99c   : > { %v3029_v58 = vpack.c.bf16 %v2218_v13, %v2218_v13 }
 0x99d   : > { %v3425_v11 = vpop.eup %3424 }
 0x99e   : > { %2233 = vrot.lane.b32.xlu1 %v3029_v58, %s3477_s8  ;;  %v2695_v32 = vpop.xlane.xlu1 %2694  ;;  %v2531_v37 = vmul.f32 %v3425_v11, %v4362_v17 }
 0x99f   : > { %3428 = vrcp.f32 %v2695_v32 }
 0x9a0   : > { %v3031_v2 = vpack.c.bf16 %v2531_v37, %v2531_v37 }
 0x9a1   : > { %v3427_v20 = vpop.eup %3426  ;;  %v2071_v14 = vpop.xlane.xlu0 %2070 }
 0x9a2   : > { %3430 = vrcp.f32 %v2071_v14  ;;  %2546 = vrot.lane.b32.xlu1 %v3031_v2, %s3478_s11  ;;  %v2533_v52 = vmul.f32 %v3427_v20, %v4366_v0  ;;  %v2698_v29 = vpop.xlane.xlu1 %2697 }
 0x9a3   : > { %3432 = vrcp.f32 %v2701_v43 }
 0x9a4   : > { %v3032_v16 = vpack.c.bf16 %v2533_v52, %v2533_v52  ;;  %3434 = vrcp.f32 %v2698_v29 }
 0x9a5   : > { %v1919_v56 = vpop.permute.xlu0 %1918 }
 0x9a6   : > { %1927 = vst.msk [vmem:[%s4300_s10 + $0x4] sm:$0xf] %vm1925_vm6, %v1919_v56  ;;  %2548 = vrot.lane.b32.xlu1 %v3032_v16, %s3478_s11 }
 0x9a9   : > { %v3429_v31 = vpop.eup %3428 }
 0x9aa   : > { %v2846_v15 = vmul.f32 %v3429_v31, %v4372_v24 }
 0x9ac   : > { %v3431_v17 = vpop.eup %3430  ;;  %v3034_v0 = vpack.c.bf16 %v2846_v15, %v2846_v15 }
 0x9ad   : > { %v2220_v44 = vmul.f32 %v3431_v17, %v4347_v60  ;;  %v3433_v47 = vpop.eup %3432 }
 0x9ae   : > { %v2850_v42 = vmul.f32 %v3433_v47, %v4370_v30  ;;  %v3435_v23 = vpop.eup %3434 }
 0x9af   : > { %v3030_v36 = vpack.c.bf16 %v2220_v44, %v2220_v44  ;;  %v2848_v1 = vmul.f32 %v3435_v23, %v4375_v59 }
 0x9b0   : > { %v3036_v63 = vpack.c.bf16 %v2850_v42, %v2850_v42 }
 0x9b1   : > { %2235 = vrot.lane.b32.xlu0 %v3030_v36, %s3477_s8  ;;  %v3035_v51 = vpack.c.bf16 %v2848_v1, %v2848_v1 }
 0x9b5   : > { %2861 = vrot.lane.b32.xlu0 %v3034_v0, %s3479_s13 }
 0x9b9   : > { %2865 = vrot.lane.b32.xlu0 %v3036_v63, %s3479_s13 }
 0x9da   : > { %v2232_v60 = vpop.permute.xlu0 %2231 }
 0x9db   : > { %2241 = vst.msk [vmem:[%s4300_s10] sm:$0xf] %vm2240_vm3, %v2232_v60 }
 0xa10   : > { %v2234_v39 = vpop.permute.xlu1 %2233 }
 0xa11   : > { %2242 = vst.msk [vmem:[%s4300_s10 + $0x4] sm:$0xf] %vm2240_vm3, %v2234_v39 }
 0xa14   : > { %v2386_v24 = vpop.xlane.xlu0 %2385  ;;  %v2547_v9 = vpop.permute.xlu1 %2546 }
 0xa15   : > { %3436 = vrcp.f32 %v2386_v24  ;;  %2556 = vst.msk [vmem:[%s4300_s10] sm:$0xf] %vm2555_vm14, %v2547_v9 }
 0xa18   : > { %v2549_v30 = vpop.permute.xlu1 %2548 }
 0xa19   : > { %2557 = vst.msk [vmem:[%s4300_s10 + $0x4] sm:$0xf] %vm2555_vm14, %v2549_v30 }
 0xa1f   : > { %v3437_v33 = vpop.eup %3436 }
 0xa20   : > { %v2535_v62 = vmul.f32 %v3437_v33, %v4360_v45 }
 0xa22   : > { %v3033_v40 = vpack.c.bf16 %v2535_v62, %v2535_v62 }
 0xa23   : > { %v2236_v61 = vpop.permute.xlu0 %2235 }
 0xa24   : > { %v2246_v46 = vsel %vm2244_vm7, %v2236_v61, %v2245_v25  ;;  %2550 = vrot.lane.b32.xlu1 %v3033_v40, %s3478_s11 }
 0xa25   : > { %2247 = vst [vmem:[%s4300_s10 + $0x8] sm:$0x1] %v2246_v46 }
 0xa27   : > { %v2862_v54 = vpop.permute.xlu0 %2861 }
 0xa28   : > { %2871 = vst.msk [vmem:[%s4300_s10] sm:$0xf] %vm2870_vm11, %v2862_v54  ;;  %2863 = vrot.lane.b32.xlu1 %v3035_v51, %s3479_s13 }
 0xa2b   : > { %v2866_v21 = vpop.permute.xlu0 %2865 }
 0xa2c   : > { %v2560_v45 = vld [vmem:[%s4300_s10 + $0x8] sm:$0x1] }
 0xa96   : > { %v2551_v59 = vpop.permute.xlu1 %2550 }
 0xa97   : > { %v2561_v10 = vsel %vm2559_vm0, %v2551_v59, %v2560_v45 }
 0xa98   : > { %2562 = vst [vmem:[%s4300_s10 + $0x8] sm:$0x1] %v2561_v10 }
 0xa9a   : > { %v2864_v38 = vpop.permute.xlu1 %2863 }
 0xa9b   : > { %2872 = vst.msk [vmem:[%s4300_s10 + $0x4] sm:$0xf] %vm2870_vm11, %v2864_v38 }
 0xa9f   : > { %v2875_v57 = vld [vmem:[%s4300_s10 + $0x8] sm:$0x1] }
 0xaa0   : > { %v2876_v8 = vsel %vm2874_vm15, %v2866_v21, %v2875_v57 }
 0xaa1   : > { %2877 = vst [vmem:[%s4300_s10 + $0x8] sm:$0x1] %v2876_v8 }
 0xaa2 PF: > { %s13_s12 = sadd.s32 1, %s3444_s12  }
 0xaa3   : > { %p10_p4 = scmp.ge.s32.totalorder %s13_s12, 4  }
 0xaa5   :  { %12 = sbr.rel (!%p10_p4) target bundleno = 1 (0x1), region = 65 }

</bundles_post_ra>
